<compile_context>
chip_gen: v5e
topology: v5e:2x2
jax: 0.10.0
libtpu: 0.0.40
codegen_flags: <defaults>
</compile_context>

<pallas_src>
import math
import jax
import jax.numpy as jnp
from jax.experimental import pallas as pl
from jax.experimental.pallas import tpu as pltpu


def self_attention_pallas(x, params, num_heads, block_batch=8):
    """x: (B, S, F) float32. params: dict of weights. Returns (output, attn_weights)."""
    B, S, F = x.shape
    H = num_heads
    D = F // H

    # ---- weight prep (PyTorch Linear weights are (out, in); transpose to (in, out)) ----
    wqkv = jnp.concatenate(
        [params['wq'].T, params['wk'].T, params['wv'].T], axis=1
    ).astype(jnp.bfloat16)                                        # (F, 3F)
    bqkv = jnp.concatenate(
        [params['bq'], params['bk'], params['bv']]
    ).reshape(1, 3 * F).astype(jnp.float32)                       # (1, 3F)
    wfc = params['wfc'].T.astype(jnp.bfloat16)                    # (F, F)
    bfc = params['bfc'].reshape(1, F).astype(jnp.float32)
    gamma = params['ln_gamma'].reshape(1, F).astype(jnp.float32)
    beta = params['ln_beta'].reshape(1, F).astype(jnp.float32)

    # ---- batch tiling: keep >= 2 grid steps when possible (v7x megacore) ----
    if block_batch < B and B % block_batch == 0 and block_batch % 8 == 0:
        Bblk = block_batch
    else:
        Bblk = B
    grid = (B // Bblk,)

    def kernel(x_ref, wqkv_ref, bqkv_ref, wfc_ref, bfc_ref, gamma_ref, beta_ref,
               out_ref, attn_ref):
        Bb, Sk, Fk = x_ref.shape
        rows = Bb * Sk

        # (Bblk, S, F) -> (Bblk*S, F): tile-aligned (S == 8), batch folded into sublanes.
        x = x_ref[...].reshape(rows, Fk)                          # f32

        # Fused QKV projection: one MXU matmul (bf16 in, f32 accumulate).
        qkv = jnp.dot(x.astype(jnp.bfloat16), wqkv_ref[...],
                      preferred_element_type=jnp.float32) + bqkv_ref[...]
        q3 = qkv[:, 0 * Fk:1 * Fk].reshape(Bb, Sk, Fk)
        k3 = qkv[:, 1 * Fk:2 * Fk].reshape(Bb, Sk, Fk)
        v3 = qkv[:, 2 * Fk:3 * Fk].reshape(Bb, Sk, Fk)

        scale = 1.0 / math.sqrt(D)
        attn_heads = []
        ctx_heads = []
        # H is small & static -> unrolled at trace time; each head uses 3-D einsums
        # with a single leading batch dim (no 4-D head transposes).
        for h in range(H):
            sl = slice(h * D, (h + 1) * D)
            qh = q3[:, :, sl].astype(jnp.bfloat16)                # (Bb, S, D)
            kh = k3[:, :, sl].astype(jnp.bfloat16)
            vh = v3[:, :, sl].astype(jnp.bfloat16)

            s = jnp.einsum('bqd,bkd->bqk', qh, kh,
                           preferred_element_type=jnp.float32) * scale
            m = jnp.max(s, axis=-1, keepdims=True)
            e = jnp.exp(s - m)
            inv = pl.reciprocal(jnp.sum(e, axis=-1, keepdims=True), approx=True)
            a = e * inv                                           # (Bb, S, S) f32

            attn_heads.append(a.reshape(Bb, Sk * Sk))
            ctx_heads.append(
                jnp.einsum('bqk,bkd->bqd', a.astype(jnp.bfloat16), vh,
                           preferred_element_type=jnp.float32))   # (Bb, S, D)

        # TODO(synk): attention_dropout / output_dropout are identity (eval mode).

        # Lane-dense attention-weights store: (Bb, H*S*S), last dim multiple of 128.
        attn_ref[...] = jnp.concatenate(attn_heads, axis=-1)

        # Merge heads (concat along lanes) and fold batch back into sublanes.
        ctx = jnp.concatenate(ctx_heads, axis=-1).reshape(rows, Fk)

        # Output projection + residual (residual / LayerNorm in f32).
        out = jnp.dot(ctx.astype(jnp.bfloat16), wfc_ref[...],
                      preferred_element_type=jnp.float32) + bfc_ref[...]
        y = out + x

        mean = jnp.mean(y, axis=-1, keepdims=True)
        var = jnp.mean((y - mean) ** 2, axis=-1, keepdims=True)
        norm = (y - mean) * jax.lax.rsqrt(var + 1e-5)
        out_ref[...] = (norm * gamma_ref[...] + beta_ref[...]).reshape(Bb, Sk, Fk)

    wqkv_spec = pl.BlockSpec((F, 3 * F), lambda b: (0, 0))
    bqkv_spec = pl.BlockSpec((1, 3 * F), lambda b: (0, 0))
    mat_spec = pl.BlockSpec((F, F), lambda b: (0, 0))
    vec_spec = pl.BlockSpec((1, F), lambda b: (0, 0))

    out, attn_flat = pl.pallas_call(
        kernel,
        out_shape=(
            jax.ShapeDtypeStruct((B, S, F), jnp.float32),
            jax.ShapeDtypeStruct((B, H * S * S), jnp.float32),
        ),
        grid_spec=pltpu.PrefetchScalarGridSpec(
            num_scalar_prefetch=0,
            grid=grid,
            in_specs=[
                pl.BlockSpec((Bblk, S, F), lambda b: (b, 0, 0)),   # x
                wqkv_spec, bqkv_spec,                              # fused QKV
                mat_spec, vec_spec,                                # fc W, b
                vec_spec, vec_spec,                                # ln gamma, beta
            ],
            out_specs=[
                pl.BlockSpec((Bblk, S, F), lambda b: (b, 0, 0)),
                pl.BlockSpec((Bblk, H * S * S), lambda b: (b, 0)),
            ],
        ),
        compiler_params=pltpu.CompilerParams(
            dimension_semantics=("parallel",)),
    )(x, wqkv, bqkv, wfc, bfc, gamma, beta)

    return out, attn_flat.reshape(B, H, S, S)


def self_attention_ref(x, params, num_heads):
    """Pure-JAX reference matching the PyTorch forward (dropout = identity)."""
    B, S, F = x.shape
    H = num_heads
    D = F // H
    q = x @ params['wq'].T + params['bq']
    k = x @ params['wk'].T + params['bk']
    v = x @ params['wv'].T + params['bv']
    qh = q.reshape(B, S, H, D).transpose(0, 2, 1, 3)
    kh = k.reshape(B, S, H, D).transpose(0, 2, 1, 3)
    vh = v.reshape(B, S, H, D).transpose(0, 2, 1, 3)
    scores = jnp.einsum('bhqd,bhkd->bhqk', qh, kh) / math.sqrt(D)
    attn = jax.nn.softmax(scores, axis=-1)
    ctx = jnp.einsum('bhqk,bhkd->bhqd', attn, vh)
    ctx = ctx.transpose(0, 2, 1, 3).reshape(B, S, F)
    out = ctx @ params['wfc'].T + params['bfc']
    y = out + x
    mean = jnp.mean(y, axis=-1, keepdims=True)
    var = jnp.mean((y - mean) ** 2, axis=-1, keepdims=True)
    normed = (y - mean) / jnp.sqrt(var + 1e-5)
    return normed * params['ln_gamma'] + params['ln_beta'], attn


def init_params(key, feature_dim):
    ks = jax.random.split(key, 8)
    bound = 1.0 / math.sqrt(feature_dim)
    u = lambda k, shape: jax.random.uniform(k, shape, jnp.float32, -bound, bound)
    return {
        'wq': u(ks[0], (feature_dim, feature_dim)), 'bq': u(ks[1], (feature_dim,)),
        'wk': u(ks[2], (feature_dim, feature_dim)), 'bk': u(ks[3], (feature_dim,)),
        'wv': u(ks[4], (feature_dim, feature_dim)), 'bv': u(ks[5], (feature_dim,)),
        'wfc': u(ks[6], (feature_dim, feature_dim)), 'bfc': u(ks[7], (feature_dim,)),
        'ln_gamma': jnp.ones((feature_dim,), jnp.float32),
        'ln_beta': jnp.zeros((feature_dim,), jnp.float32),
    }


if __name__ == "__main__":
    # batch, num_columns, feature_dim, num_heads
    B, S, F, H = 16, 8, 32, 4
    key = jax.random.PRNGKey(0)
    kx, kp = jax.random.split(key)
    x = jax.random.normal(kx, (B, S, F), jnp.float32)
    params = init_params(kp, F)

    out, attn = self_attention_pallas(x, params, H, block_batch=8)
    out = jax.block_until_ready(out)
    attn = jax.block_until_ready(attn)

    out_ref, attn_ref = self_attention_ref(x, params, H)
    # bf16 MXU inputs + approx reciprocal => slightly looser tolerances than pure f32.
    assert out.shape == (B, S, F) and attn.shape == (B, H, S, S)
    assert jnp.allclose(out, out_ref, atol=2e-2, rtol=2e-2), "output mismatch"
    assert jnp.allclose(attn, attn_ref, atol=2e-2, rtol=2e-2), "attention mismatch"

    print("KERNEL_OK")
</pallas_src>

<mosaic_0001>
module attributes {stable_mosaic.version = 11 : i64} {
  func.func @kernel(%arg0: i32, %arg1: memref<8x8x32xf32, #tpu.memory_space<vmem>>, %arg2: memref<32x96xbf16, #tpu.memory_space<vmem>>, %arg3: memref<1x96xf32, #tpu.memory_space<vmem>>, %arg4: memref<32x32xbf16, #tpu.memory_space<vmem>>, %arg5: memref<1x32xf32, #tpu.memory_space<vmem>>, %arg6: memref<1x32xf32, #tpu.memory_space<vmem>>, %arg7: memref<1x32xf32, #tpu.memory_space<vmem>>, %arg8: memref<8x8x32xf32, #tpu.memory_space<vmem>>, %arg9: memref<8x256xf32, #tpu.memory_space<vmem>>) attributes {dimension_semantics = [#tpu.dimension_semantics<parallel>], iteration_bounds = array<i64: 2>, scalar_prefetch = 0 : i64, scratch_operands = 0 : i64, tpu.core_type = #tpu.core_type<tc>, window_params = [{transform_indices = @transform_0, window_bounds = array<i64: 8, 8, 32>}, {pipeline_mode = #tpu.pipeline_mode<synchronous>, transform_indices = @transform_1, window_bounds = array<i64: 32, 96>}, {pipeline_mode = #tpu.pipeline_mode<synchronous>, transform_indices = @transform_2, window_bounds = array<i64: 1, 96>}, {pipeline_mode = #tpu.pipeline_mode<synchronous>, transform_indices = @transform_3, window_bounds = array<i64: 32, 32>}, {pipeline_mode = #tpu.pipeline_mode<synchronous>, transform_indices = @transform_4, window_bounds = array<i64: 1, 32>}, {pipeline_mode = #tpu.pipeline_mode<synchronous>, transform_indices = @transform_5, window_bounds = array<i64: 1, 32>}, {pipeline_mode = #tpu.pipeline_mode<synchronous>, transform_indices = @transform_6, window_bounds = array<i64: 1, 32>}, {transform_indices = @transform_7, window_bounds = array<i64: 8, 8, 32>}, {transform_indices = @transform_8, window_bounds = array<i64: 8, 256>}]} {
    %c0 = arith.constant 0 : index
    %c0_0 = arith.constant 0 : index
    %c0_1 = arith.constant 0 : index
    %0 = vector.load %arg1[%c0, %c0_0, %c0_1] : memref<8x8x32xf32, #tpu.memory_space<vmem>>, vector<8x8x32xf32>
    %1 = vector.shape_cast %0 : vector<8x8x32xf32> to vector<64x32xf32>
    %2 = arith.truncf %1 : vector<64x32xf32> to vector<64x32xbf16>
    %c0_2 = arith.constant 0 : index
    %c0_3 = arith.constant 0 : index
    %3 = vector.load %arg2[%c0_2, %c0_3] : memref<32x96xbf16, #tpu.memory_space<vmem>>, vector<32x96xbf16>
    %cst = arith.constant dense<0.000000e+00> : vector<64x96xf32>
    %4 = tpu.matmul %2, %3, %cst {dimension_numbers = #tpu.dot_dimension_numbers<[1], [0], [0], [1], [0, 0, 1, 1], [], []>} : vector<64x32xbf16>, vector<32x96xbf16>, vector<64x96xf32> -> vector<64x96xf32>
    %c0_4 = arith.constant 0 : index
    %c0_5 = arith.constant 0 : index
    %5 = vector.load %arg3[%c0_4, %c0_5] : memref<1x96xf32, #tpu.memory_space<vmem>>, vector<1x96xf32>
    %6 = vector.broadcast %5 : vector<1x96xf32> to vector<64x96xf32>
    %7 = arith.addf %4, %6 : vector<64x96xf32>
    %8 = vector.extract_strided_slice %7 {offsets = [0, 0], sizes = [64, 32], strides = [1, 1]} : vector<64x96xf32> to vector<64x32xf32>
    %9 = vector.shape_cast %8 : vector<64x32xf32> to vector<8x8x32xf32>
    %10 = vector.extract_strided_slice %7 {offsets = [0, 32], sizes = [64, 32], strides = [1, 1]} : vector<64x96xf32> to vector<64x32xf32>
    %11 = vector.shape_cast %10 : vector<64x32xf32> to vector<8x8x32xf32>
    %12 = vector.extract_strided_slice %7 {offsets = [0, 64], sizes = [64, 32], strides = [1, 1]} : vector<64x96xf32> to vector<64x32xf32>
    %13 = vector.shape_cast %12 : vector<64x32xf32> to vector<8x8x32xf32>
    %14 = vector.extract_strided_slice %9 {offsets = [0, 0, 0], sizes = [8, 8, 8], strides = [1, 1, 1]} : vector<8x8x32xf32> to vector<8x8x8xf32>
    %15 = arith.truncf %14 : vector<8x8x8xf32> to vector<8x8x8xbf16>
    %16 = vector.extract_strided_slice %11 {offsets = [0, 0, 0], sizes = [8, 8, 8], strides = [1, 1, 1]} : vector<8x8x32xf32> to vector<8x8x8xf32>
    %17 = arith.truncf %16 : vector<8x8x8xf32> to vector<8x8x8xbf16>
    %18 = vector.extract_strided_slice %13 {offsets = [0, 0, 0], sizes = [8, 8, 8], strides = [1, 1, 1]} : vector<8x8x32xf32> to vector<8x8x8xf32>
    %19 = arith.truncf %18 : vector<8x8x8xf32> to vector<8x8x8xbf16>
    "tpu.trace_start"() <{level = 10 : i32, message = "bqd,bkd->bqk"}> : () -> ()
    %cst_6 = arith.constant dense<0.000000e+00> : vector<8x8x8xf32>
    %20 = tpu.matmul %15, %17, %cst_6 {dimension_numbers = #tpu.dot_dimension_numbers<[2], [2], [1], [1], [0, 0, 0, 1, 1, 1], [0], [0]>} : vector<8x8x8xbf16>, vector<8x8x8xbf16>, vector<8x8x8xf32> -> vector<8x8x8xf32>
    "tpu.trace_stop"() : () -> ()
    %cst_7 = arith.constant 0.353553385 : f32
    %21 = vector.broadcast %cst_7 : f32 to vector<8x8x8xf32>
    %22 = arith.mulf %20, %21 : vector<8x8x8xf32>
    %cst_8 = arith.constant dense<0xFF800000> : vector<8x8xf32>
    %23 = vector.multi_reduction <maximumf>, %22, %cst_8 [2] : vector<8x8x8xf32> to vector<8x8xf32>
    %24 = vector.shape_cast %23 : vector<8x8xf32> to vector<8x8x1xf32>
    %25 = vector.broadcast %24 : vector<8x8x1xf32> to vector<8x8x8xf32>
    %26 = arith.subf %22, %25 : vector<8x8x8xf32>
    %27 = math.exp %26 : vector<8x8x8xf32>
    %cst_9 = arith.constant dense<0.000000e+00> : vector<8x8xf32>
    %28 = vector.multi_reduction <add>, %27, %cst_9 [2] : vector<8x8x8xf32> to vector<8x8xf32>
    %29 = vector.shape_cast %28 : vector<8x8xf32> to vector<8x8x1xf32>
    %30 = tpu.reciprocal %29 {approx = true} : vector<8x8x1xf32> -> vector<8x8x1xf32>
    %31 = vector.broadcast %30 : vector<8x8x1xf32> to vector<8x8x8xf32>
    %32 = arith.mulf %27, %31 : vector<8x8x8xf32>
    %33 = vector.shape_cast %32 : vector<8x8x8xf32> to vector<8x64xf32>
    %34 = arith.truncf %32 : vector<8x8x8xf32> to vector<8x8x8xbf16>
    "tpu.trace_start"() <{level = 10 : i32, message = "bqk,bkd->bqd"}> : () -> ()
    %cst_10 = arith.constant dense<0.000000e+00> : vector<8x8x8xf32>
    %35 = tpu.matmul %34, %19, %cst_10 {dimension_numbers = #tpu.dot_dimension_numbers<[2], [1], [1], [2], [0, 0, 0, 1, 1, 2], [0], [0]>} : vector<8x8x8xbf16>, vector<8x8x8xbf16>, vector<8x8x8xf32> -> vector<8x8x8xf32>
    "tpu.trace_stop"() : () -> ()
    %36 = vector.extract_strided_slice %9 {offsets = [0, 0, 8], sizes = [8, 8, 8], strides = [1, 1, 1]} : vector<8x8x32xf32> to vector<8x8x8xf32>
    %37 = arith.truncf %36 : vector<8x8x8xf32> to vector<8x8x8xbf16>
    %38 = vector.extract_strided_slice %11 {offsets = [0, 0, 8], sizes = [8, 8, 8], strides = [1, 1, 1]} : vector<8x8x32xf32> to vector<8x8x8xf32>
    %39 = arith.truncf %38 : vector<8x8x8xf32> to vector<8x8x8xbf16>
    %40 = vector.extract_strided_slice %13 {offsets = [0, 0, 8], sizes = [8, 8, 8], strides = [1, 1, 1]} : vector<8x8x32xf32> to vector<8x8x8xf32>
    %41 = arith.truncf %40 : vector<8x8x8xf32> to vector<8x8x8xbf16>
    "tpu.trace_start"() <{level = 10 : i32, message = "bqd,bkd->bqk"}> : () -> ()
    %cst_11 = arith.constant dense<0.000000e+00> : vector<8x8x8xf32>
    %42 = tpu.matmul %37, %39, %cst_11 {dimension_numbers = #tpu.dot_dimension_numbers<[2], [2], [1], [1], [0, 0, 0, 1, 1, 1], [0], [0]>} : vector<8x8x8xbf16>, vector<8x8x8xbf16>, vector<8x8x8xf32> -> vector<8x8x8xf32>
    "tpu.trace_stop"() : () -> ()
    %cst_12 = arith.constant 0.353553385 : f32
    %43 = vector.broadcast %cst_12 : f32 to vector<8x8x8xf32>
    %44 = arith.mulf %42, %43 : vector<8x8x8xf32>
    %cst_13 = arith.constant dense<0xFF800000> : vector<8x8xf32>
    %45 = vector.multi_reduction <maximumf>, %44, %cst_13 [2] : vector<8x8x8xf32> to vector<8x8xf32>
    %46 = vector.shape_cast %45 : vector<8x8xf32> to vector<8x8x1xf32>
    %47 = vector.broadcast %46 : vector<8x8x1xf32> to vector<8x8x8xf32>
    %48 = arith.subf %44, %47 : vector<8x8x8xf32>
    %49 = math.exp %48 : vector<8x8x8xf32>
    %cst_14 = arith.constant dense<0.000000e+00> : vector<8x8xf32>
    %50 = vector.multi_reduction <add>, %49, %cst_14 [2] : vector<8x8x8xf32> to vector<8x8xf32>
    %51 = vector.shape_cast %50 : vector<8x8xf32> to vector<8x8x1xf32>
    %52 = tpu.reciprocal %51 {approx = true} : vector<8x8x1xf32> -> vector<8x8x1xf32>
    %53 = vector.broadcast %52 : vector<8x8x1xf32> to vector<8x8x8xf32>
    %54 = arith.mulf %49, %53 : vector<8x8x8xf32>
    %55 = vector.shape_cast %54 : vector<8x8x8xf32> to vector<8x64xf32>
    %56 = arith.truncf %54 : vector<8x8x8xf32> to vector<8x8x8xbf16>
    "tpu.trace_start"() <{level = 10 : i32, message = "bqk,bkd->bqd"}> : () -> ()
    %cst_15 = arith.constant dense<0.000000e+00> : vector<8x8x8xf32>
    %57 = tpu.matmul %56, %41, %cst_15 {dimension_numbers = #tpu.dot_dimension_numbers<[2], [1], [1], [2], [0, 0, 0, 1, 1, 2], [0], [0]>} : vector<8x8x8xbf16>, vector<8x8x8xbf16>, vector<8x8x8xf32> -> vector<8x8x8xf32>
    "tpu.trace_stop"() : () -> ()
    %58 = vector.extract_strided_slice %9 {offsets = [0, 0, 16], sizes = [8, 8, 8], strides = [1, 1, 1]} : vector<8x8x32xf32> to vector<8x8x8xf32>
    %59 = arith.truncf %58 : vector<8x8x8xf32> to vector<8x8x8xbf16>
    %60 = vector.extract_strided_slice %11 {offsets = [0, 0, 16], sizes = [8, 8, 8], strides = [1, 1, 1]} : vector<8x8x32xf32> to vector<8x8x8xf32>
    %61 = arith.truncf %60 : vector<8x8x8xf32> to vector<8x8x8xbf16>
    %62 = vector.extract_strided_slice %13 {offsets = [0, 0, 16], sizes = [8, 8, 8], strides = [1, 1, 1]} : vector<8x8x32xf32> to vector<8x8x8xf32>
    %63 = arith.truncf %62 : vector<8x8x8xf32> to vector<8x8x8xbf16>
    "tpu.trace_start"() <{level = 10 : i32, message = "bqd,bkd->bqk"}> : () -> ()
    %cst_16 = arith.constant dense<0.000000e+00> : vector<8x8x8xf32>
    %64 = tpu.matmul %59, %61, %cst_16 {dimension_numbers = #tpu.dot_dimension_numbers<[2], [2], [1], [1], [0, 0, 0, 1, 1, 1], [0], [0]>} : vector<8x8x8xbf16>, vector<8x8x8xbf16>, vector<8x8x8xf32> -> vector<8x8x8xf32>
    "tpu.trace_stop"() : () -> ()
    %cst_17 = arith.constant 0.353553385 : f32
    %65 = vector.broadcast %cst_17 : f32 to vector<8x8x8xf32>
    %66 = arith.mulf %64, %65 : vector<8x8x8xf32>
    %cst_18 = arith.constant dense<0xFF800000> : vector<8x8xf32>
    %67 = vector.multi_reduction <maximumf>, %66, %cst_18 [2] : vector<8x8x8xf32> to vector<8x8xf32>
    %68 = vector.shape_cast %67 : vector<8x8xf32> to vector<8x8x1xf32>
    %69 = vector.broadcast %68 : vector<8x8x1xf32> to vector<8x8x8xf32>
    %70 = arith.subf %66, %69 : vector<8x8x8xf32>
    %71 = math.exp %70 : vector<8x8x8xf32>
    %cst_19 = arith.constant dense<0.000000e+00> : vector<8x8xf32>
    %72 = vector.multi_reduction <add>, %71, %cst_19 [2] : vector<8x8x8xf32> to vector<8x8xf32>
    %73 = vector.shape_cast %72 : vector<8x8xf32> to vector<8x8x1xf32>
    %74 = tpu.reciprocal %73 {approx = true} : vector<8x8x1xf32> -> vector<8x8x1xf32>
    %75 = vector.broadcast %74 : vector<8x8x1xf32> to vector<8x8x8xf32>
    %76 = arith.mulf %71, %75 : vector<8x8x8xf32>
    %77 = vector.shape_cast %76 : vector<8x8x8xf32> to vector<8x64xf32>
    %78 = arith.truncf %76 : vector<8x8x8xf32> to vector<8x8x8xbf16>
    "tpu.trace_start"() <{level = 10 : i32, message = "bqk,bkd->bqd"}> : () -> ()
    %cst_20 = arith.constant dense<0.000000e+00> : vector<8x8x8xf32>
    %79 = tpu.matmul %78, %63, %cst_20 {dimension_numbers = #tpu.dot_dimension_numbers<[2], [1], [1], [2], [0, 0, 0, 1, 1, 2], [0], [0]>} : vector<8x8x8xbf16>, vector<8x8x8xbf16>, vector<8x8x8xf32> -> vector<8x8x8xf32>
    "tpu.trace_stop"() : () -> ()
    %80 = vector.extract_strided_slice %9 {offsets = [0, 0, 24], sizes = [8, 8, 8], strides = [1, 1, 1]} : vector<8x8x32xf32> to vector<8x8x8xf32>
    %81 = arith.truncf %80 : vector<8x8x8xf32> to vector<8x8x8xbf16>
    %82 = vector.extract_strided_slice %11 {offsets = [0, 0, 24], sizes = [8, 8, 8], strides = [1, 1, 1]} : vector<8x8x32xf32> to vector<8x8x8xf32>
    %83 = arith.truncf %82 : vector<8x8x8xf32> to vector<8x8x8xbf16>
    %84 = vector.extract_strided_slice %13 {offsets = [0, 0, 24], sizes = [8, 8, 8], strides = [1, 1, 1]} : vector<8x8x32xf32> to vector<8x8x8xf32>
    %85 = arith.truncf %84 : vector<8x8x8xf32> to vector<8x8x8xbf16>
    "tpu.trace_start"() <{level = 10 : i32, message = "bqd,bkd->bqk"}> : () -> ()
    %cst_21 = arith.constant dense<0.000000e+00> : vector<8x8x8xf32>
    %86 = tpu.matmul %81, %83, %cst_21 {dimension_numbers = #tpu.dot_dimension_numbers<[2], [2], [1], [1], [0, 0, 0, 1, 1, 1], [0], [0]>} : vector<8x8x8xbf16>, vector<8x8x8xbf16>, vector<8x8x8xf32> -> vector<8x8x8xf32>
    "tpu.trace_stop"() : () -> ()
    %cst_22 = arith.constant 0.353553385 : f32
    %87 = vector.broadcast %cst_22 : f32 to vector<8x8x8xf32>
    %88 = arith.mulf %86, %87 : vector<8x8x8xf32>
    %cst_23 = arith.constant dense<0xFF800000> : vector<8x8xf32>
    %89 = vector.multi_reduction <maximumf>, %88, %cst_23 [2] : vector<8x8x8xf32> to vector<8x8xf32>
    %90 = vector.shape_cast %89 : vector<8x8xf32> to vector<8x8x1xf32>
    %91 = vector.broadcast %90 : vector<8x8x1xf32> to vector<8x8x8xf32>
    %92 = arith.subf %88, %91 : vector<8x8x8xf32>
    %93 = math.exp %92 : vector<8x8x8xf32>
    %cst_24 = arith.constant dense<0.000000e+00> : vector<8x8xf32>
    %94 = vector.multi_reduction <add>, %93, %cst_24 [2] : vector<8x8x8xf32> to vector<8x8xf32>
    %95 = vector.shape_cast %94 : vector<8x8xf32> to vector<8x8x1xf32>
    %96 = tpu.reciprocal %95 {approx = true} : vector<8x8x1xf32> -> vector<8x8x1xf32>
    %97 = vector.broadcast %96 : vector<8x8x1xf32> to vector<8x8x8xf32>
    %98 = arith.mulf %93, %97 : vector<8x8x8xf32>
    %99 = vector.shape_cast %98 : vector<8x8x8xf32> to vector<8x64xf32>
    %100 = arith.truncf %98 : vector<8x8x8xf32> to vector<8x8x8xbf16>
    "tpu.trace_start"() <{level = 10 : i32, message = "bqk,bkd->bqd"}> : () -> ()
    %cst_25 = arith.constant dense<0.000000e+00> : vector<8x8x8xf32>
    %101 = tpu.matmul %100, %85, %cst_25 {dimension_numbers = #tpu.dot_dimension_numbers<[2], [1], [1], [2], [0, 0, 0, 1, 1, 2], [0], [0]>} : vector<8x8x8xbf16>, vector<8x8x8xbf16>, vector<8x8x8xf32> -> vector<8x8x8xf32>
    "tpu.trace_stop"() : () -> ()
    %102 = tpu.concatenate %33, %55, %77, %99 in 1 : vector<8x64xf32>, vector<8x64xf32>, vector<8x64xf32>, vector<8x64xf32> -> vector<8x256xf32>
    %c0_26 = arith.constant 0 : index
    %c0_27 = arith.constant 0 : index
    %103 = vector.load %arg9[%c0_26, %c0_27] : memref<8x256xf32, #tpu.memory_space<vmem>>, vector<8x256xf32>
    tpu.vector_store %arg9[%c0_26, %c0_27], %102 {strides = array<i32>} : memref<8x256xf32, #tpu.memory_space<vmem>>, vector<8x256xf32>,
    %104 = tpu.concatenate %35, %57, %79, %101 in 2 : vector<8x8x8xf32>, vector<8x8x8xf32>, vector<8x8x8xf32>, vector<8x8x8xf32> -> vector<8x8x32xf32>
    %105 = vector.shape_cast %104 : vector<8x8x32xf32> to vector<64x32xf32>
    %106 = arith.truncf %105 : vector<64x32xf32> to vector<64x32xbf16>
    %c0_28 = arith.constant 0 : index
    %c0_29 = arith.constant 0 : index
    %107 = vector.load %arg4[%c0_28, %c0_29] : memref<32x32xbf16, #tpu.memory_space<vmem>>, vector<32x32xbf16>
    %cst_30 = arith.constant dense<0.000000e+00> : vector<64x32xf32>
    %108 = tpu.matmul %106, %107, %cst_30 {dimension_numbers = #tpu.dot_dimension_numbers<[1], [0], [0], [1], [0, 0, 1, 1], [], []>} : vector<64x32xbf16>, vector<32x32xbf16>, vector<64x32xf32> -> vector<64x32xf32>
    %c0_31 = arith.constant 0 : index
    %c0_32 = arith.constant 0 : index
    %109 = vector.load %arg5[%c0_31, %c0_32] : memref<1x32xf32, #tpu.memory_space<vmem>>, vector<1x32xf32>
    %110 = vector.broadcast %109 : vector<1x32xf32> to vector<64x32xf32>
    %111 = arith.addf %108, %110 : vector<64x32xf32>
    %112 = arith.addf %111, %1 : vector<64x32xf32>
    %cst_33 = arith.constant dense<0.000000e+00> : vector<64xf32>
    %113 = vector.multi_reduction <add>, %112, %cst_33 [1] : vector<64x32xf32> to vector<64xf32>
    %114 = vector.shape_cast %113 : vector<64xf32> to vector<64x1xf32>
    %cst_34 = arith.constant 3.200000e+01 : f32
    %115 = vector.broadcast %cst_34 : f32 to vector<64x1xf32>
    %116 = arith.divf %114, %115 : vector<64x1xf32>
    %117 = vector.broadcast %116 : vector<64x1xf32> to vector<64x32xf32>
    %118 = arith.subf %112, %117 : vector<64x32xf32>
    %119 = arith.mulf %118, %118 : vector<64x32xf32>
    %cst_35 = arith.constant dense<0.000000e+00> : vector<64xf32>
    %120 = vector.multi_reduction <add>, %119, %cst_35 [1] : vector<64x32xf32> to vector<64xf32>
    %121 = vector.shape_cast %120 : vector<64xf32> to vector<64x1xf32>
    %cst_36 = arith.constant 3.200000e+01 : f32
    %122 = vector.broadcast %cst_36 : f32 to vector<64x1xf32>
    %123 = arith.divf %121, %122 : vector<64x1xf32>
    %124 = vector.broadcast %116 : vector<64x1xf32> to vector<64x32xf32>
    %125 = arith.subf %112, %124 : vector<64x32xf32>
    %cst_37 = arith.constant 9.99999974E-6 : f32
    %126 = vector.broadcast %cst_37 : f32 to vector<64x1xf32>
    %127 = arith.addf %123, %126 : vector<64x1xf32>
    %128 = math.rsqrt %127 : vector<64x1xf32>
    %129 = vector.broadcast %128 : vector<64x1xf32> to vector<64x32xf32>
    %130 = arith.mulf %125, %129 : vector<64x32xf32>
    %c0_38 = arith.constant 0 : index
    %c0_39 = arith.constant 0 : index
    %131 = vector.load %arg6[%c0_38, %c0_39] : memref<1x32xf32, #tpu.memory_space<vmem>>, vector<1x32xf32>
    %132 = vector.broadcast %131 : vector<1x32xf32> to vector<64x32xf32>
    %133 = arith.mulf %130, %132 : vector<64x32xf32>
    %c0_40 = arith.constant 0 : index
    %c0_41 = arith.constant 0 : index
    %134 = vector.load %arg7[%c0_40, %c0_41] : memref<1x32xf32, #tpu.memory_space<vmem>>, vector<1x32xf32>
    %135 = vector.broadcast %134 : vector<1x32xf32> to vector<64x32xf32>
    %136 = arith.addf %133, %135 : vector<64x32xf32>
    %137 = vector.shape_cast %136 : vector<64x32xf32> to vector<8x8x32xf32>
    %c0_42 = arith.constant 0 : index
    %c0_43 = arith.constant 0 : index
    %c0_44 = arith.constant 0 : index
    %138 = vector.load %arg8[%c0_42, %c0_43, %c0_44] : memref<8x8x32xf32, #tpu.memory_space<vmem>>, vector<8x8x32xf32>
    tpu.vector_store %arg8[%c0_42, %c0_43, %c0_44], %137 {strides = array<i32>} : memref<8x8x32xf32, #tpu.memory_space<vmem>>, vector<8x8x32xf32>,
    return
  }
  func.func @transform_0(%arg0: i32) -> (i32, i32, i32) {
    %c0_i32 = arith.constant 0 : i32
    %c0_i32_0 = arith.constant 0 : i32
    %c0_i32_1 = arith.constant 0 : i32
    return %arg0, %c0_i32, %c0_i32_0 : i32, i32, i32
  }
  func.func @transform_1(%arg0: i32) -> (i32, i32) {
    %c0_i32 = arith.constant 0 : i32
    %c0_i32_0 = arith.constant 0 : i32
    %c0_i32_1 = arith.constant 0 : i32
    return %c0_i32, %c0_i32_0 : i32, i32
  }
  func.func @transform_2(%arg0: i32) -> (i32, i32) {
    %c0_i32 = arith.constant 0 : i32
    %c0_i32_0 = arith.constant 0 : i32
    %c0_i32_1 = arith.constant 0 : i32
    return %c0_i32, %c0_i32_0 : i32, i32
  }
  func.func @transform_3(%arg0: i32) -> (i32, i32) {
    %c0_i32 = arith.constant 0 : i32
    %c0_i32_0 = arith.constant 0 : i32
    %c0_i32_1 = arith.constant 0 : i32
    return %c0_i32, %c0_i32_0 : i32, i32
  }
  func.func @transform_4(%arg0: i32) -> (i32, i32) {
    %c0_i32 = arith.constant 0 : i32
    %c0_i32_0 = arith.constant 0 : i32
    %c0_i32_1 = arith.constant 0 : i32
    return %c0_i32, %c0_i32_0 : i32, i32
  }
  func.func @transform_5(%arg0: i32) -> (i32, i32) {
    %c0_i32 = arith.constant 0 : i32
    %c0_i32_0 = arith.constant 0 : i32
    %c0_i32_1 = arith.constant 0 : i32
    return %c0_i32, %c0_i32_0 : i32, i32
  }
  func.func @transform_6(%arg0: i32) -> (i32, i32) {
    %c0_i32 = arith.constant 0 : i32
    %c0_i32_0 = arith.constant 0 : i32
    %c0_i32_1 = arith.constant 0 : i32
    return %c0_i32, %c0_i32_0 : i32, i32
  }
  func.func @transform_7(%arg0: i32) -> (i32, i32, i32) {
    %c0_i32 = arith.constant 0 : i32
    %c0_i32_0 = arith.constant 0 : i32
    %c0_i32_1 = arith.constant 0 : i32
    return %arg0, %c0_i32, %c0_i32_0 : i32, i32, i32
  }
  func.func @transform_8(%arg0: i32) -> (i32, i32) {
    %c0_i32 = arith.constant 0 : i32
    %c0_i32_0 = arith.constant 0 : i32
    return %arg0, %c0_i32 : i32, i32
  }
}

</mosaic_0001>

<bundles_post_ra>
// kernel: tpu_custom_call.1
= control target key start
LH: loop header
LB: loop body
LE: loop exit
PB: predicated region body
PF: predicated region fallthrough
CT: control target
= control target key end

     0   :  { %s5635_s0 = inlined_call_operand.hbm [shape: f32[16,8,32], index: 0, kind: input, shape index: {}]   ;;  %s5636_s1 = inlined_call_operand.hbm [shape: bf16[32,96], index: 1, kind: input, shape index: {}]   ;;  %s5637_s2 = inlined_call_operand.vmem [shape: f32[1,96], index: 2, kind: input, shape index: {}]   ;;  %s5638_s3 = inlined_call_operand.hbm [shape: bf16[32,32], index: 3, kind: input, shape index: {}]   ;;  %s5639_s4 = inlined_call_operand.vmem [shape: f32[1,32], index: 4, kind: input, shape index: {}]   ;;  %s5640_s5 = inlined_call_operand.vmem [shape: f32[1,32], index: 5, kind: input, shape index: {}]   ;;  %s5641_s6 = inlined_call_operand.vmem [shape: f32[1,32], index: 6, kind: input, shape index: {}]   ;;  %s5642_s7 = inlined_call_operand.hbm [shape: f32[16,8,32], index: 7, kind: output, shape index: {0}]   ;;  %s5643_s8 = inlined_call_operand.hbm [shape: f32[16,256], index: 8, kind: output, shape index: {1}]  }
   0x1   :  { %5645 = sst [smem:[#allocation28_spill]] %s5635_s0 }
   0x2   :  { %5646 = sst [smem:[#allocation29_spill]] %s5636_s1 }
   0x3   :  { %5647 = sst [smem:[#allocation30_spill]] %s5638_s3 }
   0x4   :  { %14 = vsyncpa [#allocation3], 0 }
   0x5   :  { %16 = vsyncpa [#allocation3 + $0x1], 0 }
   0x6   :  { %17 = vsyncpa [#allocation6], 0 }
   0x7   :  { %18 = vsyncpa [#allocation4], 0 }
   0x8   :  { %20 = vsyncpa [#allocation4 + $0x1], 0 }
   0x9   :  { %21 = vsyncpa [#allocation10], 0 }
   0xa   :  { %23 = vsyncpa [#allocation10 + $0x1], 0  ;;  %s4165_s27 = smov 0   ;;  %s4167_s28 = smov 0  }
   0xb   :  { %s4169_s29 = smov 0   ;;  %s4171_s30 = smov 0  }
   0xc LB: > { %s4186_s9 = sadd.s32 4294967295, %s4093_s30   ;;  %s3465_s10 = sadd.s32 4294967294, %s4093_s30   ;;  %s4093_s30 = sphi %s4171_s30, %s5695_s30   ;;  %s4089_s29 = sphi %s4169_s29, %s5694_s29   ;;  %s4085_s28 = sphi %s4167_s28, %s5693_s28   ;;  %s4081_s27 = sphi %s4165_s27, %s5692_s27  }
   0xd   : > { %p49_p0 = scmp.ne.s32.totalorder %s4085_s28, %s4081_s27  ;;  %p50_p1 = scmp.eq.s32.totalorder %s4186_s9, 0 }
   0xe   : > { %p199_p2 = scmp.eq.s32.totalorder %s4186_s9, 1  ;;  %p205_p3 = scmp.eq.s32.totalorder %s3465_s10, 1 }
   0xf   : > { %p4195_p4 = por %p50_p1, %p49_p0  ;;  %p3466_p5 = scmp.ge.s32.totalorder %s4093_s30, 1 }
  0x10   : > { %p4200_p6 = por %p205_p3, %p49_p0  ;;  %p238_p7 = scmp.lt.s32.totalorder %s4093_s30, 3 }
  0x11   : > { %s5650_s1 = sld [smem:[#allocation29_spill]]  ;;  %s4095_s17 = smov [#allocation5]  }
  0x12   : > { %p4208_p8 = pnand %p3466_p5, %p238_p7  ;;  %s251_s18 = sshll.u32 %s4095_s17, 4  ;;  %s252_s18 = int_to_ptr.vmem [resolvable:$true] %s251_s18 }
  0x13   : > { %s5652_s3 = sld [smem:[#allocation30_spill]]  ;;  %s4096_s22 = smov 64  }
  0x14   : > { %p3602_p9 = pneg %p4208_p8  ;;  %s4097_s23 = smov 4  }
  0x15   : > { %s4098_s24 = smov [#allocation7]   ;;  %s4221_s26 = sadd.s32 1, %s4093_s30  }
  0x16   : > { %p3603_p10 = pnand %p3602_p9, %p50_p1  ;;  %s268_s25 = sshll.u32 %s4098_s24, 4  ;;  %s269_s25 = int_to_ptr.vmem [resolvable:$true] %s268_s25 }
  0x17   : > { %s249_s15 = sshll.u32 %s5650_s1, 4  ;;  %s36_s10 = sadd.s32 1, %s4089_s29  ;;  %s250_s15 = int_to_ptr.hbm [resolvable:$true] %s249_s15 }
  0x18   : > { %3605 = dma.hbm_to_vmem [thread:$0]  (!%p3603_p10), %s250_s15, 256, %s252_s18, [#allocation6], %s4096_s22, %s4096_s22, %s4097_s23  }
  0x19   : > { %s266_s21 = sshll.u32 %s5652_s3, 4  ;;  %s33_s13 = ssub.s32 %s4093_s30, %s4221_s26  ;;  %s267_s21 = int_to_ptr.hbm [resolvable:$true] %s266_s21 }
  0x1a   : > { %3608 = dma.hbm_to_vmem [thread:$0]  (!%p3603_p10), %s267_s21, 256, %s269_s25, [#allocation6], %s4096_s22, %s4096_s22, %s4097_s23  }
  0x1b   : > { %p43_p12 = scmp.ne.s32.totalorder %s4089_s29, %s4085_s28  ;;  %p34_p13 = scmp.eq.s32.totalorder %s33_s13, 0 }
  0x1c   : > { %p44_p0 = scmp.eq.s32.totalorder %s4093_s30, 0  ;;  %p3622_p5 = scmp.lt.s32.totalorder %s4093_s30, 2 }
  0x1d   : > { %p4231_p3 = por %p199_p2, %p43_p12  ;;  %s291_s17 = sand.u32 1, %s4089_s29  }
  0x1e   : > { %s4237_s15 = scalar_select %p34_p13, %s4089_s29, %s36_s10  }
  0x1f   : > { %p45_p7 = por %p44_p0, %p43_p12  ;;  %s3470_s18 = sshll.u32 %s291_s17, 6 }
  0x20   : > { %s3575_s19 = sshll.u32 %s4093_s30, 6  ;;  %s5654_s0 = sld [smem:[#allocation28_spill]] }
  0x21   : > { %s295_s23 = scalar_lea.vmem [#allocation2], %s3470_s18  ;;  %p4244_p2 = pnand %p3622_p5, %p45_p7 }
  0x22   : > { %s303_s24 = sshll.u32 %s295_s23, 4  ;;  %s292_s10 = scalar_lea.sflag [#allocation3], %s291_s17  ;;  %s304_s24 = int_to_ptr.vmem [resolvable:$true] %s303_s24 }
  0x23   : > { %p3965_p10 = pneg %p4244_p2 }
  0x26   : > { %s300_s22 = scalar_lea.hbm %s5654_s0, %s3575_s19  ;;  %s3968_s20 = scalar_lea.hbm %s5654_s0, 128 }
  0x27   : > { %s301_s25 = sshll.u32 %s300_s22, 4  ;;  %s302_s25 = int_to_ptr.hbm [resolvable:$true] %s301_s25 }
  0x28   : > { %s3961_s1 = sshra.s32 %s302_s25, 4  ;;  %s3962_s1 = int_to_ptr.hbm [resolvable:$true] %s3961_s1 }
  0x29   : > { %s3963_s3 = scalar_lea.hbm %s3962_s1, 64  ;;  %p3969_p0 = scmp.lt.s32.totalorder %s3962_s1, %s5654_s0 }
  0x2a   : > { %p3964_p9 = scmp.ne.s32.totalorder %s3962_s1, %s3963_s3  ;;  %p3970_p5 = scmp.lt.s32.totalorder %s3968_s20, %s3963_s3 }
  0x2c   : > { %p3966_p12 = pnand %p3965_p10, %p3964_p9  ;;  %p3971_p7 = por %p3970_p5, %p3969_p0 }
  0x2e   : > { %p3967_p13 = pneg %p3966_p12 }
  0x30   : > { %p3972_p11 = pnand %p3971_p7, %p3967_p13 }
  0x32   : > { %3975 = shalt.err (!%p3972_p11)
}
  0x33   : > { %s4099_s17 = smov 128   ;;  %s4100_s23 = smov 8  }
  0x34   : > { %3612 = dma.hbm_to_vmem [thread:$0]  (!%p4244_p2), %s302_s25, 1024, %s304_s24, %s292_s10, %s4099_s17, %s4099_s17, %s4100_s23  }
  0x35   : > { %315 = sbr.rel (%p4208_p8) target bundleno = 2869 (0xb35), region = 48 }
  0x3a   : > { %s4261_s19 = sand.u32 1, %s4085_s28  }
  0x3b   : > { %s3474_s1 = sshll.u32 %s4261_s19, 6  ;;  %s318_s3 = scalar_lea.sflag [#allocation3], %s4261_s19 }
  0x3c   : > { %s4267_s18 = scalar_lea.vmem [#allocation2], %s3474_s1 }
  0x3d   : > { %4064 = dma.done.wait (%p4195_p4), %s318_s3, 1024  }
  0x3e   : > { %4066 = vsyncadd (%p4195_p4), %s318_s3, 4294966272 }
  0x3f   : > { %4068 = dma.done.wait (%p50_p1), [#allocation6], 512  }
  0x40   : > { %4070 = vsyncadd (%p50_p1), [#allocation6], 4294966784  ;;  %v3577_v0 = vld [vmem:[#allocation5 + $0x8] sm:$0xff]  ;;  %v3576_v1 = vld [vmem:[#allocation5] sm:$0xff]  ;;  %vm405_vm0 = vcmask 261120   ;;  %s4101_s24 = smov 96  }
  0x41   : > { %v373_v2 = vld [vmem:[%s4267_s18] sm:$0xff]  ;;  %v374_v3 = vld [vmem:[%s4267_s18 + $0x8] sm:$0xff]  ;;  %v375_v4 = vld [vmem:[%s4267_s18 + $0x10] sm:$0xff]  ;;  %424 = vmatpush.bf16.msra.mxu0 %v3577_v0  ;;  %3582 = vmatpush.bf16.msra.mxu1 %v3577_v0  ;;  %s4102_s25 = smov 64   ;;  %s4103_s13 = smov 88   ;;  %vm460_vm1 = vcmask 64512  }
  0x42   : > { %v376_v5 = vld [vmem:[%s4267_s18 + $0x18] sm:$0xff]  ;;  %v377_v6 = vld [vmem:[%s4267_s18 + $0x20] sm:$0xff]  ;;  %v378_v7 = vld [vmem:[%s4267_s18 + $0x28] sm:$0xff]  ;;  %3583 = vmatpush.bf16.msra.mxu2 %v3577_v0  ;;  %3584 = vmatpush.bf16.msra.mxu3 %v3577_v0  ;;  %v381_v10 = vpack.c.bf16 %v374_v3, %v373_v2  ;;  %s4104_s10 = smov 120   ;;  %vm910_vm2 = vcmask 1043456   ;;  %s4105_s20 = smov 56  }
  0x43   : > { %v379_v8 = vld [vmem:[%s4267_s18 + $0x30] sm:$0xff]  ;;  %v380_v9 = vld [vmem:[%s4267_s18 + $0x38] sm:$0xff]  ;;  %v382_v11 = vpack.c.bf16 %v376_v5, %v375_v4  ;;  %v383_v12 = vpack.c.bf16 %v378_v7, %v377_v6  ;;  %v3743_v14 = vld [vmem:[%s5637_s2] ss:$0 sm:$0xff]  ;;  %vm745_vm3 = vcmask 1047556   ;;  %s4107_s21 = smov 80  }
  0x44   : > { %v384_v13 = vpack.c.bf16 %v380_v9, %v379_v8  ;;  %s4109_s22 = smov 112   ;;  %s4110_s17 = smov 48   ;;  %vm886_vm4 = vcmask 130048   ;;  %vm888_vm5 = vcmask 195584   ;;  %vm891_vm6 = vcmask 326656  }
  0x45   : > { %425 = vmatpush.bf16.msra.mxu0 %v3576_v1  ;;  %3585 = vmatpush.bf16.msra.mxu1 %v3576_v1  ;;  %s4111_s23 = smov 72   ;;  %s4112_s3 = smov 104   ;;  %vm893_vm7 = vcmask 392192   ;;  %vm895_vm8 = vcmask 457728  }
  0x46   : > { %3586 = vmatpush.bf16.msra.mxu2 %v3576_v1  ;;  %3587 = vmatpush.bf16.msra.mxu3 %v3576_v1  ;;  %s4113_s11 = smov 40   ;;  %s5644_s16 = smov 8  }
  0x48   : > { %3487 = vmatmul.msk.bf16.vlgmr.msra.gmra.mxu0 %vm405_vm0, %v381_v10  ;;  %3488 = vmatmul.msk.bf16.vlgmr.msra.gmra.mxu1 %vm405_vm0, %v382_v11 }
  0x49   : > { %3489 = vmatmul.msk.bf16.vlgmr.msra.gmra.mxu2 %vm405_vm0, %v383_v12  ;;  %3490 = vmatmul.msk.bf16.vlgmr.msra.gmra.mxu3 %vm405_vm0, %v384_v13 }
  0xc5   : > { %v427_v15 = vpop.f32.mrf.mxu0  ;;  %v432_v16 = vpop.f32.mrf.mxu1 }
  0xc6   : > { %v433_v17 = vadd.f32 %v3743_v14, %v432_v16  ;;  %v428_v31 = vadd.f32 %v3743_v14, %v427_v15 }
  0xc8   : > { %v4292_v18 = vpack.c.bf16 %v433_v17, %v433_v17  ;;  %v4314_v40 = vpack.c.bf16 %v428_v31, %v428_v31 }
  0xca   : > { %v505_v19 = vunpack.c.l.b16 %v4292_v18  ;;  %v456_v46 = vunpack.c.l.b16 %v4314_v40 }
  0xcc   : > { %v4295_v20 = vpack.c.b16 %v505_v19, %v505_v19  ;;  %v437_v21 = vpop.f32.mrf.mxu2  ;;  %v442_v22 = vpop.f32.mrf.mxu3  ;;  %v4335_v52 = vpack.c.b16 %v456_v46, %v456_v46 }
  0xcd   : > { %v429_v23 = vpop.f32.mrf.mxu0  ;;  %v434_v24 = vpop.f32.mrf.mxu1  ;;  %v438_v25 = vadd.f32 %v3743_v14, %v437_v21  ;;  %v443_v43 = vadd.f32 %v3743_v14, %v442_v22 }
  0xce   : > { %v430_v26 = vadd.f32 %v3743_v14, %v429_v23  ;;  %v435_v27 = vadd.f32 %v3743_v14, %v434_v24  ;;  %507 = vrot.lane.b32.xlu1 %v4295_v20, %s4101_s24 }
  0xcf   : > { %v4299_v28 = vpack.c.bf16 %v438_v25, %v438_v25  ;;  %v4329_v49 = vpack.c.bf16 %v443_v43, %v443_v43 }
  0xd0   : > { %v4301_v29 = vpack.c.bf16 %v430_v26, %v430_v26  ;;  %v4303_v30 = vpack.c.bf16 %v435_v27, %v435_v27 }
  0xd1   : > { %v553_v32 = vunpack.c.l.b16 %v4299_v28  ;;  %v601_v53 = vunpack.c.l.b16 %v4329_v49 }
  0xd2   : > { %v481_v33 = vunpack.c.l.b16 %v4301_v29  ;;  %v529_v34 = vunpack.c.l.b16 %v4303_v30 }
  0xd3   : > { %v4308_v35 = vpack.c.b16 %v553_v32, %v553_v32  ;;  %v4344_v54 = vpack.c.b16 %v601_v53, %v601_v53 }
  0xd4   : > { %v4310_v36 = vpack.c.b16 %v481_v33, %v481_v33  ;;  %v4312_v37 = vpack.c.b16 %v529_v34, %v529_v34  ;;  %v439_v38 = vpop.f32.mrf.mxu2  ;;  %v444_v39 = vpop.f32.mrf.mxu3 }
  0xd5   : > { %v440_v41 = vadd.f32 %v3743_v14, %v439_v38  ;;  %v445_v42 = vadd.f32 %v3743_v14, %v444_v39 }
  0xd6   : > { %531 = vrot.lane.b32.xlu2 %v4312_v37, %s4101_s24  ;;  %555 = vrot.lane.b32.xlu1 %v4308_v35, %s4101_s24 }
  0xd7   : > { %v4320_v44 = vpack.c.bf16 %v440_v41, %v440_v41  ;;  %v4322_v45 = vpack.c.bf16 %v445_v42, %v445_v42  ;;  %483 = vrot.lane.b32.xlu0 %v4310_v36, %s4101_s24 }
  0xd9   : > { %v577_v47 = vunpack.c.l.b16 %v4320_v44  ;;  %v625_v48 = vunpack.c.l.b16 %v4322_v45 }
  0xdb   : > { %v4331_v50 = vpack.c.b16 %v577_v47, %v577_v47  ;;  %v4333_v51 = vpack.c.b16 %v625_v48, %v625_v48 }
  0xde   : > { %627 = vrot.lane.b32.xlu2 %v4333_v51, %s4101_s24  ;;  %579 = vrot.lane.b32.xlu1 %v4331_v50, %s4101_s24 }
  0xdf   : > { %458 = vrot.lane.b32.xlu0 %v4335_v52, %s4101_s24 }
  0xe6   : > { %969 = vrot.lane.b32.xlu2 %v4312_v37, %s4102_s25  ;;  %905 = vrot.lane.b32.xlu1 %v4335_v52, %s4102_s25 }
  0xe7   : > { %603 = vrot.lane.b32.xlu0 %v4344_v54, %s4101_s24  ;;  %s4115_s24 = smov 16  }
  0xee   : > { %927 = vrot.lane.b32.xlu2 %v4310_v36, %s4102_s25  ;;  %1032 = vrot.lane.b32.xlu1 %v4344_v54, %s4102_s25 }
  0xef   : > { %948 = vrot.lane.b32.xlu0 %v4295_v20, %s4102_s25 }
  0xf6   : > { %990 = vrot.lane.b32.xlu2 %v4308_v35, %s4102_s25  ;;  %1122 = vrot.lane.b32.xlu1 %v4295_v20, %s4103_s13 }
  0xf7   : > { %1145 = vrot.lane.b32.xlu0 %v4312_v37, %s4103_s13 }
  0xfe   : > { %1143 = vrot.lane.b32.xlu2 %v4312_v37, %s4104_s10  ;;  %1076 = vrot.lane.b32.xlu1 %v4335_v52, %s4103_s13 }
  0xff   : > { %1099 = vrot.lane.b32.xlu0 %v4310_v36, %s4103_s13 }
 0x106   : > { %1120 = vrot.lane.b32.xlu1 %v4295_v20, %s4104_s10 }
 0x107   : > { %1053 = vrot.lane.b32.xlu0 %v4333_v51, %s4102_s25 }
 0x10f   : > { %1011 = vrot.lane.b32.xlu0 %v4331_v50, %s4102_s25 }
 0x130   : > { %v532_v55 = vpop.permute.xlu2 %531 }
 0x131   : > { %v537_v8 = vsel %vm460_vm1, %v532_v55, 0 }
 0x138   : > { %v628_v56 = vpop.permute.xlu2 %627 }
 0x139   : > { %v633_v1 = vsel %vm460_vm1, %v628_v56, 0 }
 0x140   : > { %v970_v57 = vpop.permute.xlu2 %969  ;;  %v508_v58 = vpop.permute.xlu1 %507 }
 0x141   : > { %v513_v59 = vsel %vm460_vm1, %v508_v58, 0  ;;  %v975_v12 = vsel %vm910_vm2, %v970_v57, 0 }
 0x142   : > { %522 = vmatpush.bf16.xpose.msrb.mxu3 %v513_v59 }
 0x148   : > { %v556_v60 = vpop.permute.xlu1 %555  ;;  %v928_v61 = vpop.permute.xlu2 %927 }
 0x149   : > { %v561_v62 = vsel %vm460_vm1, %v556_v60, 0  ;;  %v484_v63 = vpop.permute.xlu0 %483  ;;  %3493 = vmatmul.msk.bf16.vlgmr.msrb.gmra.mxu3 %vm460_vm1, %v4292_v18  ;;  %v933_v19 = vsel %vm910_vm2, %v928_v61, 0 }
 0x14a   : > { %v489_v0 = vsel %vm460_vm1, %v484_v63, 0 }
 0x14b   : > { %498 = vmatpush.bf16.xpose.msrb.mxu2 %v489_v0 }
 0x150   : > { %v580_v2 = vpop.permute.xlu1 %579  ;;  %v991_v3 = vpop.permute.xlu2 %990 }
 0x151   : > { %v585_v4 = vsel %vm460_vm1, %v580_v2, 0  ;;  %v459_v5 = vpop.permute.xlu0 %458  ;;  %v996_v6 = vsel %vm910_vm2, %v991_v3, 0 }
 0x152   : > { %3492 = vmatmul.msk.bf16.vlgmr.msrb.gmra.mxu2 %vm460_vm1, %v4301_v29  ;;  %v465_v7 = vsel %vm460_vm1, %v459_v5, 0  ;;  %594 = vmatpush.bf16.xpose.msra.mxu3 %v585_v4 }
 0x153   : > { %570 = vmatpush.bf16.xpose.msra.mxu2 %v561_v62  ;;  %474 = vmatpush.bf16.xpose.msrb.mxu1 %v465_v7 }
 0x154   : > { %1005 = vmatpush.bf16.msrb.mxu0 %v996_v6 }
 0x158   : > { %v906_v9 = vpop.permute.xlu1 %905  ;;  %v4432_v5 = vpop.permute.xlu2 %1143 }
 0x159   : > { %v912_v10 = vsel %vm910_vm2, %v906_v9, 0  ;;  %v604_v11 = vpop.permute.xlu0 %603  ;;  %3496 = vmatmul.msk.bf16.vlgmr.msra.gmra.mxu3 %vm460_vm1, %v4320_v44 }
 0x15a   : > { %v609_v13 = vsel %vm460_vm1, %v604_v11, 0  ;;  %3491 = vmatmul.msk.bf16.vlgmr.msrb.gmra.mxu1 %vm460_vm1, %v4314_v40  ;;  %921 = vmatpush.bf16.msrb.mxu3 %v912_v10 }
 0x15b   : > { %642 = vmatpush.bf16.xpose.msrb.mxu2 %v633_v1  ;;  %546 = vmatpush.bf16.xpose.msra.mxu1 %v537_v8 }
 0x15e   : > { %984 = vmatpush.bf16.msra.mxu3 %v975_v12 }
 0x160   : > { %v1033_v14 = vpop.permute.xlu1 %1032 }
 0x161   : > { %v949_v15 = vpop.permute.xlu0 %948  ;;  %v1038_v21 = vsel %vm910_vm2, %v1033_v14, 0 }
 0x162   : > { %v954_v16 = vsel %vm910_vm2, %v949_v15, 0  ;;  %3495 = vmatmul.msk.bf16.vlgmr.msra.gmra.mxu2 %vm460_vm1, %v4299_v28 }
 0x163   : > { %618 = vmatpush.bf16.xpose.msrb.mxu1 %v609_v13  ;;  %963 = vmatpush.bf16.msra.mxu2 %v954_v16 }
 0x168   : > { %v4398_v17 = vpop.permute.xlu1 %1122 }
 0x169   : > { %v4400_v18 = vpop.permute.xlu0 %1145 }
 0x16a   : > { %3494 = vmatmul.msk.bf16.vlgmr.msra.gmra.mxu1 %vm460_vm1, %v4303_v30 }
 0x16b   : > { %942 = vmatpush.bf16.msra.mxu1 %v933_v19 }
 0x170   : > { %v1077_v22 = vpop.permute.xlu1 %1076 }
 0x171   : > { %v1082_v23 = vsel %vm460_vm1, %v1077_v22, 0  ;;  %v4407_v24 = vpop.permute.xlu0 %1099 }
 0x172   : > { %3498 = vmatmul.msk.bf16.vlgmr.msrb.gmra.mxu2 %vm460_vm1, %v4322_v45  ;;  %1091 = vmatpush.bf16.xpose.msra.mxu0 %v1082_v23 }
 0x173   : > { %1047 = vmatpush.bf16.msrb.mxu2 %v1038_v21 }
 0x178   : > { %v4438_v12 = vpop.permute.xlu1 %1120 }
 0x179   : > { %v4411_v25 = vpop.permute.xlu0 %1053 }
 0x17a   : > { %3497 = vmatmul.msk.bf16.vlgmr.msrb.gmra.mxu1 %vm460_vm1, %v4329_v49 }
 0x181   : > { %v1012_v26 = vpop.permute.xlu0 %1011 }
 0x182   : > { %v1017_v27 = vsel %vm910_vm2, %v1012_v26, 0 }
 0x183   : > { %1026 = vmatpush.bf16.msrb.mxu1 %v1017_v27 }
 0x1cc   : > { %v524_v28 = vpop.f32.mrf.mxu3 }
 0x1cd   : > { %v650_v29 = vmul.f32 0.35355338, %v524_v28 }
 0x1cf   : > { %v662_v30 = vsel %vm460_vm1, %v650_v29, -inf }
 0x1d0   : > { %663 = vmax.xlane.f32.xlu0 %v662_v30 }
 0x1d4   : > { %v526_v31 = vpop.f32.mrf.mxu3 }
 0x1d5   : > { %v500_v32 = vpop.f32.mrf.mxu2 }
 0x1d6   : > { %v649_v41 = vmul.f32 0.35355338, %v500_v32 }
 0x1d7   : > { %v476_v33 = vpop.f32.mrf.mxu1 }
 0x1d8   : > { %v648_v34 = vmul.f32 0.35355338, %v476_v33  ;;  %v659_v43 = vsel %vm460_vm1, %v649_v41, -inf }
 0x1da   : > { %v656_v38 = vsel %vm460_vm1, %v648_v34, -inf }
 0x1db   : > { %657 = vmax.xlane.f32.xlu2 %v656_v38 }
 0x1dc   : > { %v596_v39 = vpop.f32.mrf.mxu3 }
 0x1dd   : > { %v502_v40 = vpop.f32.mrf.mxu2  ;;  %v653_v46 = vmul.f32 0.35355338, %v596_v39 }
 0x1df   : > { %v478_v42 = vpop.f32.mrf.mxu1  ;;  %v671_v49 = vsel %vm460_vm1, %v653_v46, -inf }
 0x1e3   : > { %660 = vmax.xlane.f32.xlu2 %v659_v43 }
 0x1e4   : > { %v598_v44 = vpop.f32.mrf.mxu3 }
 0x1e5   : > { %v572_v45 = vpop.f32.mrf.mxu2 }
 0x1e6   : > { %v4421_v56 = vmul.f32 0.35355338, %v572_v45 }
 0x1e7   : > { %v548_v47 = vpop.f32.mrf.mxu1 }
 0x1e8   : > { %v651_v48 = vmul.f32 0.35355338, %v548_v47  ;;  %v668_v58 = vsel %vm460_vm1, %v4421_v56, -inf }
 0x1ea   : > { %v665_v53 = vsel %vm460_vm1, %v651_v48, -inf }
 0x1eb   : > { %672 = vmax.xlane.f32.xlu2 %v671_v49  ;;  %666 = vmax.xlane.f32.xlu1 %v665_v53 }
 0x1ed   : > { %v574_v55 = vpop.f32.mrf.mxu2 }
 0x1ef   : > { %v550_v57 = vpop.f32.mrf.mxu1 }
 0x1f3   : > { %669 = vmax.xlane.f32.xlu1 %v668_v58 }
 0x1f5   : > { %v644_v59 = vpop.f32.mrf.mxu2 }
 0x1f6   : > { %v4425_v60 = vmul.f32 0.35355338, %v644_v59 }
 0x1f7   : > { %v620_v61 = vpop.f32.mrf.mxu1 }
 0x1f8   : > { %v654_v62 = vmul.f32 0.35355338, %v620_v61  ;;  %v677_v63 = vsel %vm460_vm1, %v4425_v60, -inf }
 0x1f9   : > { %678 = vmax.xlane.f32.xlu0 %v677_v63 }
 0x1fa   : > { %v674_v0 = vsel %vm460_vm1, %v654_v62, -inf }
 0x1fb   : > { %675 = vmax.xlane.f32.xlu2 %v674_v0 }
 0x1fd   : > { %v646_v1 = vpop.f32.mrf.mxu2 }
 0x1ff   : > { %v622_v2 = vpop.f32.mrf.mxu1 }
 0x20c   : > { %1097 = vrot.lane.b32.xlu1 %v4310_v36, %s4104_s10 }
 0x243   : > { %v664_v3 = vpop.xlane.xlu0 %663 }
 0x244   : > { %v682_v4 = vsub.f32 %v650_v29, %v664_v3 }
 0x246   : > { %v692_v6 = vmul.f32 1.442695, %v682_v4 }
 0x248   : > { %3747 = vpow2.f32 %v692_v6 }
 0x24e   : > { %v4434_v7 = vpop.eup %3747  ;;  %v658_v8 = vpop.xlane.xlu2 %657 }
 0x24f   : > { %v680_v9 = vsub.f32 %v648_v34, %v658_v8  ;;  %v710_v10 = vsel %vm460_vm1, %v4434_v7, 0.0 }
 0x250   : > { %711 = vadd.xlane.f32.xlu2 %v710_v10 }
 0x251   : > { %v688_v11 = vmul.f32 1.442695, %v680_v9 }
 0x253   : > { %3749 = vpow2.f32 %v688_v11  ;;  %v4106_v11 = vmov 1983009808  }
 0x256   : > { %v661_v13 = vpop.xlane.xlu2 %660 }
 0x257   : > { %v681_v14 = vsub.f32 %v649_v41, %v661_v13  ;;  %v750_v13 = vunpack.c.l.s4 %v4106_v11 }
 0x259   : > { %v4440_v15 = vpop.eup %3749  ;;  %v690_v16 = vmul.f32 1.442695, %v681_v14 }
 0x25a   : > { %v704_v19 = vsel %vm460_vm1, %v4440_v15, 0.0 }
 0x25b   : > { %3751 = vpow2.f32 %v690_v16  ;;  %705 = vadd.xlane.f32.xlu0 %v704_v19  ;;  %v1105_v16 = vsel %vm460_vm1, %v4407_v24, 0  ;;  %v4518_v19 = vunpack.c.0.s8 %v750_v13 }
 0x25e   : > { %v673_v21 = vpop.xlane.xlu2 %672  ;;  %v667_v22 = vpop.xlane.xlu1 %666 }
 0x25f   : > { %v685_v23 = vsub.f32 %v653_v46, %v673_v21  ;;  %v683_v26 = vsub.f32 %v651_v48, %v667_v22 }
 0x261   : > { %v4444_v27 = vpop.eup %3751  ;;  %v698_v28 = vmul.f32 1.442695, %v685_v23  ;;  %v694_v29 = vmul.f32 1.442695, %v683_v26 }
 0x262   : > { %v707_v30 = vsel %vm460_vm1, %v4444_v27, 0.0 }
 0x263   : > { %3753 = vpow2.f32 %v698_v28  ;;  %708 = vadd.xlane.f32.xlu2 %v707_v30 }
 0x264   : > { %3755 = vpow2.f32 %v694_v29 }
 0x266   : > { %v670_v43 = vpop.xlane.xlu1 %669 }
 0x267   : > { %v684_v44 = vsub.f32 %v4421_v56, %v670_v43 }
 0x269   : > { %v4448_v31 = vpop.eup %3753  ;;  %v696_v46 = vmul.f32 1.442695, %v684_v44 }
 0x26a   : > { %v4450_v32 = vpop.eup %3755  ;;  %v719_v33 = vsel %vm460_vm1, %v4448_v31, 0.0 }
 0x26b   : > { %720 = vadd.xlane.f32.xlu1 %v719_v33  ;;  %v713_v34 = vsel %vm460_vm1, %v4450_v32, 0.0 }
 0x26c   : > { %714 = vadd.xlane.f32.xlu0 %v713_v34  ;;  %v679_v45 = vpop.xlane.xlu0 %678 }
 0x26d   : > { %v687_v47 = vsub.f32 %v4425_v60, %v679_v45 }
 0x26e   : > { %v676_v38 = vpop.xlane.xlu2 %675 }
 0x26f   : > { %v686_v39 = vsub.f32 %v654_v62, %v676_v38  ;;  %v702_v48 = vmul.f32 1.442695, %v687_v47  ;;  %v1128_v62 = vsel %vm460_vm1, %v4398_v17, 0  ;;  %v1151_v38 = vsel %vm460_vm1, %v4400_v18, 0 }
 0x271   : > { %v700_v40 = vmul.f32 1.442695, %v686_v39 }
 0x273   : > { %3757 = vpow2.f32 %v700_v40 }
 0x274   : > { %3759 = vpow2.f32 %v696_v46 }
 0x275   : > { %3761 = vpow2.f32 %v702_v48 }
 0x279   : > { %v4456_v41 = vpop.eup %3757 }
 0x27a   : > { %v722_v42 = vsel %vm460_vm1, %v4456_v41, 0.0  ;;  %v4470_v49 = vpop.eup %3759 }
 0x27b   : > { %723 = vadd.xlane.f32.xlu1 %v722_v42  ;;  %1214 = vrot.lane.b32.xlu2 %v4344_v54, %s4103_s13  ;;  %v716_v53 = vsel %vm460_vm1, %v4470_v49, 0.0  ;;  %v4476_v55 = vpop.eup %3761 }
 0x27c   : > { %v725_v56 = vsel %vm460_vm1, %v4476_v55, 0.0 }
 0x27e   : > { %v1098_v3 = vpop.permute.xlu1 %1097 }
 0x280   : > { %1074 = vrot.lane.b32.xlu0 %v4335_v52, %s4104_s10 }
 0x294   : > { %1168 = vrot.lane.b32.xlu1 %v4308_v35, %s4103_s13 }
 0x29c   : > { %1235 = vrot.lane.b32.xlu1 %v4333_v51, %s4104_s10 }
 0x2a4   : > { %1551 = vrot.lane.b32.xlu1 %v4295_v20, %s4105_s20  ;;  %717 = vadd.xlane.f32.xlu2 %v716_v53 }
 0x2aa   : > { %726 = vadd.xlane.f32.xlu0 %v725_v56 }
 0x2ac   : > { %1530 = vrot.lane.b32.xlu1 %v4310_v36, %s4105_s20 }
 0x2b4   : > { %1656 = vrot.lane.b32.xlu1 %v4333_v51, %s4105_s20 }
 0x2bc   : > { %1191 = vrot.lane.b32.xlu2 %v4331_v50, %s4103_s13 }
 0x2be   : > { %1237 = vrot.lane.b32.xlu0 %v4333_v51, %s4103_s13  ;;  %s4116_s13 = smov 24  }
 0x2c3   : > { %v712_v57 = vpop.xlane.xlu2 %711 }
 0x2c4   : > { %1166 = vrot.lane.b32.xlu2 %v4308_v35, %s4104_s10  ;;  %3763 = vrcp.f32 %v712_v57 }
 0x2c6   : > { %1212 = vrot.lane.b32.xlu0 %v4344_v54, %s4104_s10 }
 0x2ca   : > { %v3764_v58 = vpop.eup %3763 }
 0x2cb   : > { %v738_v59 = vmul.f32 %v3764_v58, %v4434_v7  ;;  %v1059_v7 = vsel %vm910_vm2, %v4411_v25, 0 }
 0x2cc   : > { %1572 = vrot.lane.b32.xlu2 %v4312_v37, %s4105_s20 }
 0x2cd   : > { %v899_v60 = vpack.c.bf16 %v738_v59, %v738_v59  ;;  %v744_v0 = vrot.slane %v738_v59, 4 }
 0x2ce   : > { %1189 = vrot.lane.b32.xlu0 %v4331_v50, %s4104_s10  ;;  %v706_v61 = vpop.xlane.xlu0 %705  ;;  %s4117_s10 = smov 32  }
 0x2cf   : > { %3765 = vrcp.f32 %v706_v61  ;;  %3501 = vmatmul.msk.bf16.vlgmr.msra.gmra.mxu2 %vm460_vm1, %v899_v60 }
 0x2d0   : > { %1137 = vmatpush.bf16.xpose.msra.mxu2 %v1128_v62 }
 0x2d4   : > { %1635 = vrot.lane.b32.xlu2 %v4344_v54, %s4105_s20 }
 0x2d5   : > { %v3766_v63 = vpop.eup %3765 }
 0x2d6   : > { %v736_v1 = vmul.f32 %v3766_v63, %v4440_v15  ;;  %1509 = vrot.lane.b32.xlu0 %v4335_v52, %s4105_s20  ;;  %v709_v2 = vpop.xlane.xlu2 %708 }
 0x2d7   : > { %3767 = vrcp.f32 %v709_v2 }
 0x2d8   : > { %v746_v17 = vsel %vm745_vm3, %v744_v0, %v736_v1  ;;  %v747_v4 = vrot.slane %v736_v1, 4  ;;  %v897_v6 = vpack.c.bf16 %v736_v1, %v736_v1 }
 0x2d9   : > { %v752_v23 = vperm.slane %v746_v17, %v4518_v19 }
 0x2da   : > { %3499 = vmatmul.msk.bf16.vlgmr.msrb.gmra.mxu3 %vm460_vm1, %v897_v6  ;;  %v748_v8 = vsel %vm745_vm3, %v738_v59, %v747_v4 }
 0x2db   : > { %1068 = vmatpush.bf16.msrb.mxu3 %v1059_v7  ;;  %v756_v22 = vperm.slane %v748_v8, %v4518_v19  ;;  %v795_v40 = vrot.slane %v752_v23, 4  ;;  %v4108_v7 = vmov 1934713408  }
 0x2dc   : > { %1614 = vrot.lane.b32.xlu2 %v4331_v50, %s4105_s20 }
 0x2dd   : > { %v3768_v9 = vpop.eup %3767  ;;  %v807_v34 = vrot.slane %v756_v22, 4 }
 0x2de   : > { %v737_v10 = vmul.f32 %v3768_v9, %v4444_v27  ;;  %1593 = vrot.lane.b32.xlu0 %v4308_v35, %s4105_s20  ;;  %v721_v15 = vpop.xlane.xlu1 %720  ;;  %v1215_v57 = vpop.permute.xlu2 %1214 }
 0x2df   : > { %v715_v14 = vpop.xlane.xlu0 %714  ;;  %v1220_v59 = vsel %vm460_vm1, %v1215_v57, 0 }
 0x2e0   : > { %3769 = vrcp.f32 %v715_v14  ;;  %v898_v25 = vpack.c.bf16 %v737_v10, %v737_v10  ;;  %v759_v26 = vrot.slane %v737_v10, 4 }
 0x2e1   : > { %3771 = vrcp.f32 %v721_v15 }
 0x2e2   : > { %3500 = vmatmul.msk.bf16.vlgmr.msra.gmra.mxu1 %vm460_vm1, %v898_v25 }
 0x2e3   : > { %1114 = vmatpush.bf16.xpose.msra.mxu1 %v1105_v16 }
 0x2e4   : > { %1679 = vrot.lane.b32.xlu2 %v4335_v52, %s4107_s21 }
 0x2e6   : > { %v3770_v21 = vpop.eup %3769  ;;  %1725 = vrot.lane.b32.xlu0 %v4295_v20, %s4107_s21 }
 0x2e7   : > { %v739_v24 = vmul.f32 %v3770_v21, %v4450_v32  ;;  %v3772_v27 = vpop.eup %3771 }
 0x2e8   : > { %v4534_v42 = vmul.f32 %v3772_v27, %v4448_v31 }
 0x2e9   : > { %v757_v28 = vrot.slane %v739_v24, 4  ;;  %v760_v29 = vsel %vm745_vm3, %v739_v24, %v759_v26  ;;  %v900_v30 = vpack.c.bf16 %v739_v24, %v739_v24 }
 0x2ea   : > { %v768_v33 = vperm.slane %v760_v29, %v4518_v19  ;;  %v902_v48 = vpack.c.bf16 %v4534_v42, %v4534_v42  ;;  %v783_v21 = vrot.slane %v4534_v42, 4 }
 0x2eb   : > { %v758_v39 = vsel %vm745_vm3, %v757_v28, %v737_v10  ;;  %3502 = vmatmul.msk.bf16.vlgmr.msra.gmra.mxu3 %vm460_vm1, %v900_v30 }
 0x2ec   : > { %1160 = vmatpush.bf16.xpose.msra.mxu3 %v1151_v38  ;;  %v764_v32 = vperm.slane %v758_v39, %v4518_v19  ;;  %v805_v43 = vrot.slane %v768_v33, 4  ;;  %v808_v44 = vsel %vm745_vm3, %v768_v33, %v807_v34 }
 0x2ee   : > { %v724_v45 = vpop.xlane.xlu1 %723  ;;  %v793_v46 = vrot.slane %v764_v32, 4  ;;  %v806_v47 = vsel %vm745_vm3, %v805_v43, %v756_v22  ;;  %v796_v18 = vsel %vm745_vm3, %v764_v32, %v795_v40 }
 0x2ef   : > { %3773 = vrcp.f32 %v724_v45 }
 0x2f0   : > { %v794_v53 = vsel %vm745_vm3, %v793_v46, %v752_v23 }
 0x2f2   : > { %3504 = vmatmul.msk.bf16.vlgmr.msrb.gmra.mxu1 %vm460_vm1, %v902_v48  ;;  %v4552_v62 = vpop.permute.xlu0 %1074 }
 0x2f5   : > { %v3774_v31 = vpop.eup %3773 }
 0x2f6   : > { %v742_v56 = vmul.f32 %v3774_v31, %v4456_v41 }
 0x2f8   : > { %v903_v58 = vpack.c.bf16 %v742_v56, %v742_v56  ;;  %v769_v4 = vrot.slane %v742_v56, 4 }
 0x2fa   : > { %3505 = vmatmul.msk.bf16.vlgmr.msrb.gmra.mxu2 %vm460_vm1, %v903_v58 }
 0x2fb   : > { %1229 = vmatpush.bf16.xpose.msrb.mxu2 %v1220_v59 }
 0x302   : > { %3508 = vmatmul.msk.bf16.vlgmr.msra.gmra.mxu1 %vm460_vm1, %v1098_v3 }
 0x306   : > { %v1169_v60 = vpop.permute.xlu1 %1168 }
 0x307   : > { %v1174_v14 = vsel %vm460_vm1, %v1169_v60, 0 }
 0x30a   : > { %3509 = vmatmul.msk.bf16.vlgmr.msra.gmra.mxu2 %vm460_vm1, %v4438_v12  ;;  %v798_v12 = vunpack.c.l.s4 %v4108_v7 }
 0x30c   : > { %v4561_v15 = vunpack.c.0.s8 %v798_v12 }
 0x30e   : > { %v4550_v61 = vpop.permute.xlu1 %1235  ;;  %v816_v30 = vperm.slane %v808_v44, %v4561_v15  ;;  %v812_v34 = vperm.slane %v806_v47, %v4561_v15  ;;  %v804_v39 = vperm.slane %v796_v18, %v4561_v15 }
 0x310   : > { %v855_v46 = vrot.slane %v816_v30, 4  ;;  %v851_v31 = vrot.slane %v812_v34, 4  ;;  %v847_v60 = vrot.slane %v804_v39, 4 }
 0x316   : > { %v1552_v63 = vpop.permute.xlu1 %1551 }
 0x317   : > { %v1557_v41 = vsel %vm910_vm2, %v1552_v63, 0  ;;  %v718_v0 = vpop.xlane.xlu2 %717 }
 0x318   : > { %3775 = vrcp.f32 %v718_v0  ;;  %1566 = vmatpush.bf16.msra.mxu2 %v1557_v41 }
 0x31d   : > { %v727_v1 = vpop.xlane.xlu0 %726 }
 0x31e   : > { %v3776_v2 = vpop.eup %3775  ;;  %3777 = vrcp.f32 %v727_v1  ;;  %v1531_v17 = vpop.permute.xlu1 %1530 }
 0x31f   : > { %v740_v3 = vmul.f32 %v3776_v2, %v4470_v49  ;;  %v1192_v6 = vpop.permute.xlu2 %1191  ;;  %v1536_v11 = vsel %vm910_vm2, %v1531_v17, 0 }
 0x320   : > { %v1197_v8 = vsel %vm460_vm1, %v1192_v6, 0 }
 0x321   : > { %v770_v9 = vsel %vm745_vm3, %v769_v4, %v740_v3  ;;  %v771_v10 = vrot.slane %v740_v3, 4  ;;  %1206 = vmatpush.bf16.xpose.msrb.mxu1 %v1197_v8  ;;  %v901_v13 = vpack.c.bf16 %v740_v3, %v740_v3 }
 0x322   : > { %v776_v23 = vperm.slane %v770_v9, %v4518_v19 }
 0x323   : > { %3503 = vmatmul.msk.bf16.vlgmr.msrb.gmra.mxu0 %vm460_vm1, %v901_v13  ;;  %v772_v49 = vsel %vm745_vm3, %v742_v56, %v771_v10 }
 0x324   : > { %v3778_v25 = vpop.eup %3777  ;;  %1183 = vmatpush.bf16.xpose.msrb.mxu0 %v1174_v14  ;;  %v780_v16 = vperm.slane %v772_v49, %v4518_v19  ;;  %v819_v43 = vrot.slane %v776_v23, 4 }
 0x325   : > { %v743_v22 = vmul.f32 %v3778_v25, %v4476_v55  ;;  %v800_v55 = vperm.slane %v794_v53, %v4561_v15 }
 0x326   : > { %v831_v26 = vrot.slane %v780_v16, 4 }
 0x327   : > { %v781_v24 = vrot.slane %v743_v22, 4  ;;  %v784_v27 = vsel %vm745_vm3, %v743_v22, %v783_v21  ;;  %v1167_v28 = vpop.permute.xlu2 %1166  ;;  %v904_v29 = vpack.c.bf16 %v743_v22, %v743_v22  ;;  %v843_v59 = vrot.slane %v800_v55, 4  ;;  %v1657_v21 = vpop.permute.xlu1 %1656 }
 0x328   : > { %v792_v33 = vperm.slane %v784_v27, %v4518_v19 }
 0x329   : > { %1545 = vmatpush.bf16.msra.mxu1 %v1536_v11  ;;  %3506 = vmatmul.msk.bf16.vlgmr.msrb.gmra.mxu3 %vm460_vm1, %v904_v29  ;;  %v782_v38 = vsel %vm745_vm3, %v781_v24, %v4534_v42 }
 0x32a   : > { %v788_v40 = vperm.slane %v782_v38, %v4518_v19  ;;  %v829_v32 = vrot.slane %v792_v33, 4  ;;  %v832_v45 = vsel %vm745_vm3, %v792_v33, %v831_v26 }
 0x32b   : > { %v840_v44 = vperm.slane %v832_v45, %v4561_v15 }
 0x32c   : > { %v817_v48 = vrot.slane %v788_v40, 4  ;;  %v830_v47 = vsel %vm745_vm3, %v829_v32, %v780_v16  ;;  %v820_v56 = vsel %vm745_vm3, %v788_v40, %v819_v43 }
 0x32d   : > { %v836_v42 = vperm.slane %v830_v47, %v4561_v15  ;;  %v828_v53 = vperm.slane %v820_v56, %v4561_v15  ;;  %v4585_v18 = vsel %vm745_vm3, %v840_v44, %v855_v46  ;;  %v853_v57 = vrot.slane %v840_v44, 4 }
 0x32e   : > { %5656 = vst [vmem:[#allocation15_spill] sm:$0xff] %v4585_v18  ;;  %v818_v58 = vsel %vm745_vm3, %v817_v48, %v776_v23  ;;  %v1662_v23 = vsel %vm910_vm2, %v1657_v21, 0 }
 0x32f   : > { %v1573_v63 = vpop.permute.xlu2 %1572  ;;  %v824_v41 = vperm.slane %v818_v58, %v4561_v15  ;;  %v849_v0 = vrot.slane %v836_v42, 4  ;;  %v4590_v1 = vsel %vm745_vm3, %v836_v42, %v851_v31  ;;  %v845_v2 = vrot.slane %v828_v53, 4 }
 0x330   : > { %v1238_v17 = vpop.permute.xlu0 %1237  ;;  %v4593_v4 = vsel %vm745_vm3, %v828_v53, %v847_v60  ;;  %v4596_v3 = vsel %vm745_vm3, %v853_v57, %v816_v30  ;;  %v1578_v49 = vsel %vm910_vm2, %v1573_v63, 0 }
 0x331   : > { %5657 = vst [vmem:[#allocation16_spill] sm:$0xff] %v4593_v4  ;;  %v1243_v6 = vsel %vm460_vm1, %v1238_v17, 0  ;;  %v4600_v7 = vsel %vm745_vm3, %v824_v41, %v843_v59  ;;  %v4603_v12 = vsel %vm745_vm3, %v849_v0, %v812_v34  ;;  %v841_v8 = vrot.slane %v824_v41, 4 }
 0x332   : > { %5658 = vst [vmem:[#allocation17_spill] sm:$0xff] %v4596_v3  ;;  %1252 = vmatpush.bf16.xpose.msrb.mxu3 %v1243_v6  ;;  %v4606_v9 = vsel %vm745_vm3, %v845_v2, %v804_v39 }
 0x333   : > { %5659 = vst [vmem:[#allocation18_spill] sm:$0xff] %v4606_v9  ;;  %3507 = vmatmul.msk.bf16.vlgmr.msra.gmra.mxu0 %vm460_vm1, %v4552_v62  ;;  %v4611_v10 = vsel %vm745_vm3, %v841_v8, %v800_v55 }
 0x337   : > { %v1636_v11 = vpop.permute.xlu2 %1635 }
 0x338   : > { %v1641_v13 = vsel %vm910_vm2, %v1636_v11, 0  ;;  %v1213_v14 = vpop.permute.xlu0 %1212 }
 0x339   : > { %3510 = vmatmul.msk.bf16.vlgmr.msra.gmra.mxu3 %vm460_vm1, %v4432_v5  ;;  %3513 = vmatmul.msk.bf16.vlgmr.msrb.gmra.mxu2 %vm460_vm1, %v1213_v14 }
 0x33a   : > { %1587 = vmatpush.bf16.msra.mxu3 %v1578_v49  ;;  %1650 = vmatpush.bf16.msrb.mxu2 %v1641_v13 }
 0x33f   : > { %v1615_v25 = vpop.permute.xlu2 %1614 }
 0x340   : > { %v1620_v16 = vsel %vm910_vm2, %v1615_v25, 0  ;;  %v1190_v62 = vpop.permute.xlu0 %1189 }
 0x341   : > { %3512 = vmatmul.msk.bf16.vlgmr.msrb.gmra.mxu1 %vm460_vm1, %v1190_v62 }
 0x342   : > { %1629 = vmatpush.bf16.msrb.mxu1 %v1620_v16 }
 0x343   : > { %3511 = vmatmul.msk.bf16.vlgmr.msrb.gmra.mxu0 %vm460_vm1, %v1167_v28 }
 0x348   : > { %v1510_v22 = vpop.permute.xlu0 %1509 }
 0x349   : > { %v1515_v26 = vsel %vm910_vm2, %v1510_v22, 0  ;;  %3514 = vmatmul.msk.bf16.vlgmr.msrb.gmra.mxu3 %vm460_vm1, %v4550_v61 }
 0x34a   : > { %1671 = vmatpush.bf16.msrb.mxu3 %v1662_v23  ;;  %1524 = vmatpush.bf16.msra.mxu0 %v1515_v26 }
 0x350   : > { %v1594_v5 = vpop.permute.xlu0 %1593 }
 0x351   : > { %v1599_v24 = vsel %vm910_vm2, %v1594_v5, 0 }
 0x352   : > { %1608 = vmatpush.bf16.msrb.mxu0 %v1599_v24  ;;  %v4626_v27 = vpop.f32.mrf.mxu2 }
 0x353   : > { %5660 = vst [vmem:[#allocation19_spill] sm:$0xff] %v4626_v27 }
 0x35a   : > { %v967_v29 = vpop.f32.mrf.mxu2 }
 0x35d   : > { %v4628_v30 = vpop.f32.mrf.mxu3 }
 0x35f   : > { %v4630_v28 = vpop.f32.mrf.mxu1 }
 0x365   : > { %v925_v33 = vpop.f32.mrf.mxu3 }
 0x367   : > { %v946_v34 = vpop.f32.mrf.mxu1 }
 0x36e   : > { %v4632_v38 = vpop.f32.mrf.mxu3 }
 0x36f   : > { %v4634_v55 = vpop.f32.mrf.mxu1 }
 0x370   : > { %5661 = vst [vmem:[#allocation20_spill] sm:$0xff] %v4634_v55 }
 0x376   : > { %v988_v61 = vpop.f32.mrf.mxu3 }
 0x377   : > { %v1030_v39 = vpop.f32.mrf.mxu1 }
 0x37d   : > { %v4636_v40 = vpop.f32.mrf.mxu2 }
 0x37e   : > { %5662 = vst [vmem:[#allocation21_spill] sm:$0xff] %v4636_v40 }
 0x37f   : > { %v1116_v32 = vpop.f32.mrf.mxu1 }
 0x380   : > { %v1259_v43 = vmul.f32 0.35355338, %v1116_v32 }
 0x382   : > { %v1269_v45 = vsel %vm460_vm1, %v1259_v43, -inf }
 0x383   : > { %1270 = vmax.xlane.f32.xlu1 %v1269_v45 }
 0x385   : > { %v1051_v44 = vpop.f32.mrf.mxu2 }
 0x387   : > { %v1118_v46 = vpop.f32.mrf.mxu1 }
 0x38d   : > { %v1139_v48 = vpop.f32.mrf.mxu2 }
 0x38e   : > { %v1260_v47 = vmul.f32 0.35355338, %v1139_v48 }
 0x390   : > { %v1272_v31 = vsel %vm460_vm1, %v1260_v47, -inf }
 0x391   : > { %1273 = vmax.xlane.f32.xlu1 %v1272_v31 }
 0x395   : > { %v1141_v56 = vpop.f32.mrf.mxu2 }
 0x3a0   : > { %v4640_v42 = vpop.f32.mrf.mxu0 }
 0x3a1   : > { %5663 = vst [vmem:[#allocation22_spill] sm:$0xff] %v4640_v42 }
 0x3a8   : > { %v1009_v53 = vpop.f32.mrf.mxu0 }
 0x3a9   : > { %v4665_v53 = vpop.permute.xlu0 %1725 }
 0x3ac   : > { %v4642_v57 = vpop.f32.mrf.mxu3 }
 0x3ad   : > { %5664 = vst [vmem:[#allocation23_spill] sm:$0xff] %v4642_v57 }
 0x3b0   : > { %v1093_v58 = vpop.f32.mrf.mxu0 }
 0x3b1   : > { %v1258_v59 = vmul.f32 0.35355338, %v1093_v58 }
 0x3b3   : > { %v1266_v60 = vsel %vm460_vm1, %v1258_v59, -inf }
 0x3b4   : > { %v1072_v63 = vpop.f32.mrf.mxu3  ;;  %1267 = vmax.xlane.f32.xlu0 %v1266_v60 }
 0x3b5   : > { %v4667_v63 = vpop.permute.xlu2 %1679 }
 0x3b8   : > { %v1095_v41 = vpop.f32.mrf.mxu0 }
 0x3bc   : > { %v1162_v0 = vpop.f32.mrf.mxu3  ;;  %v1231_v2 = vpop.f32.mrf.mxu2 }
 0x3bd   : > { %v1261_v16 = vmul.f32 0.35355338, %v1162_v0  ;;  %v4650_v26 = vmul.f32 0.35355338, %v1231_v2 }
 0x3be   : > { %v1208_v17 = vpop.f32.mrf.mxu1 }
 0x3bf   : > { %v1263_v6 = vmul.f32 0.35355338, %v1208_v17  ;;  %v1275_v22 = vsel %vm460_vm1, %v1261_v16, -inf  ;;  %v1284_v5 = vsel %vm460_vm1, %v4650_v26, -inf }
 0x3c0   : > { %v1185_v8 = vpop.f32.mrf.mxu0 }
 0x3c1   : > { %v1262_v11 = vmul.f32 0.35355338, %v1185_v8  ;;  %v1281_v13 = vsel %vm460_vm1, %v1263_v6, -inf }
 0x3c2   : > { %1282 = vmax.xlane.f32.xlu2 %v1281_v13 }
 0x3c3   : > { %v1278_v14 = vsel %vm460_vm1, %v1262_v11, -inf }
 0x3c4   : > { %v1164_v49 = vpop.f32.mrf.mxu3  ;;  %v1233_v25 = vpop.f32.mrf.mxu2  ;;  %1279 = vmax.xlane.f32.xlu1 %v1278_v14 }
 0x3c6   : > { %v1210_v62 = vpop.f32.mrf.mxu1 }
 0x3c8   : > { %1702 = vrot.lane.b32.xlu0 %v4310_v36, %s4107_s21  ;;  %v1187_v21 = vpop.f32.mrf.mxu0 }
 0x3ca   : > { %1276 = vmax.xlane.f32.xlu2 %v1275_v22 }
 0x3cc   : > { %v1254_v23 = vpop.f32.mrf.mxu3 }
 0x3cd   : > { %v1265_v29 = vmul.f32 0.35355338, %v1254_v23 }
 0x3cf   : > { %v1287_v33 = vsel %vm460_vm1, %v1265_v29, -inf }
 0x3d2   : > { %1285 = vmax.xlane.f32.xlu2 %v1284_v5 }
 0x3d4   : > { %v1256_v24 = vpop.f32.mrf.mxu3 }
 0x3dd   : > { %1748 = vrot.lane.b32.xlu1 %v4312_v37, %s4107_s21 }
 0x3f2   : > { %1288 = vmax.xlane.f32.xlu0 %v1287_v33 }
 0x3f6   : > { %v1271_v34 = vpop.xlane.xlu1 %1270 }
 0x3f7   : > { %v1291_v61 = vsub.f32 %v1259_v43, %v1271_v34 }
 0x3f9   : > { %v1300_v39 = vmul.f32 1.442695, %v1291_v61 }
 0x3fb   : > { %3779 = vpow2.f32 %v1300_v39 }
 0x401   : > { %v4657_v32 = vpop.eup %3779 }
 0x402   : > { %v1317_v45 = vsel %vm460_vm1, %v4657_v32, 0.0 }
 0x403   : > { %1318 = vadd.xlane.f32.xlu0 %v1317_v45 }
 0x404   : > { %v1274_v44 = vpop.xlane.xlu1 %1273 }
 0x405   : > { %v1292_v46 = vsub.f32 %v1260_v47, %v1274_v44 }
 0x407   : > { %v1302_v48 = vmul.f32 1.442695, %v1292_v46 }
 0x409   : > { %3781 = vpow2.f32 %v1302_v48 }
 0x40f   : > { %v4661_v31 = vpop.eup %3781 }
 0x410   : > { %v1320_v56 = vsel %vm460_vm1, %v4661_v31, 0.0 }
 0x411   : > { %1321 = vadd.xlane.f32.xlu0 %v1320_v56 }
 0x427   : > { %v1268_v43 = vpop.xlane.xlu0 %1267 }
 0x428   : > { %v1290_v58 = vsub.f32 %v1258_v59, %v1268_v43 }
 0x42a   : > { %v1298_v60 = vmul.f32 1.442695, %v1290_v58 }
 0x42c   : > { %3783 = vpow2.f32 %v1298_v60 }
 0x432   : > { %v4669_v41 = vpop.eup %3783 }
 0x433   : > { %v1314_v47 = vsel %vm460_vm1, %v4669_v41, 0.0 }
 0x434   : > { %1315 = vadd.xlane.f32.xlu2 %v1314_v47 }
 0x435   : > { %v1283_v0 = vpop.xlane.xlu2 %1282 }
 0x436   : > { %v1295_v2 = vsub.f32 %v1263_v6, %v1283_v0 }
 0x437   : > { %v1280_v17 = vpop.xlane.xlu1 %1279 }
 0x438   : > { %v1308_v8 = vmul.f32 1.442695, %v1295_v2  ;;  %v1294_v13 = vsub.f32 %v1262_v11, %v1280_v17  ;;  %v1731_v2 = vsel %vm460_vm1, %v4665_v53, 0 }
 0x43a   : > { %3785 = vpow2.f32 %v1308_v8  ;;  %v1306_v14 = vmul.f32 1.442695, %v1294_v13 }
 0x43c   : > { %3787 = vpow2.f32 %v1306_v14 }
 0x43d   : > { %v1277_v49 = vpop.xlane.xlu2 %1276 }
 0x43e   : > { %v1293_v59 = vsub.f32 %v1261_v16, %v1277_v49  ;;  %v1703_v16 = vpop.permute.xlu0 %1702 }
 0x43f   : > { %v1708_v56 = vsel %vm460_vm1, %v1703_v16, 0 }
 0x440   : > { %v4673_v25 = vpop.eup %3785  ;;  %v1304_v62 = vmul.f32 1.442695, %v1293_v59 }
 0x441   : > { %v1329_v21 = vsel %vm460_vm1, %v4673_v25, 0.0 }
 0x442   : > { %v4677_v22 = vpop.eup %3787  ;;  %3789 = vpow2.f32 %v1304_v62  ;;  %1330 = vadd.xlane.f32.xlu0 %v1329_v21  ;;  %v1685_v62 = vsel %vm460_vm1, %v4667_v63, 0 }
 0x443   : > { %v1326_v6 = vsel %vm460_vm1, %v4677_v22, 0.0 }
 0x444   : > { %1327 = vadd.xlane.f32.xlu1 %v1326_v6 }
 0x445   : > { %v1286_v34 = vpop.xlane.xlu2 %1285 }
 0x446   : > { %v1296_v61 = vsub.f32 %v4650_v26, %v1286_v34 }
 0x448   : > { %v4681_v11 = vpop.eup %3789  ;;  %v1310_v44 = vmul.f32 1.442695, %v1296_v61 }
 0x449   : > { %v1323_v23 = vsel %vm460_vm1, %v4681_v11, 0.0 }
 0x44c   : > { %1324 = vadd.xlane.f32.xlu1 %v1323_v23  ;;  %1746 = vrot.lane.b32.xlu2 %v4312_v37, %s4109_s22 }
 0x44f   : > { %v1749_v17 = vpop.permute.xlu1 %1748 }
 0x454   : > { %1817 = vrot.lane.b32.xlu2 %v4344_v54, %s4107_s21 }
 0x456   : > { %1677 = vrot.lane.b32.xlu0 %v4335_v52, %s4109_s22 }
 0x45e   : > { %1840 = vrot.lane.b32.xlu0 %v4333_v51, %s4107_s21 }
 0x465   : > { %1723 = vrot.lane.b32.xlu1 %v4295_v20, %s4109_s22  ;;  %v1289_v5 = vpop.xlane.xlu0 %1288 }
 0x466   : > { %v1297_v24 = vsub.f32 %v1265_v29, %v1289_v5 }
 0x468   : > { %v1312_v33 = vmul.f32 1.442695, %v1297_v24 }
 0x46a   : > { %3791 = vpow2.f32 %v1312_v33 }
 0x46d   : > { %1700 = vrot.lane.b32.xlu1 %v4310_v36, %s4109_s22 }
 0x470   : > { %v4700_v45 = vpop.eup %3791 }
 0x471   : > { %v1335_v46 = vsel %vm460_vm1, %v4700_v45, 0.0 }
 0x475   : > { %1771 = vrot.lane.b32.xlu1 %v4308_v35, %s4107_s21 }
 0x476   : > { %v1319_v39 = vpop.xlane.xlu0 %1318 }
 0x477   : > { %3793 = vrcp.f32 %v1319_v39 }
 0x478   : > { %3795 = vpow2.f32 %v1310_v44 }
 0x47d   : > { %v3794_v29 = vpop.eup %3793  ;;  %1838 = vrot.lane.b32.xlu1 %v4333_v51, %s4109_s22  ;;  %1336 = vadd.xlane.f32.xlu2 %v1335_v46 }
 0x47e   : > { %v4707_v48 = vmul.f32 %v3794_v29, %v4657_v32  ;;  %v4713_v43 = vpop.eup %3795 }
 0x47f   : > { %v1332_v32 = vsel %vm460_vm1, %v4713_v43, 0.0 }
 0x480   : > { %v1502_v26 = vpack.c.bf16 %v4707_v48, %v4707_v48  ;;  %v1368_v39 = vrot.slane %v4707_v48, 4 }
 0x482   : > { %3516 = vmatmul.msk.bf16.vlgmr.msra.gmra.mxu1 %vm460_vm1, %v1502_v26 }
 0x483   : > { %1717 = vmatpush.bf16.xpose.msra.mxu1 %v1708_v56 }
 0x484   : > { %v1322_v58 = vpop.xlane.xlu0 %1321 }
 0x485   : > { %3797 = vrcp.f32 %v1322_v58  ;;  %2133 = vrot.lane.b32.xlu1 %v4310_v36, %s4110_s17 }
 0x488   : > { %1333 = vadd.xlane.f32.xlu0 %v1332_v32  ;;  %v1754_v32 = vsel %vm460_vm1, %v1749_v17, 0 }
 0x48b   : > { %v3798_v60 = vpop.eup %3797 }
 0x48c   : > { %v1348_v47 = vmul.f32 %v3798_v60, %v4661_v31 }
 0x48d   : > { %2196 = vrot.lane.b32.xlu1 %v4308_v35, %s4110_s17 }
 0x48e   : > { %v1503_v0 = vpack.c.bf16 %v1348_v47, %v1348_v47  ;;  %v1354_v8 = vrot.slane %v1348_v47, 4 }
 0x490   : > { %3517 = vmatmul.msk.bf16.vlgmr.msra.gmra.mxu2 %vm460_vm1, %v1503_v0 }
 0x491   : > { %1740 = vmatpush.bf16.xpose.msra.mxu2 %v1731_v2 }
 0x495   : > { %2259 = vrot.lane.b32.xlu1 %v4333_v51, %s4110_s17  ;;  %1794 = vrot.lane.b32.xlu2 %v4331_v50, %s4107_s21 }
 0x49c   : > { %1815 = vrot.lane.b32.xlu0 %v4344_v54, %s4109_s22 }
 0x49d   : > { %1769 = vrot.lane.b32.xlu2 %v4308_v35, %s4109_s22 }
 0x4a4   : > { %1792 = vrot.lane.b32.xlu0 %v4331_v50, %s4109_s22 }
 0x4a5   : > { %2112 = vrot.lane.b32.xlu2 %v4335_v52, %s4110_s17 }
 0x4a7   : > { %v1316_v31 = vpop.xlane.xlu2 %1315 }
 0x4a8   : > { %3799 = vrcp.f32 %v1316_v31 }
 0x4ac   : > { %2154 = vrot.lane.b32.xlu0 %v4295_v20, %s4110_s17 }
 0x4ad   : > { %2175 = vrot.lane.b32.xlu2 %v4312_v37, %s4110_s17 }
 0x4ae   : > { %v3800_v53 = vpop.eup %3799 }
 0x4af   : > { %v1346_v13 = vmul.f32 %v3800_v53, %v4669_v41 }
 0x4b1   : > { %v1355_v14 = vsel %vm745_vm3, %v1354_v8, %v1346_v13  ;;  %v1356_v49 = vrot.slane %v1346_v13, 4  ;;  %v1501_v59 = vpack.c.bf16 %v1346_v13, %v1346_v13 }
 0x4b2   : > { %v1361_v44 = vperm.slane %v1355_v14, %v4518_v19  ;;  %v4785_v14 = vpop.permute.xlu2 %1746 }
 0x4b3   : > { %3515 = vmatmul.msk.bf16.vlgmr.msra.gmra.mxu0 %vm460_vm1, %v1501_v59  ;;  %v1357_v21 = vsel %vm745_vm3, %v1348_v47, %v1356_v49 }
 0x4b4   : > { %2238 = vrot.lane.b32.xlu0 %v4344_v54, %s4110_s17  ;;  %1694 = vmatpush.bf16.xpose.msra.mxu0 %v1685_v62  ;;  %v1365_v61 = vperm.slane %v1357_v21, %v4518_v19  ;;  %v1404_v47 = vrot.slane %v1361_v44, 4 }
 0x4b5   : > { %v1331_v6 = vpop.xlane.xlu0 %1330  ;;  %2217 = vrot.lane.b32.xlu2 %v4331_v50, %s4110_s17 }
 0x4b6   : > { %3801 = vrcp.f32 %v1331_v6  ;;  %v1416_v58 = vrot.slane %v1365_v61, 4 }
 0x4b7   : > { %v1328_v41 = vpop.xlane.xlu1 %1327 }
 0x4b8   : > { %3803 = vrcp.f32 %v1328_v41 }
 0x4ba   : > { %v1818_v62 = vpop.permute.xlu2 %1817 }
 0x4bc   : > { %v3802_v23 = vpop.eup %3801  ;;  %2282 = vrot.lane.b32.xlu0 %v4335_v52, %s4111_s23 }
 0x4bd   : > { %v4754_v63 = vmul.f32 %v3802_v23, %v4673_v25  ;;  %2305 = vrot.lane.b32.xlu2 %v4310_v36, %s4111_s23 }
 0x4be   : > { %v3804_v16 = vpop.eup %3803 }
 0x4bf   : > { %v4759_v5 = vmul.f32 %v3804_v16, %v4677_v22  ;;  %v1325_v24 = vpop.xlane.xlu1 %1324  ;;  %v1506_v33 = vpack.c.bf16 %v4754_v63, %v4754_v63 }
 0x4c0   : > { %3805 = vrcp.f32 %v1325_v24 }
 0x4c1   : > { %3520 = vmatmul.msk.bf16.vlgmr.msrb.gmra.mxu1 %vm460_vm1, %v1506_v33  ;;  %v1505_v34 = vpack.c.bf16 %v4759_v5, %v4759_v5  ;;  %v1392_v33 = vrot.slane %v4754_v63, 4 }
 0x4c3   : > { %3519 = vmatmul.msk.bf16.vlgmr.msrb.gmra.mxu0 %vm460_vm1, %v1505_v34 }
 0x4c6   : > { %v3806_v25 = vpop.eup %3805 }
 0x4c7   : > { %v1349_v22 = vmul.f32 %v3806_v25, %v4681_v11 }
 0x4c8   : > { %v1678_v17 = vpop.permute.xlu0 %1677 }
 0x4c9   : > { %v1366_v46 = vrot.slane %v1349_v22, 4  ;;  %v1369_v29 = vsel %vm745_vm3, %v1349_v22, %v1368_v39  ;;  %v1504_v26 = vpack.c.bf16 %v1349_v22, %v1349_v22 }
 0x4ca   : > { %v1377_v56 = vperm.slane %v1369_v29, %v4518_v19 }
 0x4cb   : > { %v1367_v60 = vsel %vm745_vm3, %v1366_v46, %v4707_v48  ;;  %3518 = vmatmul.msk.bf16.vlgmr.msra.gmra.mxu3 %vm460_vm1, %v1504_v26 }
 0x4cc   : > { %v1414_v0 = vrot.slane %v1377_v56, 4  ;;  %1763 = vmatpush.bf16.xpose.msra.mxu3 %v1754_v32  ;;  %v1373_v11 = vperm.slane %v1367_v60, %v4518_v19  ;;  %v1417_v2 = vsel %vm745_vm3, %v1377_v56, %v1416_v58 }
 0x4ce   : > { %v1402_v31 = vrot.slane %v1373_v11, 4  ;;  %v1405_v53 = vsel %vm745_vm3, %v1373_v11, %v1404_v47  ;;  %v1415_v8 = vsel %vm745_vm3, %v1414_v0, %v1365_v61  ;;  %v1380_v47 = vrot.slane %v4759_v5, 4 }
 0x4d0   : > { %v1403_v13 = vsel %vm745_vm3, %v1402_v31, %v1361_v44  ;;  %v1841_v23 = vpop.permute.xlu0 %1840  ;;  %v1421_v31 = vperm.slane %v1415_v8, %v4561_v15  ;;  %v1413_v8 = vperm.slane %v1405_v53, %v4561_v15 }
 0x4d1   : > { %v1846_v26 = vsel %vm460_vm1, %v1841_v23, 0  ;;  %v1823_v23 = vsel %vm460_vm1, %v1818_v62, 0 }
 0x4d3   : > { %3523 = vmatmul.msk.bf16.vlgmr.msra.gmra.mxu0 %vm460_vm1, %v1678_v17 }
 0x4d7   : > { %v4783_v48 = vpop.permute.xlu1 %1723 }
 0x4df   : > { %v1701_v49 = vpop.permute.xlu1 %1700 }
 0x4e0   : > { %3524 = vmatmul.msk.bf16.vlgmr.msra.gmra.mxu1 %vm460_vm1, %v1701_v49 }
 0x4e7   : > { %v1772_v59 = vpop.permute.xlu1 %1771 }
 0x4e8   : > { %v1777_v21 = vsel %vm460_vm1, %v1772_v59, 0  ;;  %v1409_v59 = vperm.slane %v1403_v13, %v4561_v15 }
 0x4e9   : > { %1786 = vmatpush.bf16.xpose.msrb.mxu0 %v1777_v21 }
 0x4ef   : > { %v4789_v6 = vpop.permute.xlu1 %1838 }
 0x4f0   : > { %v1337_v41 = vpop.xlane.xlu2 %1336 }
 0x4f1   : > { %3807 = vrcp.f32 %v1337_v41 }
 0x4f7   : > { %v3808_v16 = vpop.eup %3807  ;;  %v2134_v24 = vpop.permute.xlu1 %2133 }
 0x4f8   : > { %v1353_v34 = vmul.f32 %v3808_v16, %v4700_v45  ;;  %v1795_v25 = vpop.permute.xlu2 %1794  ;;  %v2139_v44 = vsel %vm910_vm2, %v2134_v24, 0 }
 0x4f9   : > { %v1800_v61 = vsel %vm460_vm1, %v1795_v25, 0 }
 0x4fa   : > { %v1390_v39 = vrot.slane %v1353_v34, 4  ;;  %v1393_v22 = vsel %vm745_vm3, %v1353_v34, %v1392_v33  ;;  %1809 = vmatpush.bf16.xpose.msrb.mxu1 %v1800_v61  ;;  %v1508_v46 = vpack.c.bf16 %v1353_v34, %v1353_v34  ;;  %v1425_v33 = vperm.slane %v1417_v2, %v4561_v15 }
 0x4fb   : > { %v1334_v29 = vpop.xlane.xlu0 %1333  ;;  %v1401_v60 = vperm.slane %v1393_v22, %v4518_v19  ;;  %v1452_v22 = vrot.slane %v1409_v59, 4 }
 0x4fc   : > { %3809 = vrcp.f32 %v1334_v29  ;;  %3522 = vmatmul.msk.bf16.vlgmr.msrb.gmra.mxu3 %vm460_vm1, %v1508_v46  ;;  %v1391_v45 = vsel %vm745_vm3, %v1390_v39, %v4754_v63  ;;  %v1460_v46 = vrot.slane %v1421_v31, 4 }
 0x4fd   : > { %1855 = vmatpush.bf16.xpose.msrb.mxu3 %v1846_v26  ;;  %v1397_v11 = vperm.slane %v1391_v45, %v4518_v19  ;;  %v1438_v41 = vrot.slane %v1401_v60, 4 }
 0x4ff   : > { %v4800_v56 = vpop.f32.mrf.mxu1  ;;  %v2197_v16 = vpop.permute.xlu1 %2196  ;;  %v1426_v61 = vrot.slane %v1397_v11, 4 }
 0x500   : > { %v1770_v58 = vpop.permute.xlu2 %1769 }
 0x501   : > { %3527 = vmatmul.msk.bf16.vlgmr.msrb.gmra.mxu0 %vm460_vm1, %v1770_v58 }
 0x502   : > { %2148 = vmatpush.bf16.msra.mxu1 %v2139_v44  ;;  %v3810_v32 = vpop.eup %3809 }
 0x503   : > { %v1352_v0 = vmul.f32 %v3810_v32, %v4713_v43 }
 0x505   : > { %v1378_v17 = vrot.slane %v1352_v0, 4  ;;  %v1381_v63 = vsel %vm745_vm3, %v1352_v0, %v1380_v47  ;;  %v1507_v49 = vpack.c.bf16 %v1352_v0, %v1352_v0  ;;  %v1456_v0 = vrot.slane %v1413_v8, 4 }
 0x506   : > { %v1389_v21 = vperm.slane %v1381_v63, %v4518_v19 }
 0x507   : > { %3521 = vmatmul.msk.bf16.vlgmr.msrb.gmra.mxu2 %vm460_vm1, %v1507_v49  ;;  %v1549_v24 = vpop.f32.mrf.mxu1  ;;  %v1379_v43 = vsel %vm745_vm3, %v1378_v17, %v4759_v5  ;;  %v2202_v5 = vsel %vm910_vm2, %v2197_v16, 0  ;;  %v1464_v17 = vrot.slane %v1425_v33, 4 }
 0x508   : > { %v1440_v34 = vrot.slane %v1389_v21, 4  ;;  %1832 = vmatpush.bf16.xpose.msrb.mxu2 %v1823_v23  ;;  %v2113_v25 = vpop.permute.xlu2 %2112  ;;  %v1385_v13 = vperm.slane %v1379_v43, %v4518_v19  ;;  %v1439_v39 = vsel %vm745_vm3, %v1438_v41, %v1389_v21 }
 0x509   : > { %v2118_v62 = vsel %vm910_vm2, %v2113_v25, 0  ;;  %v1445_v44 = vperm.slane %v1439_v39, %v4561_v15  ;;  %v2260_v39 = vpop.permute.xlu1 %2259 }
 0x50a   : > { %2127 = vmatpush.bf16.msra.mxu0 %v2118_v62  ;;  %v1427_v53 = vsel %vm745_vm3, %v1426_v61, %v1385_v13  ;;  %v1428_v2 = vrot.slane %v1385_v13, 4  ;;  %v1441_v29 = vsel %vm745_vm3, %v1401_v60, %v1440_v34 }
 0x50b   : > { %v1433_v26 = vperm.slane %v1427_v53, %v4561_v15  ;;  %v1449_v45 = vperm.slane %v1441_v29, %v4561_v15  ;;  %v4827_v58 = vsel %vm745_vm3, %v1445_v44, %v1460_v46  ;;  %v1458_v32 = vrot.slane %v1445_v44, 4 }
 0x50c   : > { %3526 = vmatmul.msk.bf16.vlgmr.msra.gmra.mxu3 %vm460_vm1, %v4785_v14  ;;  %v1429_v47 = vsel %vm745_vm3, %v1397_v11, %v1428_v2 }
 0x50d   : > { %v4833_v63 = vsel %vm745_vm3, %v1433_v26, %v1452_v22  ;;  %v1437_v60 = vperm.slane %v1429_v47, %v4561_v15  ;;  %v1450_v49 = vrot.slane %v1433_v26, 4  ;;  %v1462_v21 = vrot.slane %v1449_v45, 4 }
 0x50e   : > { %2211 = vmatpush.bf16.msrb.mxu0 %v2202_v5  ;;  %v1816_v41 = vpop.permute.xlu0 %1815  ;;  %v4837_v23 = vsel %vm745_vm3, %v1458_v32, %v1421_v31  ;;  %v4840_v16 = vsel %vm745_vm3, %v1449_v45, %v1464_v17  ;;  %v2265_v22 = vsel %vm910_vm2, %v2260_v39, 0 }
 0x50f   : > { %v4843_v14 = vsel %vm745_vm3, %v1437_v60, %v1456_v0  ;;  %v4846_v11 = vsel %vm745_vm3, %v1450_v49, %v1409_v59  ;;  %v4849_v24 = vsel %vm745_vm3, %v1462_v21, %v1425_v33  ;;  %v1454_v43 = vrot.slane %v1437_v60, 4 }
 0x510   : > { %v2176_v34 = vpop.permute.xlu2 %2175 }
 0x511   : > { %v2181_v25 = vsel %vm910_vm2, %v2176_v34, 0  ;;  %v4853_v13 = vsel %vm745_vm3, %v1454_v43, %v1413_v8 }
 0x512   : > { %2190 = vmatpush.bf16.msra.mxu3 %v2181_v25 }
 0x513   : > { %v4855_v31 = vpop.f32.mrf.mxu2 }
 0x516   : > { %v1793_v61 = vpop.permute.xlu0 %1792 }
 0x517   : > { %3525 = vmatmul.msk.bf16.vlgmr.msra.gmra.mxu2 %vm460_vm1, %v4783_v48  ;;  %3528 = vmatmul.msk.bf16.vlgmr.msrb.gmra.mxu1 %vm460_vm1, %v1793_v61 }
 0x518   : > { %v2218_v59 = vpop.permute.xlu2 %2217 }
 0x519   : > { %v2223_v33 = vsel %vm910_vm2, %v2218_v59, 0 }
 0x51a   : > { %2232 = vmatpush.bf16.msrb.mxu1 %v2223_v33 }
 0x51b   : > { %v1570_v62 = vpop.f32.mrf.mxu2 }
 0x51c   : > { %3530 = vmatmul.msk.bf16.vlgmr.msrb.gmra.mxu3 %vm460_vm1, %v4789_v6 }
 0x51d   : > { %2274 = vmatpush.bf16.msrb.mxu3 %v2265_v22 }
 0x51e   : > { %v2155_v8 = vpop.permute.xlu0 %2154 }
 0x51f   : > { %v2160_v44 = vsel %vm910_vm2, %v2155_v8, 0 }
 0x520   : > { %2169 = vmatpush.bf16.msra.mxu2 %v2160_v44 }
 0x526   : > { %v2239_v46 = vpop.permute.xlu0 %2238 }
 0x527   : > { %v2244_v48 = vsel %vm910_vm2, %v2239_v46, 0  ;;  %3529 = vmatmul.msk.bf16.vlgmr.msrb.gmra.mxu2 %vm460_vm1, %v1816_v41 }
 0x528   : > { %2253 = vmatpush.bf16.msrb.mxu2 %v2244_v48 }
 0x530   : > { %v4867_v5 = vpop.f32.mrf.mxu0 }
 0x538   : > { %v1528_v2 = vpop.f32.mrf.mxu0 }
 0x53e   : > { %v4871_v29 = vpop.f32.mrf.mxu1 }
 0x540   : > { %v4873_v6 = vpop.f32.mrf.mxu0 }
 0x546   : > { %v1633_v45 = vpop.f32.mrf.mxu1 }
 0x548   : > { %v1612_v32 = vpop.f32.mrf.mxu0 }
 0x54e   : > { %v4877_v47 = vpop.f32.mrf.mxu3 }
 0x550   : > { %v1696_v17 = vpop.f32.mrf.mxu0 }
 0x551   : > { %v1861_v60 = vmul.f32 0.35355338, %v1696_v17 }
 0x553   : > { %v1869_v49 = vsel %vm460_vm1, %v1861_v60, -inf }
 0x554   : > { %1870 = vmax.xlane.f32.xlu1 %v1869_v49 }
 0x556   : > { %v1591_v21 = vpop.f32.mrf.mxu3 }
 0x558   : > { %v1698_v41 = vpop.f32.mrf.mxu0 }
 0x55d   : > { %v1719_v43 = vpop.f32.mrf.mxu1 }
 0x55e   : > { %v1862_v34 = vmul.f32 0.35355338, %v1719_v43 }
 0x560   : > { %v1872_v25 = vsel %vm460_vm1, %v1862_v34, -inf }
 0x561   : > { %1873 = vmax.xlane.f32.xlu2 %v1872_v25 }
 0x565   : > { %v1721_v61 = vpop.f32.mrf.mxu1 }
 0x57e   : > { %v1788_v59 = vpop.f32.mrf.mxu0 }
 0x57f   : > { %v1865_v39 = vmul.f32 0.35355338, %v1788_v59  ;;  %v4883_v33 = vpop.f32.mrf.mxu3 }
 0x581   : > { %v1881_v62 = vsel %vm460_vm1, %v1865_v39, -inf }
 0x582   : > { %1882 = vmax.xlane.f32.xlu1 %v1881_v62 }
 0x586   : > { %v1790_v22 = vpop.f32.mrf.mxu0 }
 0x587   : > { %v1675_v8 = vpop.f32.mrf.mxu3 }
 0x58a   : > { %v4886_v44 = vpop.f32.mrf.mxu2 }
 0x58f   : > { %v1765_v48 = vpop.f32.mrf.mxu3 }
 0x590   : > { %v1864_v2 = vmul.f32 0.35355338, %v1765_v48 }
 0x592   : > { %v1654_v45 = vpop.f32.mrf.mxu2  ;;  %v1878_v32 = vsel %vm460_vm1, %v1864_v2, -inf }
 0x593   : > { %1879 = vmax.xlane.f32.xlu2 %v1878_v32 }
 0x594   : > { %v1811_v17 = vpop.f32.mrf.mxu1 }
 0x595   : > { %v1866_v62 = vmul.f32 0.35355338, %v1811_v17 }
 0x597   : > { %v1767_v49 = vpop.f32.mrf.mxu3  ;;  %v1884_v48 = vsel %vm460_vm1, %v1866_v62, -inf }
 0x59a   : > { %v1742_v21 = vpop.f32.mrf.mxu2 }
 0x59b   : > { %v1863_v41 = vmul.f32 0.35355338, %v1742_v21 }
 0x59c   : > { %v1813_v43 = vpop.f32.mrf.mxu1 }
 0x59d   : > { %v1875_v25 = vsel %vm460_vm1, %v1863_v41, -inf  ;;  %v4901_v43 = vpop.permute.xlu2 %2305 }
 0x59e   : > { %1876 = vmax.xlane.f32.xlu0 %v1875_v25 }
 0x59f   : > { %v1857_v61 = vpop.f32.mrf.mxu3 }
 0x5a0   : > { %v1868_v59 = vmul.f32 0.35355338, %v1857_v61 }
 0x5a2   : > { %v1744_v22 = vpop.f32.mrf.mxu2  ;;  %v1890_v8 = vsel %vm460_vm1, %v1868_v59, -inf }
 0x5a3   : > { %1891 = vmax.xlane.f32.xlu1 %v1890_v8 }
 0x5a6   : > { %1885 = vmax.xlane.f32.xlu0 %v1884_v48 }
 0x5a7   : > { %v1859_v45 = vpop.f32.mrf.mxu3 }
 0x5aa   : > { %v1834_v32 = vpop.f32.mrf.mxu2 }
 0x5ab   : > { %v1867_v46 = vmul.f32 0.35355338, %v1834_v32 }
 0x5ad   : > { %v1887_v49 = vsel %vm460_vm1, %v1867_v46, -inf }
 0x5ae   : > { %1888 = vmax.xlane.f32.xlu2 %v1887_v49 }
 0x5b2   : > { %v1836_v21 = vpop.f32.mrf.mxu2 }
 0x5ba   : > { %2351 = vrot.lane.b32.xlu0 %v4312_v37, %s4111_s23 }
 0x5bc   : > { %2328 = vrot.lane.b32.xlu1 %v4295_v20, %s4111_s23 }
 0x5c6   : > { %2280 = vrot.lane.b32.xlu2 %v4335_v52, %s4112_s3 }
 0x5c7   : > { %v1871_v17 = vpop.xlane.xlu1 %1870 }
 0x5c8   : > { %v1893_v25 = vsub.f32 %v1861_v60, %v1871_v17 }
 0x5ca   : > { %v1901_v61 = vmul.f32 1.442695, %v1893_v25 }
 0x5cc   : > { %3811 = vpow2.f32 %v1901_v61 }
 0x5d2   : > { %v4903_v48 = vpop.eup %3811 }
 0x5d3   : > { %v1917_v32 = vsel %vm460_vm1, %v4903_v48, 0.0 }
 0x5d4   : > { %v1874_v22 = vpop.xlane.xlu2 %1873 }
 0x5d5   : > { %v1894_v8 = vsub.f32 %v1862_v34, %v1874_v22 }
 0x5d7   : > { %v1903_v45 = vmul.f32 1.442695, %v1894_v8  ;;  %v2283_v8 = vpop.permute.xlu0 %2282 }
 0x5d9   : > { %3813 = vpow2.f32 %v1903_v45 }
 0x5df   : > { %v4907_v49 = vpop.eup %3813 }
 0x5e0   : > { %v1920_v21 = vsel %vm460_vm1, %v4907_v49, 0.0 }
 0x5e4   : > { %1918 = vadd.xlane.f32.xlu0 %v1917_v32 }
 0x5ef   : > { %1921 = vadd.xlane.f32.xlu2 %v1920_v21 }
 0x5f5   : > { %v1883_v0 = vpop.xlane.xlu1 %1882 }
 0x5f6   : > { %v1897_v60 = vsub.f32 %v1865_v39, %v1883_v0 }
 0x5f8   : > { %v1909_v17 = vmul.f32 1.442695, %v1897_v60 }
 0x5fa   : > { %3815 = vpow2.f32 %v1909_v17 }
 0x600   : > { %v4911_v25 = vpop.eup %3815 }
 0x601   : > { %v1929_v34 = vsel %vm460_vm1, %v4911_v25, 0.0 }
 0x602   : > { %1930 = vadd.xlane.f32.xlu0 %v1929_v34 }
 0x606   : > { %v1880_v61 = vpop.xlane.xlu2 %1879 }
 0x607   : > { %v1896_v22 = vsub.f32 %v1864_v2, %v1880_v61 }
 0x609   : > { %v1907_v45 = vmul.f32 1.442695, %v1896_v22 }
 0x60b   : > { %3817 = vpow2.f32 %v1907_v45 }
 0x611   : > { %v4915_v32 = vpop.eup %3817  ;;  %v1877_v26 = vpop.xlane.xlu0 %1876 }
 0x612   : > { %v1895_v53 = vsub.f32 %v1863_v41, %v1877_v26  ;;  %v1926_v0 = vsel %vm460_vm1, %v4915_v32, 0.0 }
 0x613   : > { %1927 = vadd.xlane.f32.xlu0 %v1926_v0 }
 0x614   : > { %v1905_v39 = vmul.f32 1.442695, %v1895_v53 }
 0x616   : > { %3819 = vpow2.f32 %v1905_v39  ;;  %v1892_v21 = vpop.xlane.xlu1 %1891 }
 0x617   : > { %v1900_v60 = vsub.f32 %v1868_v59, %v1892_v21 }
 0x619   : > { %v1915_v17 = vmul.f32 1.442695, %v1900_v60  ;;  %v1886_v3 = vpop.xlane.xlu0 %1885 }
 0x61a   : > { %v1898_v34 = vsub.f32 %v1866_v62, %v1886_v3 }
 0x61b   : > { %3821 = vpow2.f32 %v1915_v17 }
 0x61c   : > { %v4919_v2 = vpop.eup %3819  ;;  %v1911_v61 = vmul.f32 1.442695, %v1898_v34 }
 0x61d   : > { %v1923_v22 = vsel %vm460_vm1, %v4919_v2, 0.0 }
 0x61e   : > { %3823 = vpow2.f32 %v1911_v61  ;;  %1924 = vadd.xlane.f32.xlu1 %v1923_v22 }
 0x621   : > { %v4923_v26 = vpop.eup %3821  ;;  %v1889_v41 = vpop.xlane.xlu2 %1888 }
 0x622   : > { %v1899_v45 = vsub.f32 %v1867_v46, %v1889_v41  ;;  %v1938_v53 = vsel %vm460_vm1, %v4923_v26, 0.0  ;;  %v2288_v41 = vsel %vm460_vm1, %v2283_v8, 0 }
 0x623   : > { %1939 = vadd.xlane.f32.xlu0 %v1938_v53 }
 0x624   : > { %v4927_v59 = vpop.eup %3823  ;;  %v1913_v3 = vmul.f32 1.442695, %v1899_v45 }
 0x625   : > { %v1932_v62 = vsel %vm460_vm1, %v4927_v59, 0.0 }
 0x626   : > { %3825 = vpow2.f32 %v1913_v3  ;;  %1933 = vadd.xlane.f32.xlu1 %v1932_v62  ;;  %v2311_v62 = vsel %vm460_vm1, %v4901_v43, 0 }
 0x629   : > { %v2281_v60 = vpop.permute.xlu2 %2280 }
 0x62c   : > { %v4931_v0 = vpop.eup %3825  ;;  %v2352_v46 = vpop.permute.xlu0 %2351 }
 0x62d   : > { %v1935_v39 = vsel %vm460_vm1, %v4931_v0, 0.0 }
 0x62e   : > { %1936 = vadd.xlane.f32.xlu2 %v1935_v39 }
 0x637   : > { %2326 = vrot.lane.b32.xlu0 %v4295_v20, %s4112_s3 }
 0x63f   : > { %2303 = vrot.lane.b32.xlu1 %v4310_v36, %s4112_s3  ;;  %2397 = vrot.lane.b32.xlu0 %v4331_v50, %s4111_s23 }
 0x646   : > { %2349 = vrot.lane.b32.xlu2 %v4312_v37, %s4112_s3 }
 0x647   : > { %2374 = vrot.lane.b32.xlu1 %v4308_v35, %s4111_s23  ;;  %2372 = vrot.lane.b32.xlu0 %v4308_v35, %s4112_s3 }
 0x64e   : > { %2420 = vrot.lane.b32.xlu2 %v4344_v54, %s4111_s23 }
 0x64f   : > { %2443 = vrot.lane.b32.xlu1 %v4333_v51, %s4111_s23  ;;  %2441 = vrot.lane.b32.xlu0 %v4333_v51, %s4112_s3  ;;  %s5539_s23 = scalar_lea.vmem [#allocation8], %s3474_s1  ;;  %s3581_s1 = sshll.u32 %s4186_s9, 4 }
 0x656   : > { %2395 = vrot.lane.b32.xlu2 %v4331_v50, %s4112_s3 }
 0x657   : > { %2418 = vrot.lane.b32.xlu1 %v4344_v54, %s4112_s3  ;;  %v1919_v21 = vpop.xlane.xlu0 %1918  ;;  %s3478_s3 = sshll.u32 %s4261_s19, 4 }
 0x658   : > { %3827 = vrcp.f32 %v1919_v21 }
 0x65e   : > { %v3828_v17 = vpop.eup %3827 }
 0x65f   : > { %v1949_v34 = vmul.f32 %v3828_v17, %v4903_v48 }
 0x661   : > { %v2104_v61 = vpack.c.bf16 %v1949_v34, %v1949_v34 }
 0x662   : > { %v1922_v22 = vpop.xlane.xlu2 %1921 }
 0x663   : > { %3829 = vrcp.f32 %v1922_v22  ;;  %3531 = vmatmul.msk.bf16.vlgmr.msra.gmra.mxu0 %vm460_vm1, %v2104_v61 }
 0x664   : > { %2297 = vmatpush.bf16.xpose.msra.mxu0 %v2288_v41 }
 0x669   : > { %v3830_v45 = vpop.eup %3829 }
 0x66a   : > { %v1950_v53 = vmul.f32 %v3830_v45, %v4907_v49  ;;  %v2329_v49 = vpop.permute.xlu1 %2328 }
 0x66c   : > { %v2105_v3 = vpack.c.bf16 %v1950_v53, %v1950_v53  ;;  %v1971_v22 = vrot.slane %v1950_v53, 4 }
 0x66e   : > { %3532 = vmatmul.msk.bf16.vlgmr.msra.gmra.mxu1 %vm460_vm1, %v2105_v3 }
 0x66f   : > { %2320 = vmatpush.bf16.xpose.msra.mxu1 %v2311_v62 }
 0x675   : > { %v1931_v39 = vpop.xlane.xlu0 %1930 }
 0x676   : > { %3831 = vrcp.f32 %v1931_v39 }
 0x67c   : > { %v3832_v48 = vpop.eup %3831 }
 0x67d   : > { %v4965_v21 = vmul.f32 %v3832_v48, %v4911_v25  ;;  %v2357_v25 = vsel %vm460_vm1, %v2352_v46, 0 }
 0x67f   : > { %v2108_v8 = vpack.c.bf16 %v4965_v21, %v4965_v21 }
 0x681   : > { %3535 = vmatmul.msk.bf16.vlgmr.msrb.gmra.mxu0 %vm460_vm1, %v2108_v8 }
 0x686   : > { %v1928_v17 = vpop.xlane.xlu0 %1927 }
 0x687   : > { %3833 = vrcp.f32 %v1928_v17  ;;  %v1959_v17 = vrot.slane %v1949_v34, 4 }
 0x68d   : > { %v3834_v61 = vpop.eup %3833 }
 0x68e   : > { %v1952_v43 = vmul.f32 %v3834_v61, %v4915_v32 }
 0x690   : > { %v1969_v41 = vrot.slane %v1952_v43, 4  ;;  %v1972_v45 = vsel %vm745_vm3, %v1952_v43, %v1971_v22  ;;  %v2107_v3 = vpack.c.bf16 %v1952_v43, %v1952_v43 }
 0x691   : > { %v1925_v62 = vpop.xlane.xlu1 %1924  ;;  %3539 = vmatmul.msk.bf16.vlgmr.msra.gmra.mxu0 %vm460_vm1, %v2281_v60  ;;  %v1980_v32 = vperm.slane %v1972_v45, %v4518_v19 }
 0x692   : > { %3835 = vrcp.f32 %v1925_v62  ;;  %3534 = vmatmul.msk.bf16.vlgmr.msra.gmra.mxu3 %vm460_vm1, %v2107_v3  ;;  %v1970_v39 = vsel %vm745_vm3, %v1969_v41, %v1950_v53 }
 0x693   : > { %2366 = vmatpush.bf16.xpose.msra.mxu3 %v2357_v25  ;;  %v1976_v43 = vperm.slane %v1970_v39, %v4518_v19  ;;  %v2017_v3 = vrot.slane %v1980_v32, 4  ;;  %v2334_v25 = vsel %vm460_vm1, %v2329_v49, 0 }
 0x696   : > { %v1940_v48 = vpop.xlane.xlu0 %1939 }
 0x697   : > { %3837 = vrcp.f32 %v1940_v48  ;;  %v2005_v48 = vrot.slane %v1976_v43, 4 }
 0x698   : > { %v3836_v8 = vpop.eup %3835 }
 0x699   : > { %v1951_v61 = vmul.f32 %v3836_v8, %v4919_v2  ;;  %v1934_v22 = vpop.xlane.xlu1 %1933 }
 0x69a   : > { %3839 = vrcp.f32 %v1934_v22 }
 0x69b   : > { %v1957_v60 = vrot.slane %v1951_v61, 4  ;;  %v1960_v46 = vsel %vm745_vm3, %v1951_v61, %v1959_v17  ;;  %v2106_v62 = vpack.c.bf16 %v1951_v61, %v1951_v61 }
 0x69c   : > { %v1968_v53 = vperm.slane %v1960_v46, %v4518_v19 }
 0x69d   : > { %v3838_v41 = vpop.eup %3837  ;;  %3533 = vmatmul.msk.bf16.vlgmr.msra.gmra.mxu2 %vm460_vm1, %v2106_v62  ;;  %v1958_v45 = vsel %vm745_vm3, %v1957_v60, %v1949_v34 }
 0x69e   : > { %v1956_v2 = vmul.f32 %v3838_v41, %v4923_v26  ;;  %2343 = vmatpush.bf16.xpose.msra.mxu2 %v2334_v25  ;;  %v1964_v39 = vperm.slane %v1958_v45, %v4518_v19  ;;  %v2018_v8 = vsel %vm745_vm3, %v2017_v3, %v1968_v53  ;;  %v2019_v17 = vrot.slane %v1968_v53, 4 }
 0x6a0   : > { %v3840_v61 = vpop.eup %3839  ;;  %v1993_v22 = vrot.slane %v1956_v2, 4  ;;  %v2111_v18 = vpack.c.bf16 %v1956_v2, %v1956_v2  ;;  %v2007_v46 = vrot.slane %v1964_v39, 4  ;;  %v2006_v40 = vsel %vm745_vm3, %v2005_v48, %v1964_v39 }
 0x6a1   : > { %v1954_v49 = vmul.f32 %v3840_v61, %v4927_v59  ;;  %v1937_v62 = vpop.xlane.xlu2 %1936  ;;  %v2020_v34 = vsel %vm745_vm3, %v1980_v32, %v2019_v17  ;;  %v1983_v59 = vrot.slane %v4965_v21, 4 }
 0x6a2   : > { %3841 = vrcp.f32 %v1937_v62  ;;  %3538 = vmatmul.msk.bf16.vlgmr.msrb.gmra.mxu3 %vm460_vm1, %v2111_v18  ;;  %v2008_v26 = vsel %vm745_vm3, %v1976_v43, %v2007_v46 }
 0x6a3   : > { %v1994_v60 = vsel %vm745_vm3, %v1993_v22, %v1954_v49  ;;  %v1995_v3 = vrot.slane %v1954_v49, 4  ;;  %v2109_v53 = vpack.c.bf16 %v1954_v49, %v1954_v49  ;;  %v2024_v22 = vperm.slane %v2018_v8, %v4561_v15 }
 0x6a4   : > { %v2000_v18 = vperm.slane %v1994_v60, %v4518_v19  ;;  %v2012_v49 = vperm.slane %v2006_v40, %v4561_v15  ;;  %v2028_v60 = vperm.slane %v2020_v34, %v4561_v15 }
 0x6a5   : > { %3536 = vmatmul.msk.bf16.vlgmr.msrb.gmra.mxu1 %vm460_vm1, %v2109_v53  ;;  %v1996_v41 = vsel %vm745_vm3, %v1956_v2, %v1995_v3 }
 0x6a6   : > { %v2004_v45 = vperm.slane %v1996_v41, %v4518_v19  ;;  %v2029_v8 = vrot.slane %v2000_v18, 4  ;;  %v2067_v57 = vrot.slane %v2028_v60, 4 }
 0x6a8   : > { %v3842_v25 = vpop.eup %3841  ;;  %v2041_v2 = vrot.slane %v2004_v45, 4 }
 0x6a9   : > { %v1955_v32 = vmul.f32 %v3842_v25, %v4931_v0  ;;  %v2350_v48 = vpop.permute.xlu2 %2349  ;;  %v2327_v39 = vpop.permute.xlu0 %2326  ;;  %v2016_v0 = vperm.slane %v2008_v26, %v4561_v15 }
 0x6ab   : > { %v1981_v43 = vrot.slane %v1955_v32, 4  ;;  %v1984_v17 = vsel %vm745_vm3, %v1955_v32, %v1983_v59  ;;  %v2110_v61 = vpack.c.bf16 %v1955_v32, %v1955_v32  ;;  %v2063_v59 = vrot.slane %v2024_v22, 4 }
 0x6ac   : > { %v1992_v46 = vperm.slane %v1984_v17, %v4518_v19  ;;  %v2055_v17 = vrot.slane %v2012_v49, 4 }
 0x6ad   : > { %v1982_v62 = vsel %vm745_vm3, %v1981_v43, %v4965_v21  ;;  %3537 = vmatmul.msk.bf16.vlgmr.msrb.gmra.mxu2 %vm460_vm1, %v2110_v61 }
 0x6ae   : > { %v2043_v3 = vrot.slane %v1992_v46, 4  ;;  %v1988_v53 = vperm.slane %v1982_v62, %v4518_v19  ;;  %v2042_v41 = vsel %vm745_vm3, %v2041_v2, %v1992_v46 }
 0x6af   : > { %v2048_v25 = vperm.slane %v2042_v41, %v4561_v15 }
 0x6b0   : > { %v2031_v32 = vrot.slane %v1988_v53, 4  ;;  %v2030_v40 = vsel %vm745_vm3, %v2029_v8, %v1988_v53  ;;  %v2044_v21 = vsel %vm745_vm3, %v2004_v45, %v2043_v3  ;;  %v2059_v8 = vrot.slane %v2016_v0, 4 }
 0x6b1   : > { %v2421_v43 = vpop.permute.xlu2 %2420  ;;  %v2304_v61 = vpop.permute.xlu1 %2303  ;;  %v5014_v26 = vsel %vm745_vm3, %v2048_v25, %v2063_v59  ;;  %v2036_v34 = vperm.slane %v2030_v40, %v4561_v15  ;;  %v2061_v62 = vrot.slane %v2048_v25, 4  ;;  %v2052_v46 = vperm.slane %v2044_v21, %v4561_v15 }
 0x6b2   : > { %v2426_v2 = vsel %vm460_vm1, %v2421_v43, 0  ;;  %v2398_v41 = vpop.permute.xlu0 %2397  ;;  %3542 = vmatmul.msk.bf16.vlgmr.msra.gmra.mxu3 %vm460_vm1, %v2350_v48  ;;  %v2032_v53 = vsel %vm745_vm3, %v2000_v18, %v2031_v32 }
 0x6b3   : > { %v2403_v45 = vsel %vm460_vm1, %v2398_v41, 0  ;;  %2435 = vmatpush.bf16.xpose.msrb.mxu2 %v2426_v2  ;;  %v2040_v3 = vperm.slane %v2032_v53, %v4561_v15  ;;  %v5024_v59 = vsel %vm745_vm3, %v2036_v34, %v2055_v17  ;;  %v5027_v25 = vsel %vm745_vm3, %v2061_v62, %v2024_v22 }
 0x6b4   : > { %5665 = vst [vmem:[#allocation24_spill] sm:$0xff] %v5027_v25  ;;  %2412 = vmatpush.bf16.xpose.msrb.mxu1 %v2403_v45  ;;  %v2053_v40 = vrot.slane %v2036_v34, 4  ;;  %v2065_v21 = vrot.slane %v2052_v46, 4  ;;  %v5030_v48 = vsel %vm745_vm3, %v2052_v46, %v2067_v57 }
 0x6b5   : > { %5666 = vst [vmem:[#allocation25_spill] sm:$0xff] %v5030_v48  ;;  %3540 = vmatmul.msk.bf16.vlgmr.msra.gmra.mxu1 %vm460_vm1, %v2304_v61  ;;  %v2057_v18 = vrot.slane %v2040_v3, 4  ;;  %v5034_v32 = vsel %vm745_vm3, %v2040_v3, %v2059_v8 }
 0x6b6   : > { %v5037_v43 = vsel %vm745_vm3, %v2053_v40, %v2012_v49  ;;  %v5040_v17 = vsel %vm745_vm3, %v2065_v21, %v2028_v60 }
 0x6b7   : > { %5667 = vst [vmem:[#allocation26_spill] sm:$0xff] %v5037_v43  ;;  %v5043_v22 = vsel %vm745_vm3, %v2057_v18, %v2016_v0 }
 0x6b8   : > { %5668 = vst [vmem:[#allocation27_spill] sm:$0xff] %v5040_v17 }
 0x6b9   : > { %v2375_v34 = vpop.permute.xlu1 %2374  ;;  %v2396_v49 = vpop.permute.xlu2 %2395 }
 0x6ba   : > { %v2380_v62 = vsel %vm460_vm1, %v2375_v34, 0  ;;  %v2373_v57 = vpop.permute.xlu0 %2372 }
 0x6bb   : > { %2389 = vmatpush.bf16.xpose.msrb.mxu0 %v2380_v62 }
 0x6bd   : > { %3541 = vmatmul.msk.bf16.vlgmr.msra.gmra.mxu2 %vm460_vm1, %v2327_v39 }
 0x6c1   : > { %v2444_v61 = vpop.permute.xlu1 %2443 }
 0x6c2   : > { %v2449_v46 = vsel %vm460_vm1, %v2444_v61, 0  ;;  %3543 = vmatmul.msk.bf16.vlgmr.msrb.gmra.mxu0 %vm460_vm1, %v2373_v57  ;;  %v2442_v60 = vpop.permute.xlu0 %2441 }
 0x6c3   : > { %2458 = vmatpush.bf16.xpose.msrb.mxu3 %v2449_v46 }
 0x6c5   : > { %3544 = vmatmul.msk.bf16.vlgmr.msrb.gmra.mxu1 %vm460_vm1, %v2396_v49 }
 0x6c9   : > { %v2419_v0 = vpop.permute.xlu1 %2418 }
 0x6ca   : > { %3546 = vmatmul.msk.bf16.vlgmr.msrb.gmra.mxu3 %vm460_vm1, %v2442_v60 }
 0x6cd   : > { %3545 = vmatmul.msk.bf16.vlgmr.msrb.gmra.mxu2 %vm460_vm1, %v2419_v0 }
 0x6e0   : > { %v5052_v2 = vpop.f32.mrf.mxu0 }
 0x6e8   : > { %v2131_v41 = vpop.f32.mrf.mxu0 }
 0x6eb   : > { %v5054_v39 = vpop.f32.mrf.mxu1 }
 0x6f3   : > { %v2152_v8 = vpop.f32.mrf.mxu1 }
 0x6fe   : > { %v5058_v45 = vpop.f32.mrf.mxu0 }
 0x706   : > { %v2215_v3 = vpop.f32.mrf.mxu0 }
 0x70e   : > { %v2299_v40 = vpop.f32.mrf.mxu0 }
 0x70f   : > { %v2464_v21 = vmul.f32 0.35355338, %v2299_v40 }
 0x711   : > { %v2472_v18 = vsel %vm460_vm1, %v2464_v21, -inf }
 0x712   : > { %2473 = vmax.xlane.f32.xlu2 %v2472_v18 }
 0x715   : > { %v5061_v34 = vpop.f32.mrf.mxu3 }
 0x716   : > { %v2301_v62 = vpop.f32.mrf.mxu0 }
 0x71d   : > { %v2194_v57 = vpop.f32.mrf.mxu3 }
 0x720   : > { %v5063_v61 = vpop.f32.mrf.mxu2 }
 0x722   : > { %v5067_v49 = vpop.f32.mrf.mxu1 }
 0x725   : > { %v5071_v0 = vpop.f32.mrf.mxu3 }
 0x728   : > { %v2173_v41 = vpop.f32.mrf.mxu2 }
 0x72a   : > { %v2236_v8 = vpop.f32.mrf.mxu1 }
 0x72d   : > { %v2278_v3 = vpop.f32.mrf.mxu3 }
 0x730   : > { %v5073_v40 = vpop.f32.mrf.mxu2 }
 0x732   : > { %v2322_v62 = vpop.f32.mrf.mxu1 }
 0x733   : > { %v2465_v57 = vmul.f32 0.35355338, %v2322_v62 }
 0x735   : > { %v2475_v53 = vsel %vm460_vm1, %v2465_v57, -inf  ;;  %v2368_v46 = vpop.f32.mrf.mxu3 }
 0x736   : > { %2476 = vmax.xlane.f32.xlu1 %v2475_v53  ;;  %v5078_v48 = vmul.f32 0.35355338, %v2368_v46 }
 0x738   : > { %v2257_v17 = vpop.f32.mrf.mxu2  ;;  %v2481_v60 = vsel %vm460_vm1, %v5078_v48, -inf }
 0x739   : > { %2482 = vmax.xlane.f32.xlu2 %v2481_v60 }
 0x73a   : > { %v2324_v41 = vpop.f32.mrf.mxu1 }
 0x73d   : > { %v2370_v8 = vpop.f32.mrf.mxu3 }
 0x73f   : > { %v2391_v3 = vpop.f32.mrf.mxu0 }
 0x740   : > { %v2468_v43 = vmul.f32 0.35355338, %v2391_v3  ;;  %v2345_v25 = vpop.f32.mrf.mxu2 }
 0x741   : > { %v2466_v17 = vmul.f32 0.35355338, %v2345_v25 }
 0x742   : > { %v2414_v42 = vpop.f32.mrf.mxu1  ;;  %v2484_v18 = vsel %vm460_vm1, %v2468_v43, -inf }
 0x743   : > { %v2469_v62 = vmul.f32 0.35355338, %v2414_v42  ;;  %2485 = vmax.xlane.f32.xlu1 %v2484_v18  ;;  %v2478_v60 = vsel %vm460_vm1, %v2466_v17, -inf }
 0x745   : > { %v2487_v55 = vsel %vm460_vm1, %v2469_v62, -inf }
 0x746   : > { %2488 = vmax.xlane.f32.xlu0 %v2487_v55 }
 0x747   : > { %v2393_v53 = vpop.f32.mrf.mxu0 }
 0x748   : > { %v2347_v46 = vpop.f32.mrf.mxu2 }
 0x74a   : > { %v2416_v4 = vpop.f32.mrf.mxu1 }
 0x74d   : > { %v2460_v9 = vpop.f32.mrf.mxu3 }
 0x74e   : > { %v2471_v41 = vmul.f32 0.35355338, %v2460_v9  ;;  %2479 = vmax.xlane.f32.xlu0 %v2478_v60 }
 0x750   : > { %v2437_v8 = vpop.f32.mrf.mxu2  ;;  %v2493_v3 = vsel %vm460_vm1, %v2471_v41, -inf }
 0x751   : > { %v5086_v27 = vmul.f32 0.35355338, %v2437_v8  ;;  %2494 = vmax.xlane.f32.xlu1 %v2493_v3 }
 0x753   : > { %v2490_v42 = vsel %vm460_vm1, %v5086_v27, -inf }
 0x754   : > { %2491 = vmax.xlane.f32.xlu2 %v2490_v42 }
 0x755   : > { %v2462_v55 = vpop.f32.mrf.mxu3 }
 0x758   : > { %v2439_v18 = vpop.f32.mrf.mxu2 }
 0x762   : > { %2736 = vrot.lane.b32.xlu0 %v4310_v36, %s4113_s11 }
 0x76a   : > { %2778 = vrot.lane.b32.xlu0 %v4312_v37, %s4113_s11  ;;  %2715 = vrot.lane.b32.xlu1 %v4335_v52, %s4113_s11 }
 0x76c   : > { %2757 = vrot.lane.b32.xlu2 %v4295_v20, %s4113_s11 }
 0x774   : > { %2799 = vrot.lane.b32.xlu2 %v4308_v35, %s4113_s11 }
 0x785   : > { %v2474_v4 = vpop.xlane.xlu2 %2473 }
 0x786   : > { %v2496_v9 = vsub.f32 %v2464_v21, %v2474_v4 }
 0x788   : > { %v2504_v25 = vmul.f32 1.442695, %v2496_v9 }
 0x78a   : > { %3843 = vpow2.f32 %v2504_v25 }
 0x790   : > { %v5100_v53 = vpop.eup %3843 }
 0x791   : > { %v2520_v36 = vsel %vm460_vm1, %v5100_v53, 0.0 }
 0x794   : > { %2521 = vadd.xlane.f32.xlu0 %v2520_v36 }
 0x7a9   : > { %v2477_v37 = vpop.xlane.xlu1 %2476 }
 0x7aa   : > { %v2497_v46 = vsub.f32 %v2465_v57, %v2477_v37 }
 0x7ac   : > { %v2506_v60 = vmul.f32 1.442695, %v2497_v46  ;;  %v2483_v18 = vpop.xlane.xlu2 %2482 }
 0x7ad   : > { %v2499_v37 = vsub.f32 %v5078_v48, %v2483_v18 }
 0x7ae   : > { %3845 = vpow2.f32 %v2506_v60 }
 0x7b4   : > { %v5104_v52 = vpop.eup %3845 }
 0x7b5   : > { %v2523_v20 = vsel %vm460_vm1, %v5104_v52, 0.0 }
 0x7b6   : > { %2524 = vadd.xlane.f32.xlu2 %v2523_v20  ;;  %v2486_v35 = vpop.xlane.xlu1 %2485 }
 0x7b7   : > { %v2500_v21 = vsub.f32 %v2468_v43, %v2486_v35 }
 0x7b9   : > { %v2512_v8 = vmul.f32 1.442695, %v2500_v21  ;;  %v2489_v3 = vpop.xlane.xlu0 %2488  ;;  %v2510_v21 = vmul.f32 1.442695, %v2499_v37 }
 0x7ba   : > { %v2501_v42 = vsub.f32 %v2469_v62, %v2489_v3 }
 0x7bb   : > { %3847 = vpow2.f32 %v2512_v8 }
 0x7bc   : > { %v2514_v55 = vmul.f32 1.442695, %v2501_v42 }
 0x7be   : > { %3849 = vpow2.f32 %v2514_v55 }
 0x7c1   : > { %v5108_v4 = vpop.eup %3847  ;;  %v2480_v57 = vpop.xlane.xlu0 %2479 }
 0x7c2   : > { %v2498_v9 = vsub.f32 %v2466_v17, %v2480_v57  ;;  %v2532_v25 = vsel %vm460_vm1, %v5108_v4, 0.0 }
 0x7c3   : > { %2533 = vadd.xlane.f32.xlu1 %v2532_v25 }
 0x7c4   : > { %v5112_v36 = vpop.eup %3849  ;;  %v2508_v43 = vmul.f32 1.442695, %v2498_v9  ;;  %v2495_v46 = vpop.xlane.xlu1 %2494 }
 0x7c5   : > { %v2503_v60 = vsub.f32 %v2471_v41, %v2495_v46  ;;  %v2535_v62 = vsel %vm460_vm1, %v5112_v36, 0.0 }
 0x7c6   : > { %3851 = vpow2.f32 %v2508_v43  ;;  %2536 = vadd.xlane.f32.xlu0 %v2535_v62 }
 0x7c7   : > { %v2518_v20 = vmul.f32 1.442695, %v2503_v60  ;;  %v2492_v35 = vpop.xlane.xlu2 %2491 }
 0x7c9   : > { %3853 = vpow2.f32 %v2518_v20  ;;  %v5669_v20 = vpack.i.bf16 %v4800_v56, %v4867_v5  ;;  %v5672_v56 = vpack.i.bf16 %v4871_v29, %v4873_v6 }
 0x7ca   : > { %3855 = vpow2.f32 %v2510_v21  ;;  %v5671_v21 = vpack.i.bf16 %v5061_v34, %v5063_v61 }
 0x7cc   : > { %v5117_v17 = vpop.eup %3851 }
 0x7cd   : > { %v2526_v8 = vsel %vm460_vm1, %v5117_v17, 0.0 }
 0x7ce   : > { %2527 = vadd.xlane.f32.xlu2 %v2526_v8 }
 0x7cf   : > { %v5121_v48 = vpop.eup %3853  ;;  %v2758_v3 = vpop.permute.xlu2 %2757 }
 0x7d0   : > { %v2763_v41 = vsel %vm910_vm2, %v2758_v3, 0  ;;  %v2541_v42 = vsel %vm460_vm1, %v5121_v48, 0.0  ;;  %v5126_v55 = vpop.eup %3855 }
 0x7d1   : > { %2772 = vmatpush.bf16.msra.mxu2 %v2763_v41  ;;  %2542 = vadd.xlane.f32.xlu1 %v2541_v42  ;;  %v2529_v9 = vsel %vm460_vm1, %v5126_v55, 0.0  ;;  %v5674_v41 = vpack.i.bf16 %v5071_v0, %v5073_v40 }
 0x7d4   : > { %v2737_v18 = vpop.permute.xlu0 %2736 }
 0x7d5   : > { %v2742_v57 = vsel %vm910_vm2, %v2737_v18, 0 }
 0x7d6   : > { %2530 = vadd.xlane.f32.xlu2 %v2529_v9  ;;  %2751 = vmatpush.bf16.msra.mxu1 %v2742_v57 }
 0x7d7   : > { %v2800_v25 = vpop.permute.xlu2 %2799 }
 0x7d8   : > { %v2805_v62 = vsel %vm910_vm2, %v2800_v25, 0 }
 0x7da   : > { %2841 = vrot.lane.b32.xlu0 %v4344_v54, %s4113_s11  ;;  %v5670_v54 = vpack.i.bf16 %v5054_v39, %v5052_v2 }
 0x7dc   : > { %v2716_v37 = vpop.permute.xlu1 %2715  ;;  %v2779_v43 = vpop.permute.xlu0 %2778 }
 0x7dd   : > { %v2721_v46 = vsel %vm910_vm2, %v2716_v37, 0  ;;  %v2784_v60 = vsel %vm910_vm2, %v2779_v43, 0 }
 0x7de   : > { %2730 = vmatpush.bf16.msra.mxu0 %v2721_v46  ;;  %2793 = vmatpush.bf16.msra.mxu3 %v2784_v60 }
 0x7e2   : > { %2814 = vmatpush.bf16.msrb.mxu0 %v2805_v62  ;;  %3684 = vrot.lane.b32.xlu0 %v5669_v20, %s5644_s16 }
 0x7ea   : > { %2862 = vrot.lane.b32.xlu1 %v4333_v51, %s4113_s11  ;;  %3689 = vrot.lane.b32.xlu0 %v5670_v54, %s4115_s24  ;;  %v2502_v51 = vsub.f32 %v5086_v27, %v2492_v35  ;;  %v5673_v27 = vpack.i.bf16 %v4877_v47, %v4855_v31 }
 0x7ec   : > { %v2516_v8 = vmul.f32 1.442695, %v2502_v51 }
 0x7ee   : > { %2820 = vrot.lane.b32.xlu2 %v4331_v50, %s4113_s11 }
 0x7f2   : > { %3704 = vrot.lane.b32.xlu0 %v5671_v21, %s4115_s24 }
 0x7fa   : > { %3714 = vrot.lane.b32.xlu0 %v5672_v56, %s5644_s16 }
 0x807   : > { %v2522_v5 = vpop.xlane.xlu0 %2521 }
 0x808   : > { %3857 = vrcp.f32 %v2522_v5 }
 0x809   : > { %3859 = vpow2.f32 %v2516_v8 }
 0x80e   : > { %v3858_v2 = vpop.eup %3857 }
 0x80f   : > { %v2552_v39 = vmul.f32 %v3858_v2, %v5100_v53  ;;  %v5158_v3 = vpop.eup %3859 }
 0x810   : > { %v2538_v34 = vsel %vm460_vm1, %v5158_v3, 0.0 }
 0x811   : > { %v2707_v50 = vpack.c.bf16 %v2552_v39, %v2552_v39  ;;  %v2562_v40 = vrot.slane %v2552_v39, 4 }
 0x813   : > { %3547 = vmatmul.msk.bf16.vlgmr.msra.gmra.mxu0 %vm460_vm1, %v2707_v50 }
 0x817   : > { %2539 = vadd.xlane.f32.xlu2 %v2538_v34 }
 0x829   : > { %v2525_v29 = vpop.xlane.xlu2 %2524 }
 0x82a   : > { %3861 = vrcp.f32 %v2525_v29 }
 0x82f   : > { %3699 = vrot.lane.b32.xlu2 %v5673_v27, %s5644_s16 }
 0x830   : > { %v3862_v6 = vpop.eup %3861 }
 0x831   : > { %v2553_v61 = vmul.f32 %v3862_v6, %v5104_v52 }
 0x833   : > { %v2708_v53 = vpack.c.bf16 %v2553_v61, %v2553_v61  ;;  %v2574_v5 = vrot.slane %v2553_v61, 4 }
 0x835   : > { %3548 = vmatmul.msk.bf16.vlgmr.msra.gmra.mxu1 %vm460_vm1, %v2708_v53 }
 0x836   : > { %v2534_v35 = vpop.xlane.xlu1 %2533 }
 0x837   : > { %3863 = vrcp.f32 %v2534_v35  ;;  %3734 = vrot.lane.b32.xlu2 %v5674_v41, %s4115_s24 }
 0x839   : > { %v2537_v47 = vpop.xlane.xlu0 %2536 }
 0x83d   : > { %v3864_v42 = vpop.eup %3863 }
 0x83e   : > { %v5174_v18 = vmul.f32 %v3864_v42, %v5108_v4 }
 0x83f   : > { %1467 = vrot.lane.b32.xlu2 %v4833_v63, %s5644_s16 }
 0x840   : > { %v2711_v31 = vpack.c.bf16 %v5174_v18, %v5174_v18 }
 0x841   : > { %v2528_v52 = vpop.xlane.xlu2 %2527 }
 0x842   : > { %3865 = vrcp.f32 %v2528_v52  ;;  %3551 = vmatmul.msk.bf16.vlgmr.msrb.gmra.mxu0 %vm460_vm1, %v2711_v31 }
 0x843   : > { %3867 = vrcp.f32 %v2537_v47 }
 0x844   : > { %v2543_v57 = vpop.xlane.xlu1 %2542 }
 0x845   : > { %3869 = vrcp.f32 %v2543_v57 }
 0x847   : > { %1475 = vrot.lane.b32.xlu2 %v4843_v14, %s4116_s13 }
 0x848   : > { %v3866_v0 = vpop.eup %3865 }
 0x849   : > { %v2554_v4 = vmul.f32 %v3866_v0, %v5117_v17  ;;  %v2531_v63 = vpop.xlane.xlu2 %2530  ;;  %v3868_v9 = vpop.eup %3867 }
 0x84a   : > { %3871 = vrcp.f32 %v2531_v63  ;;  %v2557_v14 = vmul.f32 %v3868_v9, %v5112_v36 }
 0x84b   : > { %v3870_v25 = vpop.eup %3869  ;;  %v2560_v37 = vrot.slane %v2554_v4, 4  ;;  %v2563_v43 = vsel %vm745_vm3, %v2554_v4, %v2562_v40  ;;  %v2709_v46 = vpack.c.bf16 %v2554_v4, %v2554_v4 }
 0x84c   : > { %v2559_v60 = vmul.f32 %v3870_v25, %v5121_v48  ;;  %v2842_v62 = vpop.permute.xlu0 %2841  ;;  %v2571_v56 = vperm.slane %v2563_v43, %v4518_v19  ;;  %v2712_v36 = vpack.c.bf16 %v2557_v14, %v2557_v14  ;;  %v2598_v63 = vrot.slane %v2557_v14, 4 }
 0x84d   : > { %v2561_v20 = vsel %vm745_vm3, %v2560_v37, %v2552_v39  ;;  %v2847_v54 = vsel %vm910_vm2, %v2842_v62, 0  ;;  %3549 = vmatmul.msk.bf16.vlgmr.msra.gmra.mxu2 %vm460_vm1, %v2709_v46  ;;  %v2586_v46 = vrot.slane %v5174_v18, 4 }
 0x84e   : > { %v2596_v17 = vrot.slane %v2559_v60, 4  ;;  %2856 = vmatpush.bf16.msrb.mxu2 %v2847_v54  ;;  %v2567_v39 = vperm.slane %v2561_v20, %v4518_v19  ;;  %v2622_v27 = vrot.slane %v2571_v56, 4  ;;  %v2599_v9 = vsel %vm745_vm3, %v2559_v60, %v2598_v63 }
 0x84f   : > { %v2607_v43 = vperm.slane %v2599_v9, %v4518_v19 }
 0x850   : > { %v3872_v21 = vpop.eup %3871  ;;  %v2597_v51 = vsel %vm745_vm3, %v2596_v17, %v2557_v14  ;;  %v2610_v42 = vrot.slane %v2567_v39, 4 }
 0x851   : > { %v2555_v8 = vmul.f32 %v3872_v21, %v5126_v55  ;;  %v2821_v48 = vpop.permute.xlu2 %2820  ;;  %v2603_v54 = vperm.slane %v2597_v51, %v4518_v19 }
 0x852   : > { %v2826_v2 = vsel %vm910_vm2, %v2821_v48, 0 }
 0x853   : > { %v2572_v50 = vrot.slane %v2555_v8, 4  ;;  %v2575_v34 = vsel %vm745_vm3, %v2555_v8, %v2574_v5  ;;  %v2710_v29 = vpack.c.bf16 %v2555_v8, %v2555_v8  ;;  %2835 = vmatpush.bf16.msrb.mxu1 %v2826_v2  ;;  %v2644_v5 = vrot.slane %v2607_v43, 4 }
 0x854   : > { %v2583_v6 = vperm.slane %v2575_v34, %v4518_v19  ;;  %v2632_v48 = vrot.slane %v2603_v54, 4 }
 0x855   : > { %3550 = vmatmul.msk.bf16.vlgmr.msra.gmra.mxu3 %vm460_vm1, %v2710_v29  ;;  %v2573_v53 = vsel %vm745_vm3, %v2572_v50, %v2553_v61  ;;  %v2714_v61 = vpack.c.bf16 %v2559_v60, %v2559_v60 }
 0x856   : > { %3552 = vmatmul.msk.bf16.vlgmr.msrb.gmra.mxu1 %vm460_vm1, %v2712_v36  ;;  %v2620_v55 = vrot.slane %v2583_v6, 4  ;;  %v2623_v35 = vsel %vm745_vm3, %v2583_v6, %v2622_v27  ;;  %v2579_v41 = vperm.slane %v2573_v53, %v4518_v19 }
 0x858   : > { %v2621_v31 = vsel %vm745_vm3, %v2620_v55, %v2571_v56  ;;  %v2611_v47 = vsel %vm745_vm3, %v2579_v41, %v2610_v42  ;;  %v2608_v52 = vrot.slane %v2579_v41, 4 }
 0x859   : > { %v5233_v36 = vperm.slane %v2621_v31, %v4561_v15 }
 0x85a   : > { %v5205_v57 = vsel %vm745_vm3, %v2608_v52, %v2567_v39  ;;  %v2619_v39 = vperm.slane %v2611_v47, %v4561_v15 }
 0x85c   : > { %v2863_v0 = vpop.permute.xlu1 %2862  ;;  %v2662_v53 = vrot.slane %v2619_v39, 4 }
 0x85d   : > { %v2868_v40 = vsel %vm910_vm2, %v2863_v0, 0 }
 0x85e   : > { %2877 = vmatpush.bf16.msrb.mxu3 %v2868_v40  ;;  %v2631_v40 = vperm.slane %v2623_v35, %v4561_v15 }
 0x865   : > { %3554 = vmatmul.msk.bf16.vlgmr.msrb.gmra.mxu3 %vm460_vm1, %v2714_v61 }
 0x88a   : > { %v2540_v4 = vpop.xlane.xlu2 %2539 }
 0x88b   : > { %3873 = vrcp.f32 %v2540_v4  ;;  %v2670_v4 = vrot.slane %v2631_v40, 4 }
 0x890   : > { %v2732_v25 = vpop.f32.mrf.mxu0 }
 0x891   : > { %v3874_v37 = vpop.eup %3873 }
 0x892   : > { %v2558_v62 = vmul.f32 %v3874_v37, %v5158_v3  ;;  %v5213_v20 = vpop.permute.xlu2 %3699 }
 0x894   : > { %v2584_v17 = vrot.slane %v2558_v62, 4  ;;  %v2587_v21 = vsel %vm745_vm3, %v2558_v62, %v2586_v46  ;;  %v2713_v56 = vpack.c.bf16 %v2558_v62, %v2558_v62 }
 0x895   : > { %v2595_v14 = vperm.slane %v2587_v21, %v4518_v19 }
 0x896   : > { %3553 = vmatmul.msk.bf16.vlgmr.msrb.gmra.mxu2 %vm460_vm1, %v2713_v56  ;;  %v2585_v60 = vsel %vm745_vm3, %v2584_v17, %v5174_v18 }
 0x897   : > { %v2645_v8 = vsel %vm745_vm3, %v2644_v5, %v2595_v14  ;;  %v2591_v3 = vperm.slane %v2585_v60, %v4518_v19  ;;  %v2646_v31 = vrot.slane %v2595_v14, 4 }
 0x898   : > { %v2734_v2 = vpop.f32.mrf.mxu0  ;;  %v5224_v51 = vperm.slane %v2645_v8, %v4561_v15 }
 0x899   : > { %v2634_v50 = vrot.slane %v2591_v3, 4  ;;  %v5228_v34 = vsel %vm745_vm3, %v2632_v48, %v2591_v3  ;;  %v2647_v0 = vsel %vm745_vm3, %v2607_v43, %v2646_v31 }
 0x89a   : > { %v5230_v29 = vpop.permute.xlu2 %3734  ;;  %v2664_v18 = vrot.slane %v5224_v51, 4  ;;  %v2655_v61 = vperm.slane %v2647_v0, %v4561_v15 }
 0x89b   : > { %v2635_v19 = vsel %vm745_vm3, %v2603_v54, %v2634_v50  ;;  %v5305_v50 = vperm.slane %v5228_v34, %v4561_v15 }
 0x89c   : > { %v2665_v27 = vsel %vm745_vm3, %v2664_v18, %v5233_v36  ;;  %v2643_v6 = vperm.slane %v2635_v19, %v4561_v15  ;;  %v2671_v63 = vsel %vm745_vm3, %v2655_v61, %v2670_v4  ;;  %v3702_v4 = vunpack.i.h.bf16 %v5213_v20 }
 0x89d   : > { %2685 = vrot.lane.b32.xlu2 %v2665_v27, %s4117_s10 }
 0x89e   : > { %v2663_v55 = vsel %vm745_vm3, %v2643_v6, %v2662_v53  ;;  %v2660_v41 = vrot.slane %v2643_v6, 4 }
 0x8a0   : > { %v5243_v42 = vsel %vm745_vm3, %v2660_v41, %v2619_v39  ;;  %v5301_v39 = vperm.slane %v5205_v57, %v4561_v15 }
 0x8a2   : > { %v1468_v47 = vpop.permute.xlu2 %1467  ;;  %v2658_v18 = vrot.slane %v5301_v39, 4 }
 0x8a3   : > { %v5247_v52 = vsel %vm460_vm1, %v4846_v11, %v1468_v47 }
 0x8a5   : > { %1487 = vrot.lane.b32.xlu2 %v4849_v24, %s4110_s17 }
 0x8aa   : > { %v5275_v56 = vpop.permute.xlu2 %1475 }
 0x8ad   : > { %2697 = vrot.lane.b32.xlu2 %v2671_v63, %s4105_s20  ;;  %v2995_v63 = vsel %vm460_vm1, %v4632_v38, %v3702_v4 }
 0x8b2   : > { %v2753_v9 = vpop.f32.mrf.mxu1 }
 0x8b3   : > { %v3693_v37 = vpack.i.bf16 %v2753_v9, %v2732_v25  ;;  %v5677_v9 = vld [vmem:[#allocation19_spill] sm:$0xff] }
 0x8b5   : > { %3694 = vrot.lane.b32.xlu1 %v3693_v37, %s4116_s13  ;;  %858 = vrot.lane.b32.xlu2 %v4600_v7, %s5644_s16 }
 0x8ba   : > { %v2755_v11 = vpop.f32.mrf.mxu1 }
 0x8bd   : > { %2074 = vrot.lane.b32.xlu2 %v5043_v22, %s4115_s24 }
 0x8bf   : > { %v2816_v24 = vpop.f32.mrf.mxu0 }
 0x8c5   : > { %870 = vrot.lane.b32.xlu2 %v4603_v12, %s4117_s10  ;;  %v5675_v12 = vpack.i.bf16 %v5067_v49, %v5058_v45  ;;  %v3579_v45 = vld [vmem:[#allocation7 + $0x8] sm:$0xff]  ;;  %v2668_v49 = vrot.slane %v2655_v61, 4 }
 0x8c6   : > { %3058 = vmatpush.bf16.msra.mxu0 %v3579_v45  ;;  %v5681_v45 = vld [vmem:[#allocation22_spill] sm:$0xff] }
 0x8c7   : > { %v2818_v35 = vpop.f32.mrf.mxu0  ;;  %v2669_v8 = vsel %vm745_vm3, %v2668_v49, %v2631_v40 }
 0x8cd   : > { %2086 = vrot.lane.b32.xlu2 %v5014_v26, %s4113_s11  ;;  %v5676_v26 = vpack.i.bf16 %v4883_v33, %v4886_v44  ;;  %v3578_v44 = vld [vmem:[#allocation7] sm:$0xff] }
 0x8ce   : > { %3059 = vmatpush.bf16.msra.mxu0 %v3578_v44 }
 0x8d0   : > { %v2774_v43 = vpop.f32.mrf.mxu2 }
 0x8d3   : > { %v2837_v46 = vpop.f32.mrf.mxu1 }
 0x8d4   : > { %v3723_v25 = vpack.i.bf16 %v2837_v46, %v2816_v24 }
 0x8d6   : > { %3724 = vrot.lane.b32.xlu0 %v3723_v25, %s4116_s13 }
 0x8d8   : > { %v2776_v62 = vpop.f32.mrf.mxu2  ;;  %v2795_v54 = vpop.f32.mrf.mxu3 }
 0x8d9   : > { %v3708_v7 = vpack.i.bf16 %v2795_v54, %v2774_v43  ;;  %v5679_v62 = vld [vmem:[#allocation16_spill] sm:$0xff] }
 0x8db   : > { %3709 = vrot.lane.b32.xlu1 %v3708_v7, %s4116_s13  ;;  %v2839_v17 = vpop.f32.mrf.mxu1 }
 0x8e0   : > { %v2797_v22 = vpop.f32.mrf.mxu3 }
 0x8e3   : > { %3719 = vrot.lane.b32.xlu1 %v5675_v12, %s4115_s24 }
 0x8e8   : > { %v2879_v21 = vpop.f32.mrf.mxu3 }
 0x8eb   : > { %3729 = vrot.lane.b32.xlu1 %v5676_v26, %s5644_s16  ;;  %v5680_v26 = vld [vmem:[#allocation20_spill] sm:$0xff] }
 0x8f0   : > { %v2881_v5 = vpop.f32.mrf.mxu3 }
 0x8f3   : > { %1471 = vrot.lane.b32.xlu1 %v4853_v13, %s4115_s24 }
 0x8f7   : > { %v5279_v14 = vpop.permute.xlu2 %2685 }
 0x8fb   : > { %2681 = vrot.lane.b32.xlu1 %v2663_v55, %s4116_s13 }
 0x8ff   : > { %v5282_v60 = vpop.permute.xlu2 %1487 }
 0x903   : > { %1483 = vrot.lane.b32.xlu1 %v4827_v58, %s4113_s11  ;;  %v3685_v58 = vpop.permute.xlu0 %3684 }
 0x904   : > { %v3687_v19 = vunpack.i.h.bf16 %v3685_v58  ;;  %v3686_v27 = vunpack.i.l.bf16 %v3685_v58 }
 0x906   : > { %v2993_v34 = vsel %vm460_vm1, %v4630_v28, %v3687_v19  ;;  %v2992_v53 = vsel %vm460_vm1, %v4628_v30, %v3686_v27  ;;  %v2666_v30 = vrot.slane %v5233_v36, 4  ;;  %v5678_v36 = vld [vmem:[#allocation18_spill] sm:$0xff] }
 0x907   : > { %v5286_v33 = vpop.permute.xlu2 %2697 }
 0x908   : > { %v2667_v28 = vsel %vm745_vm3, %v5224_v51, %v2666_v30 }
 0x90b   : > { %2693 = vrot.lane.b32.xlu1 %v2669_v8, %s4110_s17 }
 0x90f   : > { %v859_v13 = vpop.permute.xlu2 %858 }
 0x910   : > { %v5292_v3 = vsel %vm460_vm1, %v4611_v10, %v859_v13 }
 0x913   : > { %2070 = vrot.lane.b32.xlu1 %v5024_v59, %s5644_s16  ;;  %v3690_v59 = vpop.permute.xlu0 %3689 }
 0x914   : > { %v3692_v57 = vunpack.i.h.bf16 %v3690_v59  ;;  %v3691_v6 = vunpack.i.l.bf16 %v3690_v59 }
 0x916   : > { %v3000_v41 = vsel %vm886_vm4, %v2992_v53, %v3691_v6  ;;  %v3001_v31 = vsel %vm886_vm4, %v2993_v34, %v3692_v57  ;;  %v5683_v34 = vld [vmem:[#allocation26_spill] sm:$0xff] }
 0x919   : > { %v2858_v48 = vpop.f32.mrf.mxu2 }
 0x91a   : > { %v3738_v2 = vpack.i.bf16 %v2879_v21, %v2858_v48  ;;  %v5682_v48 = vld [vmem:[#allocation24_spill] sm:$0xff] }
 0x91b   : > { %2078 = vrot.lane.b32.xlu1 %v5034_v32, %s4116_s13  ;;  %v2659_v32 = vsel %vm745_vm3, %v5305_v50, %v2658_v18  ;;  %v3705_v61 = vpop.permute.xlu0 %3704 }
 0x91c   : > { %3739 = vrot.lane.b32.xlu0 %v3738_v2, %s4116_s13  ;;  %v3707_v51 = vunpack.i.h.bf16 %v3705_v61  ;;  %v3706_v37 = vunpack.i.l.bf16 %v3705_v61  ;;  %v3736_v61 = vunpack.i.l.bf16 %v5230_v29 }
 0x91e   : > { %v3003_v43 = vsel %vm886_vm4, %v2995_v63, %v3707_v51 }
 0x921   : > { %v2860_v10 = vpop.f32.mrf.mxu2 }
 0x923   : > { %874 = vrot.lane.b32.xlu1 %v4590_v1, %s4113_s11  ;;  %v3715_v38 = vpop.permute.xlu0 %3714 }
 0x924   : > { %2673 = vrot.lane.b32.xlu0 %v2659_v32, %s5644_s16  ;;  %v3717_v7 = vunpack.i.h.bf16 %v3715_v38  ;;  %v3716_v17 = vunpack.i.l.bf16 %v3715_v38  ;;  %s4011_s16 = scalar_lea.hbm %s5643_s8, 32 }
 0x926   : > { %v2997_v5 = vsel %vm460_vm1, %v5680_v26, %v3717_v7  ;;  %v2996_v49 = vsel %vm460_vm1, %v5681_v45, %v3716_v17  ;;  %v3893_v17 = vld [vmem:[%s4267_s18] sm:$0xff] }
 0x927   : > { %v3695_v15 = vpop.permute.xlu1 %3694 }
 0x928   : > { %v3697_v55 = vunpack.i.h.bf16 %v3695_v15  ;;  %v3696_v1 = vunpack.i.l.bf16 %v3695_v15 }
 0x92a   : > { %v3008_v47 = vsel %vm888_vm5, %v3000_v41, %v3696_v1  ;;  %v3009_v0 = vsel %vm888_vm5, %v3001_v31, %v3697_v55  ;;  %v2075_v41 = vpop.permute.xlu2 %2074  ;;  %v5684_v31 = vld [vmem:[#allocation23_spill] sm:$0xff] }
 0x92b   : > { %v3016_v40 = vpack.c.bf16 %v3009_v0, %v3008_v47  ;;  %v5685_v0 = vld [vmem:[#allocation21_spill] sm:$0xff] }
 0x92c   : > { %2677 = vrot.lane.b32.xlu0 %v5243_v42, %s4115_s24  ;;  %v3701_v42 = vunpack.i.l.bf16 %v5213_v20 }
 0x92d   : > { %3563 = vmatmul.msk.bf16.vlgmr.msra.gmra.mxu0 %vm405_vm0, %v3016_v40 }
 0x934   : > { %1479 = vrot.lane.b32.xlu0 %v4837_v23, %s4117_s10  ;;  %v2994_v23 = vsel %vm460_vm1, %v5677_v9, %v3701_v42 }
 0x93c   : > { %2689 = vrot.lane.b32.xlu0 %v2667_v28, %s4113_s11 }
 0x944   : > { %1491 = vrot.lane.b32.xlu0 %v4840_v16, %s4105_s20  ;;  %v3002_v16 = vsel %vm886_vm4, %v2994_v23, %v3706_v37 }
 0x948   : > { %v3725_v21 = vpop.permute.xlu0 %3724 }
 0x949   : > { %v3727_v13 = vunpack.i.h.bf16 %v3725_v21  ;;  %v3726_v58 = vunpack.i.l.bf16 %v3725_v21 }
 0x94c   : > { %862 = vrot.lane.b32.xlu0 %v5678_v36, %s4115_s24 }
 0x94d   : > { %v3710_v11 = vpop.permute.xlu1 %3709 }
 0x94e   : > { %v3712_v24 = vunpack.i.h.bf16 %v3710_v11  ;;  %v3711_v35 = vunpack.i.l.bf16 %v3710_v11 }
 0x950   : > { %v3010_v20 = vsel %vm888_vm5, %v3002_v16, %v3711_v35  ;;  %v3011_v46 = vsel %vm888_vm5, %v3003_v43, %v3712_v24  ;;  %v2656_v24 = vrot.slane %v5305_v50, 4 }
 0x951   : > { %v3017_v25 = vpack.c.bf16 %v3011_v46, %v3010_v20 }
 0x953   : > { %3564 = vmatmul.msk.bf16.gmra.mxu0 %vm405_vm0, %v3017_v25 }
 0x954   : > { %866 = vrot.lane.b32.xlu0 %v5679_v62, %s4116_s13  ;;  %s3338_s13 = scalar_lea.hbm %s5643_s8, %s3581_s1  ;;  %s3310_s1 = scalar_lea.sflag [#allocation10], %s4261_s19 }
 0x955   : > { %v3720_v54 = vpop.permute.xlu1 %3719  ;;  %s3342_s22 = sshll.u32 %s3338_s13, 4  ;;  %s3343_s22 = int_to_ptr.hbm [resolvable:$true] %s3342_s22 }
 0x956   : > { %v3722_v22 = vunpack.i.h.bf16 %v3720_v54  ;;  %v3721_v12 = vunpack.i.l.bf16 %v3720_v54 }
 0x958   : > { %v3004_v44 = vsel %vm886_vm4, %v2996_v49, %v3721_v12  ;;  %v3005_v8 = vsel %vm886_vm4, %v2997_v5, %v3722_v22 }
 0x959   : > { %v3012_v10 = vsel %vm888_vm5, %v3004_v44, %v3726_v58  ;;  %v3013_v18 = vsel %vm888_vm5, %v3005_v8, %v3727_v13  ;;  %v3894_v44 = vld [vmem:[%s4267_s18 + $0x8] sm:$0xff] }
 0x95a   : > { %v3018_v59 = vpack.c.bf16 %v3013_v18, %v3012_v10  ;;  %v871_v18 = vpop.permute.xlu2 %870 }
 0x95c   : > { %2082 = vrot.lane.b32.xlu0 %v5682_v48, %s4117_s10  ;;  %s369_s10 = scalar_lea.vmem [#allocation9], %s3478_s3  ;;  %s4005_s3 = sshra.s32 %s3343_s22, 4  ;;  %s4006_s3 = int_to_ptr.hbm [resolvable:$true] %s4005_s3 }
 0x95d   : > { %v3730_v2 = vpop.permute.xlu1 %3729  ;;  %s3340_s21 = sshll.u32 %s369_s10, 4  ;;  %s4007_s11 = scalar_lea.hbm %s4006_s3, 16  ;;  %s3341_s21 = int_to_ptr.vmem [resolvable:$true] %s3340_s21 }
 0x95e   : > { %v3732_v55 = vunpack.i.h.bf16 %v3730_v2  ;;  %v3731_v1 = vunpack.i.l.bf16 %v3730_v2  ;;  %p4008_p1 = scmp.ne.s32.totalorder %s4006_s3, %s4007_s11  ;;  %p4012_p11 = scmp.lt.s32.totalorder %s4006_s3, %s5643_s8 }
 0x95f   : > { %p4013_p2 = scmp.lt.s32.totalorder %s4011_s16, %s4007_s11 }
 0x960   : > { %v2999_v47 = vsel %vm460_vm1, %v5684_v31, %v3732_v55  ;;  %v2998_v40 = vsel %vm460_vm1, %v5685_v0, %v3731_v1  ;;  %v3895_v55 = vld [vmem:[%s4267_s18 + $0x10] sm:$0xff]  ;;  %v3896_v0 = vld [vmem:[%s4267_s18 + $0x18] sm:$0xff]  ;;  %p4009_p4 = pnand %p4008_p1, %p4231_p3 }
 0x961   : > { %v3006_v23 = vsel %vm886_vm4, %v2998_v40, %v3736_v61  ;;  %v3897_v61 = vld [vmem:[%s4267_s18 + $0x20] sm:$0xff]  ;;  %p4014_p9 = por %p4013_p2, %p4012_p11 }
 0x962   : > { %p4010_p8 = pneg %p4009_p4 }
 0x963   : > { %3565 = vmatmul.msk.bf16.gmra.mxu0 %vm405_vm0, %v3018_v59 }
 0x964   : > { %p4015_p10 = pnand %p4014_p9, %p4010_p8 }
 0x965   : > { %v1472_v32 = vpop.permute.xlu1 %1471 }
 0x966   : > { %v1495_v19 = vsel %vm886_vm4, %v5247_v52, %v1472_v32  ;;  %v3737_v52 = vunpack.i.h.bf16 %v5230_v29  ;;  %v2657_v29 = vsel %vm745_vm3, %v2656_v24, %v5301_v39  ;;  %v5387_v39 = vld [vmem:[%s5639_s4] ss:$0 sm:$0xff] }
 0x967   : > { %v1496_v38 = vsel %vm888_vm5, %v1495_v19, %v5275_v56 }
 0x968   : > { %v3007_v36 = vsel %vm886_vm4, %v2999_v47, %v3737_v52 }
 0x96d   : > { %v2682_v27 = vpop.permute.xlu1 %2681 }
 0x975   : > { %v1484_v57 = vpop.permute.xlu1 %1483 }
 0x97d   : > { %v2694_v6 = vpop.permute.xlu1 %2693 }
 0x985   : > { %v2071_v15 = vpop.permute.xlu1 %2070 }
 0x986   : > { %v2097_v53 = vsel %vm460_vm1, %v5683_v34, %v2071_v15 }
 0x987   : > { %v2098_v30 = vsel %vm886_vm4, %v2097_v53, %v2075_v41 }
 0x98d   : > { %v2079_v28 = vpop.permute.xlu1 %2078 }
 0x98e   : > { %v2099_v4 = vsel %vm888_vm5, %v2098_v30, %v2079_v28  ;;  %v3740_v42 = vpop.permute.xlu0 %3739 }
 0x98f   : > { %v3742_v63 = vunpack.i.h.bf16 %v3740_v42  ;;  %v3741_v9 = vunpack.i.l.bf16 %v3740_v42 }
 0x991   : > { %v3015_v51 = vsel %vm888_vm5, %v3007_v36, %v3742_v63  ;;  %v3014_v37 = vsel %vm888_vm5, %v3006_v23, %v3741_v9  ;;  %v3898_v23 = vld [vmem:[%s4267_s18 + $0x28] sm:$0xff] }
 0x992   : > { %v3019_v11 = vpack.c.bf16 %v3015_v51, %v3014_v37  ;;  %v5686_v37 = vld [vmem:[#allocation15_spill] sm:$0xff] }
 0x994   : > { %3566 = vmatmul.msk.bf16.gmra.mxu0 %vm405_vm0, %v3019_v11 }
 0x995   : > { %v875_v19 = vpop.permute.xlu1 %874 }
 0x996   : > { %v2674_v35 = vpop.permute.xlu0 %2673 }
 0x997   : > { %v2700_v16 = vsel %vm460_vm1, %v2657_v29, %v2674_v35  ;;  %v3899_v29 = vld [vmem:[%s4267_s18 + $0x30] sm:$0xff] }
 0x99e   : > { %v2678_v43 = vpop.permute.xlu0 %2677 }
 0x99f   : > { %v2701_v20 = vsel %vm886_vm4, %v2700_v16, %v2678_v43 }
 0x9a0   : > { %v2702_v46 = vsel %vm888_vm5, %v2701_v20, %v2682_v27 }
 0x9a1   : > { %v2703_v56 = vsel %vm405_vm0, %v2702_v46, %v5279_v14  ;;  %v3900_v46 = vld [vmem:[%s4267_s18 + $0x38] sm:$0xff]  ;;  %s3580_s18 = sshll.u32 %s4186_s9, 6 }
 0x9a6   : > { %v1480_v25 = vpop.permute.xlu0 %1479 }
 0x9a7   : > { %v1497_v50 = vsel %vm405_vm0, %v1496_v38, %v1480_v25 }
 0x9a8   : > { %v1498_v62 = vsel %vm891_vm6, %v1497_v50, %v1484_v57  ;;  %v5687_v50 = vld [vmem:[#allocation17_spill] sm:$0xff] }
 0x9a9   : > { %v1499_v14 = vsel %vm893_vm7, %v1498_v62, %v5282_v60  ;;  %v4118_v62 = vmov 32.0  }
 0x9aa   : > { %v3061_v54 = vpop.f32.mrf.mxu0  ;;  %3875 = vrcp.f32 %v4118_v62 }
 0x9ab   : > { %v3062_v7 = vadd.f32 %v5387_v39, %v3061_v54 }
 0x9ad   : > { %v5392_v22 = vadd.f32 %v3893_v17, %v3062_v7  ;;  %v5688_v17 = vld [vmem:[#allocation27_spill] sm:$0xff] }
 0x9ae   : > { %v2690_v12 = vpop.permute.xlu0 %2689 }
 0x9af   : > { %v2704_v21 = vsel %vm891_vm6, %v2703_v56, %v2690_v12  ;;  %v3089_v26 = vsel %vm405_vm0, %v5392_v22, 0.0 }
 0x9b0   : > { %v5400_v5 = vsel %vm893_vm7, %v2704_v21, %v2694_v6  ;;  %3090 = vadd.xlane.f32.xlu1 %v3089_v26  ;;  %v2087_v6 = vpop.permute.xlu2 %2086  ;;  %v3876_v54 = vpop.eup %3875 }
 0x9b1   : > { %v3114_v7 = vmul.f32 32.0, %v3876_v54  ;;  %vm3118_vm9 = vweird.f32 %v3876_v54 }
 0x9b2   : > { %v3063_v45 = vpop.f32.mrf.mxu0 }
 0x9b3   : > { %v3064_v49 = vadd.f32 %v5387_v39, %v3063_v45  ;;  %v3115_v56 = vsub.f32 1.0, %v3114_v7 }
 0x9b5   : > { %v5404_v8 = vadd.f32 %v3894_v44, %v3064_v49  ;;  %v3116_v12 = vmul.f32 %v3876_v54, %v3115_v56 }
 0x9b6   : > { %v1492_v13 = vpop.permute.xlu0 %1491 }
 0x9b7   : > { %v5409_v58 = vsel %vm895_vm8, %v1499_v14, %v1492_v13  ;;  %v3092_v48 = vsel %vm405_vm0, %v5404_v8, 0.0  ;;  %v3117_v21 = vadd.f32 %v3876_v54, %v3116_v12 }
 0x9b8   : > { %3093 = vadd.xlane.f32.xlu2 %v3092_v48 }
 0x9b9   : > { %v5448_v26 = vsel %vm3118_vm9, %v3876_v54, %v3117_v21 }
 0x9be   : > { %v863_v2 = vpop.permute.xlu0 %862 }
 0x9bf   : > { %v887_v10 = vsel %vm886_vm4, %v5292_v3, %v863_v2 }
 0x9c6   : > { %v867_v59 = vpop.permute.xlu0 %866 }
 0x9c7   : > { %v889_v32 = vsel %vm888_vm5, %v887_v10, %v867_v59 }
 0x9c8   : > { %v890_v60 = vsel %vm405_vm0, %v889_v32, %v871_v18 }
 0x9c9   : > { %v5418_v27 = vsel %vm891_vm6, %v890_v60, %v875_v19 }
 0x9ce   : > { %v2083_v57 = vpop.permute.xlu0 %2082 }
 0x9cf   : > { %v2100_v15 = vsel %vm405_vm0, %v2099_v4, %v2083_v57 }
 0x9d0   : > { %v3066_v34 = vpop.f32.mrf.mxu0  ;;  %v5422_v53 = vsel %vm891_vm6, %v2100_v15, %v2087_v6 }
 0x9d1   : > { %v3067_v3 = vadd.f32 %v5387_v39, %v3066_v34 }
 0x9d3   : > { %v3083_v1 = vadd.f32 %v3895_v55, %v3067_v3 }
 0x9d5   : > { %v3095_v41 = vsel %vm405_vm0, %v3083_v1, 0.0 }
 0x9d6   : > { %3096 = vadd.xlane.f32.xlu0 %v3095_v41 }
 0x9d8   : > { %v3068_v31 = vpop.f32.mrf.mxu0 }
 0x9d9   : > { %v3069_v47 = vadd.f32 %v5387_v39, %v3068_v31 }
 0x9db   : > { %v3084_v40 = vadd.f32 %v3896_v0, %v3069_v47 }
 0x9dd   : > { %v3098_v30 = vsel %vm405_vm0, %v3084_v40, 0.0 }
 0x9de   : > { %3099 = vadd.xlane.f32.xlu2 %v3098_v30 }
 0x9e0   : > { %v3071_v28 = vpop.f32.mrf.mxu0 }
 0x9e1   : > { %v3072_v52 = vadd.f32 %v5387_v39, %v3071_v28 }
 0x9e3   : > { %v3085_v4 = vadd.f32 %v3897_v61, %v3072_v52  ;;  %v2706_v52 = vsel %vm895_vm8, %v5400_v5, %v5286_v33 }
 0x9e5   : > { %v3101_v42 = vsel %vm405_vm0, %v3085_v4, 0.0 }
 0x9e6   : > { %3102 = vadd.xlane.f32.xlu1 %v3101_v42 }
 0x9e8   : > { %v3073_v63 = vpop.f32.mrf.mxu0 }
 0x9e9   : > { %v3074_v9 = vadd.f32 %v5387_v39, %v3073_v63 }
 0x9eb   : > { %v3086_v36 = vadd.f32 %v3898_v23, %v3074_v9 }
 0x9ed   : > { %v3104_v51 = vsel %vm405_vm0, %v3086_v36, 0.0 }
 0x9ee   : > { %3105 = vadd.xlane.f32.xlu2 %v3104_v51 }
 0xa06   : > { %882 = vrot.lane.b32.xlu2 %v5686_v37, %s4105_s20 }
 0xa11   : > { %v3076_v11 = vpop.f32.mrf.mxu0 }
 0xa12   : > { %v3077_v24 = vadd.f32 %v5387_v39, %v3076_v11 }
 0xa14   : > { %v3087_v35 = vadd.f32 %v3899_v29, %v3077_v24 }
 0xa16   : > { %v3107_v16 = vsel %vm405_vm0, %v3087_v35, 0.0 }
 0xa17   : > { %3108 = vadd.xlane.f32.xlu0 %v3107_v16 }
 0xa19   : > { %v3078_v43 = vpop.f32.mrf.mxu0 }
 0xa1a   : > { %v3079_v20 = vadd.f32 %v5387_v39, %v3078_v43  ;;  %v5689_v43 = vld [vmem:[#allocation25_spill] sm:$0xff] }
 0xa1c   : > { %v3088_v38 = vadd.f32 %v3900_v46, %v3079_v20 }
 0xa1e   : > { %v3110_v25 = vsel %vm405_vm0, %v3088_v38, 0.0 }
 0xa1f   : > { %3111 = vadd.xlane.f32.xlu1 %v3110_v25 }
 0xa23   : > { %v3091_v18 = vpop.xlane.xlu1 %3090 }
 0xa24   : > { %v3120_v32 = vmul.f32 %v5448_v26, %v3091_v18  ;;  %v5524_v18 = vld [vmem:[%s5640_s5] ss:$0 sm:$0xff] }
 0xa2b   : > { %878 = vrot.lane.b32.xlu0 %v5687_v50, %s4110_s17  ;;  %v3094_v39 = vpop.xlane.xlu2 %3093 }
 0xa2c   : > { %v3121_v45 = vmul.f32 %v5448_v26, %v3094_v39 }
 0xa2e   : > { %v5453_v14 = vsub.f32 %v5404_v8, %v3121_v45  ;;  %v5465_v8 = vsub.f32 %v5392_v22, %v3120_v32 }
 0xa30   : > { %v3137_v10 = vmul.f32 %v5453_v14, %v5453_v14  ;;  %v3136_v34 = vmul.f32 %v5465_v8, %v5465_v8 }
 0xa32   : > { %v3147_v59 = vsel %vm405_vm0, %v3137_v10, 0.0  ;;  %v3144_v41 = vsel %vm405_vm0, %v3136_v34, 0.0 }
 0xa38   : > { %2090 = vrot.lane.b32.xlu1 %v5688_v17, %s4110_s17  ;;  %s3322_s17 = sshll.u32 %s5539_s23, 4  ;;  %s3323_s17 = int_to_ptr.vmem [resolvable:$true] %s3322_s17 }
 0xa49   : > { %v3097_v49 = vpop.xlane.xlu0 %3096 }
 0xa4a   : > { %v3122_v44 = vmul.f32 %v5448_v26, %v3097_v49 }
 0xa4c   : > { %v5455_v13 = vsub.f32 %v3083_v1, %v3122_v44 }
 0xa4e   : > { %v3138_v48 = vmul.f32 %v5455_v13, %v5455_v13 }
 0xa50   : > { %v3150_v2 = vsel %vm405_vm0, %v3138_v48, 0.0 }
 0xa51   : > { %3151 = vadd.xlane.f32.xlu2 %v3150_v2  ;;  %v3100_v19 = vpop.xlane.xlu2 %3099 }
 0xa52   : > { %v3123_v15 = vmul.f32 %v5448_v26, %v3100_v19  ;;  %v5529_v19 = vld [vmem:[%s5641_s6] ss:$0 sm:$0xff] }
 0xa54   : > { %v5476_v1 = vsub.f32 %v3084_v40, %v3123_v15 }
 0xa55   : > { %3148 = vadd.xlane.f32.xlu0 %v3147_v59 }
 0xa56   : > { %v3139_v0 = vmul.f32 %v5476_v1, %v5476_v1 }
 0xa58   : > { %v3153_v40 = vsel %vm405_vm0, %v3139_v0, 0.0 }
 0xa59   : > { %v3103_v60 = vpop.xlane.xlu1 %3102 }
 0xa5a   : > { %v3124_v57 = vmul.f32 %v5448_v26, %v3103_v60 }
 0xa5c   : > { %v5468_v6 = vsub.f32 %v3085_v4, %v3124_v57 }
 0xa5e   : > { %v3140_v3 = vmul.f32 %v5468_v6, %v5468_v6 }
 0xa60   : > { %v3156_v55 = vsel %vm405_vm0, %v3140_v3, 0.0 }
 0xa61   : > { %v3106_v22 = vpop.xlane.xlu2 %3105  ;;  %3157 = vadd.xlane.f32.xlu0 %v3156_v55 }
 0xa62   : > { %v3125_v31 = vmul.f32 %v5448_v26, %v3106_v22  ;;  %3145 = vadd.xlane.f32.xlu1 %v3144_v41 }
 0xa64   : > { %v5480_v47 = vsub.f32 %v3086_v36, %v3125_v31 }
 0xa66   : > { %v3141_v30 = vmul.f32 %v5480_v47, %v5480_v47 }
 0xa68   : > { %v3159_v28 = vsel %vm405_vm0, %v3141_v30, 0.0 }
 0xa69   : > { %3160 = vadd.xlane.f32.xlu2 %v3159_v28  ;;  %v883_v11 = vpop.permute.xlu2 %882 }
 0xa6a   : > { %3154 = vadd.xlane.f32.xlu1 %v3153_v40 }
 0xa81   : > { %2888 = vrot.lane.b32.xlu2 %v2706_v52, %s4102_s25 }
 0xa8a   : > { %v3109_v61 = vpop.xlane.xlu0 %3108 }
 0xa8b   : > { %v3126_v4 = vmul.f32 %v5448_v26, %v3109_v61 }
 0xa8d   : > { %v5493_v42 = vsub.f32 %v3087_v35, %v3126_v4 }
 0xa8f   : > { %v3142_v63 = vmul.f32 %v5493_v42, %v5493_v42 }
 0xa91   : > { %v3162_v9 = vsel %vm405_vm0, %v3142_v63, 0.0 }
 0xa92   : > { %3163 = vadd.xlane.f32.xlu1 %v3162_v9  ;;  %v3112_v23 = vpop.xlane.xlu1 %3111 }
 0xa93   : > { %v3127_v36 = vmul.f32 %v5448_v26, %v3112_v23 }
 0xa95   : > { %v5499_v51 = vsub.f32 %v3088_v38, %v3127_v36 }
 0xa97   : > { %v3143_v33 = vmul.f32 %v5499_v51, %v5499_v51 }
 0xa99   : > { %v3165_v5 = vsel %vm405_vm0, %v3143_v33, 0.0 }
 0xa9a   : > { %3166 = vadd.xlane.f32.xlu0 %v3165_v5 }
 0xa9d   : > { %v879_v37 = vpop.permute.xlu0 %878 }
 0xa9e   : > { %v894_v24 = vsel %vm893_vm7, %v5418_v27, %v879_v37 }
 0xa9f   : > { %v5507_v29 = vsel %vm895_vm8, %v894_v24, %v883_v11 }
 0xaaa   : > { %v2091_v35 = vpop.permute.xlu1 %2090 }
 0xaab   : > { %v5511_v16 = vsel %vm893_vm7, %v5422_v53, %v2091_v35  ;;  %2884 = vrot.lane.b32.xlu1 %v5409_v58, %s4102_s25 }
 0xaae   : > { %2094 = vrot.lane.b32.xlu0 %v5689_v43, %s4105_s20  ;;  %s3321_s20 = scalar_lea.hbm %s5642_s7, %s3580_s18 }
 0xac4   : > { %v3152_v20 = vpop.xlane.xlu2 %3151 }
 0xac5   : > { %v3170_v46 = vmul.f32 %v3152_v20, %v5448_v26 }
 0xac7   : > { %v3178_v38 = vadd.f32 1e-05, %v3170_v46 }
 0xac8   : > { %v3149_v25 = vpop.xlane.xlu0 %3148 }
 0xac9   : > { %3877 = vrsqrt.f32 %v3178_v38  ;;  %v3169_v27 = vmul.f32 %v3149_v25, %v5448_v26  ;;  %vm3210_vm11 = vweird.f32 %v3178_v38 }
 0xacb   : > { %v3177_v50 = vadd.f32 1e-05, %v3169_v27 }
 0xacd   : > { %3879 = vrsqrt.f32 %v3177_v50  ;;  %vm3200_vm14 = vweird.f32 %v3177_v50 }
 0xacf   : > { %v3878_v62 = vpop.eup %3877 }
 0xad0   : > { %v3205_v54 = vmul.f32 %v3878_v62, %v3178_v38  ;;  %vm3211_vm10 = vweird.f32 %v3878_v62 }
 0xad1   : > { %vm3212_vm12 = vmor %vm3210_vm11, %vm3211_vm10 }
 0xad2   : > { %v3206_v53 = vmul.f32 %v3878_v62, %v3205_v54 }
 0xad3   : > { %v3880_v7 = vpop.eup %3879 }
 0xad4   : > { %v3207_v17 = vmul.f32 0.5, %v3206_v53  ;;  %v3195_v56 = vmul.f32 %v3880_v7, %v3177_v50  ;;  %v3158_v58 = vpop.xlane.xlu0 %3157  ;;  %vm3201_vm13 = vweird.f32 %v3880_v7 }
 0xad5   : > { %v3172_v12 = vmul.f32 %v3158_v58, %v5448_v26  ;;  %v3146_v21 = vpop.xlane.xlu1 %3145  ;;  %vm3202_vm15 = vmor %vm3200_vm14, %vm3201_vm13 }
 0xad6   : > { %v3208_v39 = vsub.f32 1.5, %v3207_v17  ;;  %v3196_v45 = vmul.f32 %v3880_v7, %v3195_v56  ;;  %v3168_v49 = vmul.f32 %v3146_v21, %v5448_v26 }
 0xad7   : > { %v3180_v44 = vadd.f32 1e-05, %v3172_v12 }
 0xad8   : > { %v3209_v48 = vmul.f32 %v3878_v62, %v3208_v39  ;;  %v3197_v2 = vmul.f32 0.5, %v3196_v45  ;;  %v3176_v10 = vadd.f32 1e-05, %v3168_v49 }
 0xad9   : > { %3881 = vrsqrt.f32 %v3180_v44  ;;  %vm3230_vm3 = vweird.f32 %v3180_v44 }
 0xada   : > { %v3213_v59 = vsel %vm3212_vm12, %v3878_v62, %v3209_v48  ;;  %v3198_v32 = vsub.f32 1.5, %v3197_v2  ;;  %3883 = vrsqrt.f32 %v3176_v10  ;;  %vm3190_vm5 = vweird.f32 %v3176_v10 }
 0xadb   : > { %v3266_v60 = vmul.f32 %v3213_v59, %v5455_v13 }
 0xadc   : > { %v3199_v57 = vmul.f32 %v3880_v7, %v3198_v32  ;;  %v3161_v15 = vpop.xlane.xlu2 %3160 }
 0xadd   : > { %v3278_v34 = vmul.f32 %v5524_v18, %v3266_v60  ;;  %v3173_v3 = vmul.f32 %v3161_v15, %v5448_v26  ;;  %v3155_v55 = vpop.xlane.xlu1 %3154 }
 0xade   : > { %v3203_v22 = vsel %vm3202_vm15, %v3880_v7, %v3199_v57  ;;  %v3171_v41 = vmul.f32 %v3155_v55, %v5448_v26 }
 0xadf   : > { %v3882_v31 = vpop.eup %3881  ;;  %v3290_v0 = vadd.f32 %v5529_v19, %v3278_v34  ;;  %v3265_v30 = vmul.f32 %v3203_v22, %v5453_v14  ;;  %v3181_v28 = vadd.f32 1e-05, %v3173_v3 }
 0xae0   : > { %v3884_v13 = vpop.eup %3883  ;;  %v3225_v40 = vmul.f32 %v3882_v31, %v3180_v44  ;;  %v3179_v52 = vadd.f32 1e-05, %v3171_v41  ;;  %vm3231_vm1 = vweird.f32 %v3882_v31 }
 0xae1   : > { %3298 = vst.msk [vmem:[%s5539_s23 + $0x10] sm:$0xff] %vm405_vm0, %v3290_v0  ;;  %v3277_v61 = vmul.f32 %v5524_v18, %v3265_v30  ;;  %v3185_v4 = vmul.f32 %v3884_v13, %v3176_v10  ;;  %3885 = vrsqrt.f32 %v3181_v28  ;;  %vm3191_vm2 = vweird.f32 %v3884_v13  ;;  %vm3232_vm4 = vmor %vm3230_vm3, %vm3231_vm1 }
 0xae2   : > { %v3226_v63 = vmul.f32 %v3882_v31, %v3225_v40  ;;  %3887 = vrsqrt.f32 %v3179_v52  ;;  %vm3192_vm6 = vmor %vm3190_vm5, %vm3191_vm2  ;;  %vm3240_vm10 = vweird.f32 %v3181_v28  ;;  %vm3220_vm12 = vweird.f32 %v3179_v52 }
 0xae3   : > { %v3289_v9 = vadd.f32 %v5529_v19, %v3277_v61  ;;  %v3186_v14 = vmul.f32 %v3884_v13, %v3185_v4  ;;  %vm2891_vm2 = vcmask 523264  }
 0xae4   : > { %v3227_v23 = vmul.f32 0.5, %v3226_v63 }
 0xae5   : > { %3297 = vst.msk [vmem:[%s5539_s23 + $0x8] sm:$0xff] %vm405_vm0, %v3289_v9  ;;  %v3187_v36 = vmul.f32 0.5, %v3186_v14  ;;  %v2889_v14 = vpop.permute.xlu2 %2888 }
 0xae6   : > { %v3228_v33 = vsub.f32 1.5, %v3227_v23 }
 0xae7   : > { %v3886_v5 = vpop.eup %3885  ;;  %v3188_v37 = vsub.f32 1.5, %v3187_v36 }
 0xae8   : > { %v3888_v11 = vpop.eup %3887  ;;  %v3229_v24 = vmul.f32 %v3882_v31, %v3228_v33  ;;  %v3235_v35 = vmul.f32 %v3886_v5, %v3181_v28  ;;  %vm3241_vm7 = vweird.f32 %v3886_v5 }
 0xae9   : > { %v3189_v43 = vmul.f32 %v3884_v13, %v3188_v37  ;;  %v3215_v20 = vmul.f32 %v3888_v11, %v3179_v52  ;;  %vm3221_vm9 = vweird.f32 %v3888_v11  ;;  %vm3242_vm11 = vmor %vm3240_vm10, %vm3241_vm7 }
 0xaea   : > { %v3233_v46 = vsel %vm3232_vm4, %v3882_v31, %v3229_v24  ;;  %v3236_v38 = vmul.f32 %v3886_v5, %v3235_v35  ;;  %vm3222_vm13 = vmor %vm3220_vm12, %vm3221_vm9 }
 0xaeb   : > { %v3268_v25 = vmul.f32 %v3233_v46, %v5468_v6  ;;  %v3193_v27 = vsel %vm3192_vm6, %v3884_v13, %v3189_v43  ;;  %v3216_v50 = vmul.f32 %v3888_v11, %v3215_v20 }
 0xaec   : > { %v3264_v62 = vmul.f32 %v3193_v27, %v5465_v8  ;;  %v3237_v54 = vmul.f32 0.5, %v3236_v38 }
 0xaed   : > { %v3280_v53 = vmul.f32 %v5524_v18, %v3268_v25  ;;  %v3217_v7 = vmul.f32 0.5, %v3216_v50 }
 0xaee   : > { %v3276_v17 = vmul.f32 %v5524_v18, %v3264_v62  ;;  %v3238_v56 = vsub.f32 1.5, %v3237_v54 }
 0xaef   : > { %v3292_v58 = vadd.f32 %v5529_v19, %v3280_v53  ;;  %v3218_v12 = vsub.f32 1.5, %v3217_v7 }
 0xaf0   : > { %v3288_v6 = vadd.f32 %v5529_v19, %v3276_v17  ;;  %v3239_v21 = vmul.f32 %v3886_v5, %v3238_v56 }
 0xaf1   : > { %3300 = vst.msk [vmem:[%s5539_s23 + $0x20] sm:$0xff] %vm405_vm0, %v3292_v58  ;;  %v3219_v8 = vmul.f32 %v3888_v11, %v3218_v12 }
 0xaf2   : > { %3296 = vst.msk [vmem:[%s5539_s23] sm:$0xff] %vm405_vm0, %v3288_v6  ;;  %v3243_v39 = vsel %vm3242_vm11, %v3886_v5, %v3239_v21 }
 0xaf3   : > { %v3269_v45 = vmul.f32 %v3243_v39, %v5480_v47  ;;  %v3223_v49 = vsel %vm3222_vm13, %v3888_v11, %v3219_v8 }
 0xaf4   : > { %v3267_v44 = vmul.f32 %v3223_v49, %v5476_v1 }
 0xaf5   : > { %v3281_v48 = vmul.f32 %v5524_v18, %v3269_v45 }
 0xaf6   : > { %v3279_v2 = vmul.f32 %v5524_v18, %v3267_v44 }
 0xaf7   : > { %v3293_v10 = vadd.f32 %v5529_v19, %v3281_v48 }
 0xaf8   : > { %v3291_v59 = vadd.f32 %v5529_v19, %v3279_v2 }
 0xaf9   : > { %3301 = vst.msk [vmem:[%s5539_s23 + $0x28] sm:$0xff] %vm405_vm0, %v3293_v10 }
 0xafa   : > { %3299 = vst.msk [vmem:[%s5539_s23 + $0x18] sm:$0xff] %vm405_vm0, %v3291_v59 }
 0xb05   : > { %v3164_v32 = vpop.xlane.xlu1 %3163 }
 0xb06   : > { %v3174_v60 = vmul.f32 %v3164_v32, %v5448_v26 }
 0xb08   : > { %v3182_v47 = vadd.f32 1e-05, %v3174_v60 }
 0xb0a   : > { %3889 = vrsqrt.f32 %v3182_v47  ;;  %vm3250_vm15 = vweird.f32 %v3182_v47 }
 0xb0d   : > { %v3167_v1 = vpop.xlane.xlu0 %3166 }
 0xb0e   : > { %v3175_v57 = vmul.f32 %v3167_v1, %v5448_v26 }
 0xb10   : > { %v3890_v15 = vpop.eup %3889  ;;  %v3183_v34 = vadd.f32 1e-05, %v3175_v57 }
 0xb11   : > { %v3245_v3 = vmul.f32 %v3890_v15, %v3182_v47  ;;  %vm3251_vm14 = vweird.f32 %v3890_v15 }
 0xb12   : > { %3891 = vrsqrt.f32 %v3183_v34  ;;  %vm3252_vm1 = vmor %vm3250_vm15, %vm3251_vm14  ;;  %vm3260_vm4 = vweird.f32 %v3183_v34 }
 0xb13   : > { %v3246_v55 = vmul.f32 %v3890_v15, %v3245_v3 }
 0xb15   : > { %v3247_v22 = vmul.f32 0.5, %v3246_v55 }
 0xb17   : > { %v3248_v41 = vsub.f32 1.5, %v3247_v22 }
 0xb18   : > { %v3892_v31 = vpop.eup %3891 }
 0xb19   : > { %v3249_v0 = vmul.f32 %v3890_v15, %v3248_v41  ;;  %v3255_v30 = vmul.f32 %v3892_v31, %v3183_v34  ;;  %vm3261_vm3 = vweird.f32 %v3892_v31 }
 0xb1a   : > { %vm3262_vm5 = vmor %vm3260_vm4, %vm3261_vm3 }
 0xb1b   : > { %v3253_v28 = vsel %vm3252_vm1, %v3890_v15, %v3249_v0  ;;  %v3256_v13 = vmul.f32 %v3892_v31, %v3255_v30 }
 0xb1c   : > { %v3270_v26 = vmul.f32 %v3253_v28, %v5493_v42 }
 0xb1d   : > { %v3257_v40 = vmul.f32 0.5, %v3256_v13  ;;  %v2885_v52 = vpop.permute.xlu1 %2884 }
 0xb1e   : > { %v3282_v61 = vmul.f32 %v5524_v18, %v3270_v26  ;;  %v2892_v4 = vsel %vm2891_vm2, %v5507_v29, %v2885_v52 }
 0xb1f   : > { %v3258_v63 = vsub.f32 1.5, %v3257_v40  ;;  %2894 = vst [vmem:[%s369_s10] sm:$0xff] %v2892_v4 }
 0xb20   : > { %v3294_v9 = vadd.f32 %v5529_v19, %v3282_v61  ;;  %v2095_v42 = vpop.permute.xlu0 %2094 }
 0xb21   : > { %v3259_v23 = vmul.f32 %v3892_v31, %v3258_v63  ;;  %v2103_v36 = vsel %vm895_vm8, %v5511_v16, %v2095_v42 }
 0xb22   : > { %3302 = vst.msk [vmem:[%s5539_s23 + $0x30] sm:$0xff] %vm405_vm0, %v3294_v9  ;;  %v2893_v29 = vsel %vm2891_vm2, %v2103_v36, %v2889_v14 }
 0xb23   : > { %v3263_v33 = vsel %vm3262_vm5, %v3892_v31, %v3259_v23  ;;  %2895 = vst [vmem:[%s369_s10 + $0x8] sm:$0xff] %v2893_v29 }
 0xb24   : > { %v3271_v5 = vmul.f32 %v3263_v33, %v5499_v51 }
 0xb25   : > { %4018 = shalt.err (!%p4015_p10)
}
 0xb26   : > { %3599 = dma.vmem_to_hbm [thread:$0]  (%p4231_p3), %s3341_s21, 256, %s3343_s22, %s3310_s1   ;;  %v3283_v51 = vmul.f32 %v5524_v18, %v3271_v5 }
 0xb27   : > { %s3324_s10 = sshll.u32 %s3321_s20, 4  ;;  %s3305_s0 = scalar_lea.sflag [#allocation4], %s4261_s19  ;;  %s3325_s10 = int_to_ptr.hbm [resolvable:$true] %s3324_s10 }
 0xb28   : > { %v3295_v16 = vadd.f32 %v5529_v19, %v3283_v51  ;;  %s4033_s16 = sshra.s32 %s3325_s10, 4  ;;  %s4039_s21 = scalar_lea.hbm %s5642_s7, 128  ;;  %s4034_s16 = int_to_ptr.hbm [resolvable:$true] %s4033_s16 }
 0xb29   : > { %s4035_s18 = scalar_lea.hbm %s4034_s16, 64  ;;  %p4040_p5 = scmp.lt.s32.totalorder %s4034_s16, %s5642_s7 }
 0xb2a   : > { %3303 = vst.msk [vmem:[%s5539_s23 + $0x38] sm:$0xff] %vm405_vm0, %v3295_v16  ;;  %p4036_p12 = scmp.ne.s32.totalorder %s4034_s16, %s4035_s18  ;;  %p4041_p7 = scmp.lt.s32.totalorder %s4039_s21, %s4035_s18 }
 0xb2c   : > { %p4037_p13 = pnand %p4036_p12, %p4231_p3  ;;  %p4042_p1 = por %p4041_p7, %p4040_p5 }
 0xb2e   : > { %p4038_p0 = pneg %p4037_p13 }
 0xb30   : > { %p4043_p4 = pnand %p4042_p1, %p4038_p0 }
 0xb32   : > { %4046 = shalt.err (!%p4043_p4)
}
 0xb33   : > { %s4119_s19 = smov 128   ;;  %s5690_s23 = smov 8  }
 0xb34   : > { %3598 = dma.vmem_to_hbm [thread:$0]  (%p4231_p3), %s3323_s17, 1024, %s3325_s10, %s3305_s0, %s4119_s19, %s4119_s19, %s5690_s23  }
 0xb35 PF: > { %s3354_s1 = sand.u32 1, %s4081_s27   ;;  %p5691_p8 = scmp.ge.s32.totalorder %s4093_s30, 2 }
 0xb36   : > { %s3355_s11 = scalar_lea.sflag [#allocation4], %s3354_s1 }
 0xb37   : > { %p3614_p11 = pnand %p5691_p8, %p4200_p6 }
 0xb39   : > { %p3615_p2 = pneg %p3614_p11 }
 0xb3b   : > { %4072 = dma.done.wait (%p3615_p2), %s3355_s11, 1024  }
 0xb3c   : > { %4074 = vsyncadd (%p3615_p2), %s3355_s11, 4294966272  ;;  %s3365_s24 = scalar_lea.sflag [#allocation10], %s3354_s1 }
 0xb3d   : > { %4076 = dma.done.wait (%p3615_p2), %s3365_s24, 256  }
 0xb3e   : > { %4078 = vsyncadd (%p3615_p2), %s3365_s24, 4294967040  ;;  %p26_p3 = scmp.ge.s32.totalorder %s4221_s26, 4   ;;  %s5692_s27 = smov %s4085_s28 }
 0xb3f   : > { %s5693_s28 = smov %s4089_s29  ;;  %s5694_s29 = smov %s4237_s15 }
 0xb40   : > { %s5695_s30 = smov %s4221_s26  ;;  %28 = sbr.rel (!%p26_p3) target bundleno = 12 (0xc), region = 118 }
 0xb45   :  { %3371 = vsyncpa [#allocation3], 1 }
 0xb46   :  { %3373 = vsyncpa [#allocation3 + $0x1], 1 }
 0xb47   :  { %3374 = vsyncpa [#allocation6], 1 }
 0xb48   :  { %3375 = vsyncpa [#allocation4], 1 }
 0xb49   :  { %3377 = vsyncpa [#allocation4 + $0x1], 1 }
 0xb4a   :  { %3378 = vsyncpa [#allocation10], 1 }
 0xb4b   :  { %3380 = vsyncpa [#allocation10 + $0x1], 1 }

</bundles_post_ra>
